<compile_context>
chip_gen: v7x
topology: tpu7x:2x2x1
jax: 0.10.0
libtpu: 0.0.40
codegen_flags: <defaults>
</compile_context>

<pallas_src>
from functools import partial

import numpy as np
import jax
import jax.numpy as jnp
from jax.experimental import pallas as pl
from jax.experimental.pallas import tpu as pltpu

VMEM_LIMIT = 48 * 1024 * 1024  # > v5e/v6e scoped defaults, < v7x 64 MiB physical


def _invariant_spec(block_shape, index_map, single_buffer):
    """BlockSpec for a grid-invariant operand (constant index_map).

    Single-buffer it (pipeline_mode=pl.Buffered(1)) when requested/supported:
    it is never re-DMA'd anyway, and single buffering halves its VMEM footprint
    (matters for the big (5E,4E)/(E,4E) weights on v7x's 64 MiB VMEM).
    """
    if single_buffer:
        buffered = getattr(pl, "Buffered", None)
        if buffered is not None:
            try:
                return pl.BlockSpec(block_shape, index_map,
                                    pipeline_mode=buffered(1))
            except TypeError:
                pass
    return pl.BlockSpec(block_shape, index_map)


# ----------------------------------------------------------------------------
# Kernel 1: fused ELMo mix + LSTM input projection, hoisted over all timesteps.
#   gates_x = [emb | h1 | h2] @ A + b   with A = [A0; A1; A2]  (5E, 4E)
# grid over row blocks of the flattened (N = T*B) sequence ("parallel").
# ----------------------------------------------------------------------------
def elmo_gates_kernel(x0_ref, x1_ref, x2_ref, a_ref, b_ref, out_ref):
    # One (R,5E) @ (5E,4E) MXU contraction; K-accumulation stays in the MXU.
    x = jnp.concatenate([x0_ref[...], x1_ref[...], x2_ref[...]], axis=-1)
    g = jnp.dot(x, a_ref[...], preferred_element_type=jnp.float32) + b_ref[...]
    out_ref[...] = g.astype(out_ref.dtype)        # bf16 gate pre-activations


def elmo_gates(x0, x1, x2, a, b, *, rows_per_block, single_buffer_weights=True):
    N, E = x0.shape
    R = rows_per_block
    assert N % R == 0 and R % 8 == 0
    E5, E4 = a.shape
    return pl.pallas_call(
        elmo_gates_kernel,
        out_shape=jax.ShapeDtypeStruct((N, E4), jnp.bfloat16),
        grid=(N // R,),
        in_specs=[
            pl.BlockSpec((R, E), lambda r: (r, 0)),            # emb rows (bf16)
            pl.BlockSpec((R, 2 * E), lambda r: (r, 0)),        # h1 rows  (bf16)
            pl.BlockSpec((R, 2 * E), lambda r: (r, 0)),        # h2 rows  (bf16)
            _invariant_spec((E5, E4), lambda r: (0, 0), single_buffer_weights),
            _invariant_spec((1, E4), lambda r: (0, 0), single_buffer_weights),
        ],
        out_specs=pl.BlockSpec((R, E4), lambda r: (r, 0)),     # lane-dense 4E
        compiler_params=pltpu.CompilerParams(
            dimension_semantics=("parallel",),
            vmem_limit_bytes=VMEM_LIMIT),
    )(x0, x1, x2, a, b)


# ----------------------------------------------------------------------------
# Kernel 2: LSTM recurrence (packed-sequence semantics via in-kernel masking).
#   grid = (batch_blocks [parallel], time_blocks [arbitrary]); K steps / block.
#   Per step: ONE h @ W_hh (E,4E) matmul; gates_x is precomputed (bf16).
#   Output h_n = hidden state at the last valid step of each sequence.
#   NOTE: h_n stays resident across the time axis (same output block index for
#   all t); do not reorder the grid axes or mark the time axis "parallel".
# ----------------------------------------------------------------------------
def lstm_kernel(lens_ref, gx_ref, whh_ref, hn_ref, h_sc, c_sc):
    tb = pl.program_id(1)
    K = gx_ref.shape[0]
    E = hn_ref.shape[1]

    @pl.when(tb == 0)
    def _():
        h_sc[...] = jnp.zeros_like(h_sc)
        c_sc[...] = jnp.zeros_like(c_sc)

    lens = lens_ref[...]                          # (BB, 1) int32
    whh = whh_ref[...]                            # (E, 4E) bf16, grid-invariant
    t0 = tb * K

    def step(s, carry):
        h, c = carry                              # (BB, E) f32 each
        hb = h.astype(jnp.bfloat16)
        # One MXU push/drain per step; bf16 gates_x added into the f32 accumulator.
        gates = gx_ref[s].astype(jnp.float32) + jnp.dot(
            hb, whh, preferred_element_type=jnp.float32)       # (BB, 4E) f32
        i_g = jax.nn.sigmoid(gates[:, :E])        # static, 128-aligned slices
        f_g = jax.nn.sigmoid(gates[:, E:2 * E])
        g_g = jnp.tanh(gates[:, 2 * E:3 * E])
        o_g = jax.nn.sigmoid(gates[:, 3 * E:])
        c_new = f_g * c + i_g * g_g
        h_new = o_g * jnp.tanh(c_new)
        valid = (t0 + s) < lens                   # (BB,1): t < seq_len mask
        return jnp.where(valid, h_new, h), jnp.where(valid, c_new, c)

    h, c = jax.lax.fori_loop(0, K, step, (h_sc[...], c_sc[...]), unroll=True)
    h_sc[...] = h
    c_sc[...] = c

    @pl.when(tb == pl.num_programs(1) - 1)
    def _():
        hn_ref[...] = h


def lstm_recurrence(lens, gates, whh, *, steps_per_block=8, batch_block=None,
                    single_buffer_weights=True):
    T, B, E4 = gates.shape
    E = E4 // 4
    K = steps_per_block
    BB = B if batch_block is None else batch_block
    assert T % K == 0 and B % BB == 0 and BB % 8 == 0
    return pl.pallas_call(
        lstm_kernel,
        out_shape=jax.ShapeDtypeStruct((B, E), jnp.float32),
        grid=(B // BB, T // K),
        in_specs=[
            pl.BlockSpec((BB, 1), lambda b, t: (b, 0)),            # seq_lens
            pl.BlockSpec((K, BB, E4), lambda b, t: (t, b, 0)),     # gates_x bf16
            _invariant_spec((E, E4), lambda b, t: (0, 0), single_buffer_weights),
        ],
        out_specs=pl.BlockSpec((BB, E), lambda b, t: (b, 0)),
        scratch_shapes=[pltpu.VMEM((BB, E), jnp.float32),          # h
                        pltpu.VMEM((BB, E), jnp.float32)],         # c
        compiler_params=pltpu.CompilerParams(
            dimension_semantics=("parallel", "arbitrary"),
            vmem_limit_bytes=VMEM_LIMIT),
    )(lens, gates, whh)


# ----------------------------------------------------------------------------
# Plain-JAX glue: embedding lookup + synthetic frozen biLM + weight folding
# ----------------------------------------------------------------------------
def synthetic_bilm(params, emb_fwd, emb_rev):
    # TODO(synk): stand-in for the external biLM (not provided in the reference);
    # produces two hidden-state layers of width 2E, as ELMo's arithmetic requires.
    h1 = jnp.tanh(jnp.concatenate(
        [emb_fwd @ params["p1f"], emb_rev @ params["p1b"]], axis=-1))
    h2 = jnp.tanh(h1 @ params["p2"])
    return h1, h2


def _round_up(x, m):
    return ((x + m - 1) // m) * m


def _pick_rows_per_block(n, target=512):
    # Largest divisor of n that is <= target and a multiple of 8.
    for r in (512, 256, 128, 64, 32, 16, 8):
        if r <= target and n % r == 0:
            return r
    raise ValueError(f"N={n} must be a multiple of 8")


def sentiment_forward(params, input_fwd, input_rev, seq_lens, *,
                      steps_per_block=8, single_buffer_weights=True):
    T, B = input_fwd.shape
    E = params["embed"].shape[1]
    # E must be a multiple of 128 so gate slices are lane-aligned and the (R,4E)
    # kernel-1 output is lane-dense (unmasked stores).
    # TODO(synk): a gate-major (4,*,E) variant would be needed for E < 128.
    assert E % 128 == 0

    # Pad time to a multiple of the recurrence block and batch to a multiple of 8.
    # Padded steps / padded zero-length sequences are neutralized by the mask.
    K = steps_per_block
    T_pad = _round_up(T, K)
    B_pad = _round_up(B, 8)
    inf = jnp.pad(input_fwd, ((0, T_pad - T), (0, B_pad - B)))
    inr = jnp.pad(input_rev, ((0, T_pad - T), (0, B_pad - B)))
    lens = jnp.pad(seq_lens.astype(jnp.int32), (0, B_pad - B))

    emb = jnp.take(params["embed"], inf, axis=0)          # (T_pad, B_pad, E) f32
    emb_rev = jnp.take(params["embed"], inr, axis=0)
    h1, h2 = synthetic_bilm(params, emb, emb_rev)         # (T_pad, B_pad, 2E) each

    # Fold ELMo scalar mixing + embed-concat into the LSTM input projection:
    #   x @ W_ih == emb @ A0 + h1 @ A1 + h2 @ A2, with
    #   A0 = W0 + g*w0*(W1+W2),  A1 = g*w1*[W1;W2],  A2 = g*w2*[W1;W2],
    # stacked into one (5E,4E) weight so kernel 1 is a single MXU contraction.
    wih, w, g = params["wih"], params["elmo_w"], params["elmo_gamma"][0]
    W0, W1, W2 = wih[:E], wih[E:2 * E], wih[2 * E:]
    W12 = jnp.concatenate([W1, W2], axis=0)               # (2E, 4E)
    A = jnp.concatenate([W0 + (g * w[0]) * (W1 + W2),
                         (g * w[1]) * W12,
                         (g * w[2]) * W12], axis=0).astype(jnp.bfloat16)  # (5E,4E)
    b = params["b"]                                        # (1, 4E) f32
    whh = params["whh"].astype(jnp.bfloat16)               # (E, 4E)

    # Kernel 1: hoisted fused ELMo + input-projection GEMM (bf16 in / bf16 out).
    N = T_pad * B_pad
    R = _pick_rows_per_block(N)
    gates = elmo_gates(emb.reshape(N, E).astype(jnp.bfloat16),
                       h1.reshape(N, 2 * E).astype(jnp.bfloat16),
                       h2.reshape(N, 2 * E).astype(jnp.bfloat16),
                       A, b, rows_per_block=R,
                       single_buffer_weights=single_buffer_weights)  # (N, 4E) bf16
    gates = gates.reshape(T_pad, B_pad, 4 * E)

    # Kernel 2: masked LSTM recurrence -> h_n.  On v7x (2 TCs) split the batch
    # so the leading "parallel" axis has >= 2 blocks; keep whole batch otherwise.
    BB = B_pad // 2 if (B_pad >= 16 and (B_pad // 2) % 8 == 0) else B_pad
    h_n = lstm_recurrence(lens.reshape(B_pad, 1), gates, whh,
                          steps_per_block=K, batch_block=BB,
                          single_buffer_weights=single_buffer_weights)[:B]

    # Final tiny Linear(E -> num_classes) stays in XLA.
    return h_n @ params["wout"] + params["bout"]           # (B, num_classes)


# ----------------------------------------------------------------------------
# Pure-JAX reference (same math, f32 HIGHEST) for a sanity check
# ----------------------------------------------------------------------------
def reference_forward(params, input_fwd, input_rev, seq_lens):
    T, B = input_fwd.shape
    E = params["embed"].shape[1]
    emb = jnp.take(params["embed"], input_fwd, axis=0)
    emb_rev = jnp.take(params["embed"], input_rev, axis=0)
    h1, h2 = synthetic_bilm(params, emb, emb_rev)
    w, g = params["elmo_w"], params["elmo_gamma"][0]
    elmo = g * (w[0] * jnp.concatenate([emb, emb], axis=-1) + w[1] * h1 + w[2] * h2)
    x = jnp.concatenate([emb, elmo], axis=-1)

    hi = jax.lax.Precision.HIGHEST
    h = jnp.zeros((B, E), jnp.float32)
    c = jnp.zeros((B, E), jnp.float32)
    for t in range(T):
        gates = (jnp.dot(x[t], params["wih"], precision=hi)
                 + jnp.dot(h, params["whh"], precision=hi) + params["b"])
        i_g = jax.nn.sigmoid(gates[:, :E])
        f_g = jax.nn.sigmoid(gates[:, E:2 * E])
        g_g = jnp.tanh(gates[:, 2 * E:3 * E])
        o_g = jax.nn.sigmoid(gates[:, 3 * E:])
        c_new = f_g * c + i_g * g_g
        h_new = o_g * jnp.tanh(c_new)
        m = (t < seq_lens)[:, None].astype(jnp.float32)
        h = m * h_new + (1.0 - m) * h
        c = m * c_new + (1.0 - m) * c
    return jnp.dot(h, params["wout"], precision=hi) + params["bout"]


# ----------------------------------------------------------------------------
# Deterministic parameter init + inputs
# ----------------------------------------------------------------------------
def init_params(key, vocab, E, num_classes):
    ks = jax.random.split(key, 9)
    s = 0.1
    return dict(
        embed=s * jax.random.normal(ks[0], (vocab, E), jnp.float32),
        # synthetic (frozen) biLM projections
        p1f=s * jax.random.normal(ks[1], (E, E), jnp.float32),
        p1b=s * jax.random.normal(ks[2], (E, E), jnp.float32),
        p2=s * jax.random.normal(ks[3], (2 * E, 2 * E), jnp.float32),
        # ELMo scalar mixing params (module defaults)
        elmo_w=jnp.array([1.0 / 3.0] * 3, jnp.float32),
        elmo_gamma=jnp.ones((1,), jnp.float32),
        # nn.LSTM(3E -> E), gate order i,f,g,o; stored transposed for x @ W
        wih=s * jax.random.normal(ks[4], (3 * E, 4 * E), jnp.float32),
        whh=s * jax.random.normal(ks[5], (E, 4 * E), jnp.float32),
        b=s * jax.random.normal(ks[6], (1, 4 * E), jnp.float32),   # b_ih + b_hh
        # nn.Linear(E -> num_classes), stored transposed
        wout=s * jax.random.normal(ks[7], (E, num_classes), jnp.float32),
        bout=s * jax.random.normal(ks[8], (1, num_classes), jnp.float32),
    )


def reverse_padded(x, lens):
    # Per-sequence reversal of the valid prefix (builds input_rev from input_fwd).
    T = x.shape[0]
    idx = jnp.arange(T)[:, None]
    rev_idx = jnp.where(idx < lens[None, :], lens[None, :] - 1 - idx, idx)
    return jnp.take_along_axis(x, rev_idx, axis=0)


if __name__ == "__main__":
    V, E, T, B, C = 50, 128, 8, 8, 4

    key = jax.random.PRNGKey(0)
    k_params, k_tokens = jax.random.split(key)
    params = init_params(k_params, V, E, C)

    input_fwd = jax.random.randint(k_tokens, (T, B), 0, V, dtype=jnp.int32)
    seq_lens = jnp.array([8, 7, 6, 5, 4, 3, 2, 1], dtype=jnp.int32)  # sorted desc
    input_rev = reverse_padded(input_fwd, seq_lens)

    try:
        logits = jax.jit(sentiment_forward)(params, input_fwd, input_rev, seq_lens)
        jax.block_until_ready(logits)
    except Exception:
        # Fallback for Pallas versions that reject pipeline_mode=Buffered(1) on
        # the grid-invariant weight specs: use default double buffering.
        logits = jax.jit(partial(sentiment_forward, single_buffer_weights=False))(
            params, input_fwd, input_rev, seq_lens)
        jax.block_until_ready(logits)

    ref = reference_forward(params, input_fwd, input_rev, seq_lens)
    np.testing.assert_allclose(np.asarray(logits), np.asarray(ref),
                               atol=2e-2, rtol=2e-2)

    print("KERNEL_OK")
</pallas_src>

<mosaic_0001>
module attributes {stable_mosaic.version = 11 : i64} {
  func.func @elmo_gates_kernel(%arg0: i32, %arg1: memref<64x128xbf16, #tpu.memory_space<vmem>>, %arg2: memref<64x256xbf16, #tpu.memory_space<vmem>>, %arg3: memref<64x256xbf16, #tpu.memory_space<vmem>>, %arg4: memref<640x512xbf16, #tpu.memory_space<vmem>>, %arg5: memref<1x512xf32, #tpu.memory_space<vmem>>, %arg6: memref<64x512xbf16, #tpu.memory_space<vmem>>) attributes {dimension_semantics = [#tpu.dimension_semantics<parallel>], iteration_bounds = array<i64: 1>, scalar_prefetch = 0 : i64, scratch_operands = 0 : i64, tpu.core_type = #tpu.core_type<tc>, window_params = [{transform_indices = @transform_0, window_bounds = array<i64: 64, 128>}, {transform_indices = @transform_1, window_bounds = array<i64: 64, 256>}, {transform_indices = @transform_2, window_bounds = array<i64: 64, 256>}, {pipeline_mode = #tpu.pipeline_mode<synchronous>, transform_indices = @transform_3, window_bounds = array<i64: 640, 512>}, {pipeline_mode = #tpu.pipeline_mode<synchronous>, transform_indices = @transform_4, window_bounds = array<i64: 1, 512>}, {transform_indices = @transform_5, window_bounds = array<i64: 64, 512>}]} {
    %c0 = arith.constant 0 : index
    %c0_0 = arith.constant 0 : index
    %0 = vector.load %arg1[%c0, %c0_0] : memref<64x128xbf16, #tpu.memory_space<vmem>>, vector<64x128xbf16>
    %c0_1 = arith.constant 0 : index
    %c0_2 = arith.constant 0 : index
    %1 = vector.load %arg2[%c0_1, %c0_2] : memref<64x256xbf16, #tpu.memory_space<vmem>>, vector<64x256xbf16>
    %c0_3 = arith.constant 0 : index
    %c0_4 = arith.constant 0 : index
    %2 = vector.load %arg3[%c0_3, %c0_4] : memref<64x256xbf16, #tpu.memory_space<vmem>>, vector<64x256xbf16>
    %3 = tpu.concatenate %0, %1, %2 in 1 : vector<64x128xbf16>, vector<64x256xbf16>, vector<64x256xbf16> -> vector<64x640xbf16>
    %c0_5 = arith.constant 0 : index
    %c0_6 = arith.constant 0 : index
    %4 = vector.load %arg4[%c0_5, %c0_6] : memref<640x512xbf16, #tpu.memory_space<vmem>>, vector<640x512xbf16>
    %cst = arith.constant dense<0.000000e+00> : vector<64x512xf32>
    %5 = tpu.matmul %3, %4, %cst {dimension_numbers = #tpu.dot_dimension_numbers<[1], [0], [0], [1], [0, 0, 1, 1], [], []>} : vector<64x640xbf16>, vector<640x512xbf16>, vector<64x512xf32> -> vector<64x512xf32>
    %c0_7 = arith.constant 0 : index
    %c0_8 = arith.constant 0 : index
    %6 = vector.load %arg5[%c0_7, %c0_8] : memref<1x512xf32, #tpu.memory_space<vmem>>, vector<1x512xf32>
    %7 = vector.broadcast %6 : vector<1x512xf32> to vector<64x512xf32>
    %8 = arith.addf %5, %7 : vector<64x512xf32>
    %9 = arith.truncf %8 : vector<64x512xf32> to vector<64x512xbf16>
    %c0_9 = arith.constant 0 : index
    %c0_10 = arith.constant 0 : index
    %10 = vector.load %arg6[%c0_9, %c0_10] : memref<64x512xbf16, #tpu.memory_space<vmem>>, vector<64x512xbf16>
    tpu.vector_store %arg6[%c0_9, %c0_10], %9 {strides = array<i32>} : memref<64x512xbf16, #tpu.memory_space<vmem>>, vector<64x512xbf16>,
    return
  }
  func.func @transform_0(%arg0: i32) -> (i32, i32) {
    %c0_i32 = arith.constant 0 : i32
    %c0_i32_0 = arith.constant 0 : i32
    return %arg0, %c0_i32 : i32, i32
  }
  func.func @transform_1(%arg0: i32) -> (i32, i32) {
    %c0_i32 = arith.constant 0 : i32
    %c0_i32_0 = arith.constant 0 : i32
    return %arg0, %c0_i32 : i32, i32
  }
  func.func @transform_2(%arg0: i32) -> (i32, i32) {
    %c0_i32 = arith.constant 0 : i32
    %c0_i32_0 = arith.constant 0 : i32
    return %arg0, %c0_i32 : i32, i32
  }
  func.func @transform_3(%arg0: i32) -> (i32, i32) {
    %c0_i32 = arith.constant 0 : i32
    %c0_i32_0 = arith.constant 0 : i32
    %c0_i32_1 = arith.constant 0 : i32
    return %c0_i32, %c0_i32_0 : i32, i32
  }
  func.func @transform_4(%arg0: i32) -> (i32, i32) {
    %c0_i32 = arith.constant 0 : i32
    %c0_i32_0 = arith.constant 0 : i32
    %c0_i32_1 = arith.constant 0 : i32
    return %c0_i32, %c0_i32_0 : i32, i32
  }
  func.func @transform_5(%arg0: i32) -> (i32, i32) {
    %c0_i32 = arith.constant 0 : i32
    %c0_i32_0 = arith.constant 0 : i32
    return %arg0, %c0_i32 : i32, i32
  }
}

module attributes {stable_mosaic.version = 11 : i64} {
  func.func @lstm_kernel(%arg0: i32, %arg1: i32, %arg2: memref<8x1xi32, #tpu.memory_space<vmem>>, %arg3: memref<8x8x512xbf16, #tpu.memory_space<vmem>>, %arg4: memref<128x512xbf16, #tpu.memory_space<vmem>>, %arg5: memref<8x128xf32, #tpu.memory_space<vmem>>, %arg6: memref<8x128xf32, #tpu.memory_space<vmem>>, %arg7: memref<8x128xf32, #tpu.memory_space<vmem>>) attributes {dimension_semantics = [#tpu.dimension_semantics<parallel>, #tpu.dimension_semantics<arbitrary>], iteration_bounds = array<i64: 1, 1>, scalar_prefetch = 0 : i64, scratch_operands = 2 : i64, tpu.core_type = #tpu.core_type<tc>, window_params = [{transform_indices = @transform_0, window_bounds = array<i64: 8, 1>}, {transform_indices = @transform_1, window_bounds = array<i64: 8, 8, 512>}, {pipeline_mode = #tpu.pipeline_mode<synchronous>, transform_indices = @transform_2, window_bounds = array<i64: 128, 512>}, {transform_indices = @transform_3, window_bounds = array<i64: 8, 128>}]} {
    %c0_i32 = arith.constant 0 : i32
    %0 = arith.cmpi eq, %arg1, %c0_i32 : i32
    %1 = arith.extui %0 : i1 to i32
    %c0_i32_0 = arith.constant 0 : i32
    %2 = arith.cmpi ne, %1, %c0_i32_0 : i32
    scf.if %2 {
      %cst_63 = arith.constant 0.000000e+00 : f32
      %341 = vector.broadcast %cst_63 : f32 to vector<8x128xf32>
      %c0_64 = arith.constant 0 : index
      %c0_65 = arith.constant 0 : index
      %342 = vector.load %arg6[%c0_64, %c0_65] : memref<8x128xf32, #tpu.memory_space<vmem>>, vector<8x128xf32>
      tpu.vector_store %arg6[%c0_64, %c0_65], %341 {strides = array<i32>} : memref<8x128xf32, #tpu.memory_space<vmem>>, vector<8x128xf32>,
      %cst_66 = arith.constant 0.000000e+00 : f32
      %343 = vector.broadcast %cst_66 : f32 to vector<8x128xf32>
      %c0_67 = arith.constant 0 : index
      %c0_68 = arith.constant 0 : index
      %344 = vector.load %arg7[%c0_67, %c0_68] : memref<8x128xf32, #tpu.memory_space<vmem>>, vector<8x128xf32>
      tpu.vector_store %arg7[%c0_67, %c0_68], %343 {strides = array<i32>} : memref<8x128xf32, #tpu.memory_space<vmem>>, vector<8x128xf32>,
    } else {
    }
    %c0 = arith.constant 0 : index
    %c0_1 = arith.constant 0 : index
    %3 = vector.load %arg2[%c0, %c0_1] : memref<8x1xi32, #tpu.memory_space<vmem>>, vector<8x1xi32>
    %c0_2 = arith.constant 0 : index
    %c0_3 = arith.constant 0 : index
    %4 = vector.load %arg4[%c0_2, %c0_3] : memref<128x512xbf16, #tpu.memory_space<vmem>>, vector<128x512xbf16>
    %c8_i32 = arith.constant 8 : i32
    %5 = arith.muli %arg1, %c8_i32 : i32
    %c0_4 = arith.constant 0 : index
    %c0_5 = arith.constant 0 : index
    %6 = vector.load %arg6[%c0_4, %c0_5] : memref<8x128xf32, #tpu.memory_space<vmem>>, vector<8x128xf32>
    %c0_6 = arith.constant 0 : index
    %c0_7 = arith.constant 0 : index
    %7 = vector.load %arg7[%c0_6, %c0_7] : memref<8x128xf32, #tpu.memory_space<vmem>>, vector<8x128xf32>
    %c0_i32_8 = arith.constant 0 : i32
    %8 = arith.truncf %6 : vector<8x128xf32> to vector<8x128xbf16>
    %9 = arith.index_cast %c0_i32_8 : i32 to index
    %c0_9 = arith.constant 0 : index
    %c0_10 = arith.constant 0 : index
    %10 = vector.load %arg3[%9, %c0_9, %c0_10] : memref<8x8x512xbf16, #tpu.memory_space<vmem>>, vector<1x8x512xbf16>
    %11 = vector.shape_cast %10 : vector<1x8x512xbf16> to vector<8x512xbf16>
    %12 = arith.extf %11 : vector<8x512xbf16> to vector<8x512xf32>
    %cst = arith.constant dense<0.000000e+00> : vector<8x512xf32>
    %13 = tpu.matmul %8, %4, %cst {dimension_numbers = #tpu.dot_dimension_numbers<[1], [0], [0], [1], [0, 0, 1, 1], [], []>} : vector<8x128xbf16>, vector<128x512xbf16>, vector<8x512xf32> -> vector<8x512xf32>
    %14 = arith.addf %12, %13 : vector<8x512xf32>
    %15 = vector.extract_strided_slice %14 {offsets = [0, 0], sizes = [8, 128], strides = [1, 1]} : vector<8x512xf32> to vector<8x128xf32>
    %16 = arith.negf %15 : vector<8x128xf32>
    %17 = math.exp %16 : vector<8x128xf32>
    %cst_11 = arith.constant 1.000000e+00 : f32
    %18 = vector.broadcast %cst_11 : f32 to vector<8x128xf32>
    %19 = arith.addf %18, %17 : vector<8x128xf32>
    %20 = arith.divf %18, %19 : vector<8x128xf32>
    %21 = vector.extract_strided_slice %14 {offsets = [0, 128], sizes = [8, 128], strides = [1, 1]} : vector<8x512xf32> to vector<8x128xf32>
    %22 = arith.negf %21 : vector<8x128xf32>
    %23 = math.exp %22 : vector<8x128xf32>
    %cst_12 = arith.constant 1.000000e+00 : f32
    %24 = vector.broadcast %cst_12 : f32 to vector<8x128xf32>
    %25 = arith.addf %24, %23 : vector<8x128xf32>
    %26 = arith.divf %24, %25 : vector<8x128xf32>
    %27 = vector.extract_strided_slice %14 {offsets = [0, 256], sizes = [8, 128], strides = [1, 1]} : vector<8x512xf32> to vector<8x128xf32>
    %28 = math.tanh %27 : vector<8x128xf32>
    %29 = vector.extract_strided_slice %14 {offsets = [0, 384], sizes = [8, 128], strides = [1, 1]} : vector<8x512xf32> to vector<8x128xf32>
    %30 = arith.negf %29 : vector<8x128xf32>
    %31 = math.exp %30 : vector<8x128xf32>
    %cst_13 = arith.constant 1.000000e+00 : f32
    %32 = vector.broadcast %cst_13 : f32 to vector<8x128xf32>
    %33 = arith.addf %32, %31 : vector<8x128xf32>
    %34 = arith.divf %32, %33 : vector<8x128xf32>
    %35 = arith.mulf %26, %7 : vector<8x128xf32>
    %36 = arith.mulf %20, %28 : vector<8x128xf32>
    %37 = arith.addf %35, %36 : vector<8x128xf32>
    %38 = math.tanh %37 : vector<8x128xf32>
    %39 = arith.mulf %34, %38 : vector<8x128xf32>
    %40 = arith.addi %5, %c0_i32_8 : i32
    %41 = vector.broadcast %40 : i32 to vector<8x1xi32>
    %42 = arith.cmpi slt, %41, %3 : vector<8x1xi32>
    %43 = vector.shape_cast %42 : vector<8x1xi1> to vector<8x1xi1>
    %44 = vector.broadcast %43 : vector<8x1xi1> to vector<8x128xi1>
    %45 = arith.select %44, %39, %6 : vector<8x128xi1>, vector<8x128xf32>
    %46 = vector.shape_cast %42 : vector<8x1xi1> to vector<8x1xi1>
    %47 = vector.broadcast %46 : vector<8x1xi1> to vector<8x128xi1>
    %48 = arith.select %47, %37, %7 : vector<8x128xi1>, vector<8x128xf32>
    %c1_i32 = arith.constant 1 : i32
    %49 = arith.truncf %45 : vector<8x128xf32> to vector<8x128xbf16>
    %50 = arith.index_cast %c1_i32 : i32 to index
    %c0_14 = arith.constant 0 : index
    %c0_15 = arith.constant 0 : index
    %51 = vector.load %arg3[%50, %c0_14, %c0_15] : memref<8x8x512xbf16, #tpu.memory_space<vmem>>, vector<1x8x512xbf16>
    %52 = vector.shape_cast %51 : vector<1x8x512xbf16> to vector<8x512xbf16>
    %53 = arith.extf %52 : vector<8x512xbf16> to vector<8x512xf32>
    %cst_16 = arith.constant dense<0.000000e+00> : vector<8x512xf32>
    %54 = tpu.matmul %49, %4, %cst_16 {dimension_numbers = #tpu.dot_dimension_numbers<[1], [0], [0], [1], [0, 0, 1, 1], [], []>} : vector<8x128xbf16>, vector<128x512xbf16>, vector<8x512xf32> -> vector<8x512xf32>
    %55 = arith.addf %53, %54 : vector<8x512xf32>
    %56 = vector.extract_strided_slice %55 {offsets = [0, 0], sizes = [8, 128], strides = [1, 1]} : vector<8x512xf32> to vector<8x128xf32>
    %57 = arith.negf %56 : vector<8x128xf32>
    %58 = math.exp %57 : vector<8x128xf32>
    %cst_17 = arith.constant 1.000000e+00 : f32
    %59 = vector.broadcast %cst_17 : f32 to vector<8x128xf32>
    %60 = arith.addf %59, %58 : vector<8x128xf32>
    %61 = arith.divf %59, %60 : vector<8x128xf32>
    %62 = vector.extract_strided_slice %55 {offsets = [0, 128], sizes = [8, 128], strides = [1, 1]} : vector<8x512xf32> to vector<8x128xf32>
    %63 = arith.negf %62 : vector<8x128xf32>
    %64 = math.exp %63 : vector<8x128xf32>
    %cst_18 = arith.constant 1.000000e+00 : f32
    %65 = vector.broadcast %cst_18 : f32 to vector<8x128xf32>
    %66 = arith.addf %65, %64 : vector<8x128xf32>
    %67 = arith.divf %65, %66 : vector<8x128xf32>
    %68 = vector.extract_strided_slice %55 {offsets = [0, 256], sizes = [8, 128], strides = [1, 1]} : vector<8x512xf32> to vector<8x128xf32>
    %69 = math.tanh %68 : vector<8x128xf32>
    %70 = vector.extract_strided_slice %55 {offsets = [0, 384], sizes = [8, 128], strides = [1, 1]} : vector<8x512xf32> to vector<8x128xf32>
    %71 = arith.negf %70 : vector<8x128xf32>
    %72 = math.exp %71 : vector<8x128xf32>
    %cst_19 = arith.constant 1.000000e+00 : f32
    %73 = vector.broadcast %cst_19 : f32 to vector<8x128xf32>
    %74 = arith.addf %73, %72 : vector<8x128xf32>
    %75 = arith.divf %73, %74 : vector<8x128xf32>
    %76 = arith.mulf %67, %48 : vector<8x128xf32>
    %77 = arith.mulf %61, %69 : vector<8x128xf32>
    %78 = arith.addf %76, %77 : vector<8x128xf32>
    %79 = math.tanh %78 : vector<8x128xf32>
    %80 = arith.mulf %75, %79 : vector<8x128xf32>
    %81 = arith.addi %5, %c1_i32 : i32
    %82 = vector.broadcast %81 : i32 to vector<8x1xi32>
    %83 = arith.cmpi slt, %82, %3 : vector<8x1xi32>
    %84 = vector.shape_cast %83 : vector<8x1xi1> to vector<8x1xi1>
    %85 = vector.broadcast %84 : vector<8x1xi1> to vector<8x128xi1>
    %86 = arith.select %85, %80, %45 : vector<8x128xi1>, vector<8x128xf32>
    %87 = vector.shape_cast %83 : vector<8x1xi1> to vector<8x1xi1>
    %88 = vector.broadcast %87 : vector<8x1xi1> to vector<8x128xi1>
    %89 = arith.select %88, %78, %48 : vector<8x128xi1>, vector<8x128xf32>
    %c2_i32 = arith.constant 2 : i32
    %90 = arith.truncf %86 : vector<8x128xf32> to vector<8x128xbf16>
    %91 = arith.index_cast %c2_i32 : i32 to index
    %c0_20 = arith.constant 0 : index
    %c0_21 = arith.constant 0 : index
    %92 = vector.load %arg3[%91, %c0_20, %c0_21] : memref<8x8x512xbf16, #tpu.memory_space<vmem>>, vector<1x8x512xbf16>
    %93 = vector.shape_cast %92 : vector<1x8x512xbf16> to vector<8x512xbf16>
    %94 = arith.extf %93 : vector<8x512xbf16> to vector<8x512xf32>
    %cst_22 = arith.constant dense<0.000000e+00> : vector<8x512xf32>
    %95 = tpu.matmul %90, %4, %cst_22 {dimension_numbers = #tpu.dot_dimension_numbers<[1], [0], [0], [1], [0, 0, 1, 1], [], []>} : vector<8x128xbf16>, vector<128x512xbf16>, vector<8x512xf32> -> vector<8x512xf32>
    %96 = arith.addf %94, %95 : vector<8x512xf32>
    %97 = vector.extract_strided_slice %96 {offsets = [0, 0], sizes = [8, 128], strides = [1, 1]} : vector<8x512xf32> to vector<8x128xf32>
    %98 = arith.negf %97 : vector<8x128xf32>
    %99 = math.exp %98 : vector<8x128xf32>
    %cst_23 = arith.constant 1.000000e+00 : f32
    %100 = vector.broadcast %cst_23 : f32 to vector<8x128xf32>
    %101 = arith.addf %100, %99 : vector<8x128xf32>
    %102 = arith.divf %100, %101 : vector<8x128xf32>
    %103 = vector.extract_strided_slice %96 {offsets = [0, 128], sizes = [8, 128], strides = [1, 1]} : vector<8x512xf32> to vector<8x128xf32>
    %104 = arith.negf %103 : vector<8x128xf32>
    %105 = math.exp %104 : vector<8x128xf32>
    %cst_24 = arith.constant 1.000000e+00 : f32
    %106 = vector.broadcast %cst_24 : f32 to vector<8x128xf32>
    %107 = arith.addf %106, %105 : vector<8x128xf32>
    %108 = arith.divf %106, %107 : vector<8x128xf32>
    %109 = vector.extract_strided_slice %96 {offsets = [0, 256], sizes = [8, 128], strides = [1, 1]} : vector<8x512xf32> to vector<8x128xf32>
    %110 = math.tanh %109 : vector<8x128xf32>
    %111 = vector.extract_strided_slice %96 {offsets = [0, 384], sizes = [8, 128], strides = [1, 1]} : vector<8x512xf32> to vector<8x128xf32>
    %112 = arith.negf %111 : vector<8x128xf32>
    %113 = math.exp %112 : vector<8x128xf32>
    %cst_25 = arith.constant 1.000000e+00 : f32
    %114 = vector.broadcast %cst_25 : f32 to vector<8x128xf32>
    %115 = arith.addf %114, %113 : vector<8x128xf32>
    %116 = arith.divf %114, %115 : vector<8x128xf32>
    %117 = arith.mulf %108, %89 : vector<8x128xf32>
    %118 = arith.mulf %102, %110 : vector<8x128xf32>
    %119 = arith.addf %117, %118 : vector<8x128xf32>
    %120 = math.tanh %119 : vector<8x128xf32>
    %121 = arith.mulf %116, %120 : vector<8x128xf32>
    %122 = arith.addi %5, %c2_i32 : i32
    %123 = vector.broadcast %122 : i32 to vector<8x1xi32>
    %124 = arith.cmpi slt, %123, %3 : vector<8x1xi32>
    %125 = vector.shape_cast %124 : vector<8x1xi1> to vector<8x1xi1>
    %126 = vector.broadcast %125 : vector<8x1xi1> to vector<8x128xi1>
    %127 = arith.select %126, %121, %86 : vector<8x128xi1>, vector<8x128xf32>
    %128 = vector.shape_cast %124 : vector<8x1xi1> to vector<8x1xi1>
    %129 = vector.broadcast %128 : vector<8x1xi1> to vector<8x128xi1>
    %130 = arith.select %129, %119, %89 : vector<8x128xi1>, vector<8x128xf32>
    %c3_i32 = arith.constant 3 : i32
    %131 = arith.truncf %127 : vector<8x128xf32> to vector<8x128xbf16>
    %132 = arith.index_cast %c3_i32 : i32 to index
    %c0_26 = arith.constant 0 : index
    %c0_27 = arith.constant 0 : index
    %133 = vector.load %arg3[%132, %c0_26, %c0_27] : memref<8x8x512xbf16, #tpu.memory_space<vmem>>, vector<1x8x512xbf16>
    %134 = vector.shape_cast %133 : vector<1x8x512xbf16> to vector<8x512xbf16>
    %135 = arith.extf %134 : vector<8x512xbf16> to vector<8x512xf32>
    %cst_28 = arith.constant dense<0.000000e+00> : vector<8x512xf32>
    %136 = tpu.matmul %131, %4, %cst_28 {dimension_numbers = #tpu.dot_dimension_numbers<[1], [0], [0], [1], [0, 0, 1, 1], [], []>} : vector<8x128xbf16>, vector<128x512xbf16>, vector<8x512xf32> -> vector<8x512xf32>
    %137 = arith.addf %135, %136 : vector<8x512xf32>
    %138 = vector.extract_strided_slice %137 {offsets = [0, 0], sizes = [8, 128], strides = [1, 1]} : vector<8x512xf32> to vector<8x128xf32>
    %139 = arith.negf %138 : vector<8x128xf32>
    %140 = math.exp %139 : vector<8x128xf32>
    %cst_29 = arith.constant 1.000000e+00 : f32
    %141 = vector.broadcast %cst_29 : f32 to vector<8x128xf32>
    %142 = arith.addf %141, %140 : vector<8x128xf32>
    %143 = arith.divf %141, %142 : vector<8x128xf32>
    %144 = vector.extract_strided_slice %137 {offsets = [0, 128], sizes = [8, 128], strides = [1, 1]} : vector<8x512xf32> to vector<8x128xf32>
    %145 = arith.negf %144 : vector<8x128xf32>
    %146 = math.exp %145 : vector<8x128xf32>
    %cst_30 = arith.constant 1.000000e+00 : f32
    %147 = vector.broadcast %cst_30 : f32 to vector<8x128xf32>
    %148 = arith.addf %147, %146 : vector<8x128xf32>
    %149 = arith.divf %147, %148 : vector<8x128xf32>
    %150 = vector.extract_strided_slice %137 {offsets = [0, 256], sizes = [8, 128], strides = [1, 1]} : vector<8x512xf32> to vector<8x128xf32>
    %151 = math.tanh %150 : vector<8x128xf32>
    %152 = vector.extract_strided_slice %137 {offsets = [0, 384], sizes = [8, 128], strides = [1, 1]} : vector<8x512xf32> to vector<8x128xf32>
    %153 = arith.negf %152 : vector<8x128xf32>
    %154 = math.exp %153 : vector<8x128xf32>
    %cst_31 = arith.constant 1.000000e+00 : f32
    %155 = vector.broadcast %cst_31 : f32 to vector<8x128xf32>
    %156 = arith.addf %155, %154 : vector<8x128xf32>
    %157 = arith.divf %155, %156 : vector<8x128xf32>
    %158 = arith.mulf %149, %130 : vector<8x128xf32>
    %159 = arith.mulf %143, %151 : vector<8x128xf32>
    %160 = arith.addf %158, %159 : vector<8x128xf32>
    %161 = math.tanh %160 : vector<8x128xf32>
    %162 = arith.mulf %157, %161 : vector<8x128xf32>
    %163 = arith.addi %5, %c3_i32 : i32
    %164 = vector.broadcast %163 : i32 to vector<8x1xi32>
    %165 = arith.cmpi slt, %164, %3 : vector<8x1xi32>
    %166 = vector.shape_cast %165 : vector<8x1xi1> to vector<8x1xi1>
    %167 = vector.broadcast %166 : vector<8x1xi1> to vector<8x128xi1>
    %168 = arith.select %167, %162, %127 : vector<8x128xi1>, vector<8x128xf32>
    %169 = vector.shape_cast %165 : vector<8x1xi1> to vector<8x1xi1>
    %170 = vector.broadcast %169 : vector<8x1xi1> to vector<8x128xi1>
    %171 = arith.select %170, %160, %130 : vector<8x128xi1>, vector<8x128xf32>
    %c4_i32 = arith.constant 4 : i32
    %172 = arith.truncf %168 : vector<8x128xf32> to vector<8x128xbf16>
    %173 = arith.index_cast %c4_i32 : i32 to index
    %c0_32 = arith.constant 0 : index
    %c0_33 = arith.constant 0 : index
    %174 = vector.load %arg3[%173, %c0_32, %c0_33] : memref<8x8x512xbf16, #tpu.memory_space<vmem>>, vector<1x8x512xbf16>
    %175 = vector.shape_cast %174 : vector<1x8x512xbf16> to vector<8x512xbf16>
    %176 = arith.extf %175 : vector<8x512xbf16> to vector<8x512xf32>
    %cst_34 = arith.constant dense<0.000000e+00> : vector<8x512xf32>
    %177 = tpu.matmul %172, %4, %cst_34 {dimension_numbers = #tpu.dot_dimension_numbers<[1], [0], [0], [1], [0, 0, 1, 1], [], []>} : vector<8x128xbf16>, vector<128x512xbf16>, vector<8x512xf32> -> vector<8x512xf32>
    %178 = arith.addf %176, %177 : vector<8x512xf32>
    %179 = vector.extract_strided_slice %178 {offsets = [0, 0], sizes = [8, 128], strides = [1, 1]} : vector<8x512xf32> to vector<8x128xf32>
    %180 = arith.negf %179 : vector<8x128xf32>
    %181 = math.exp %180 : vector<8x128xf32>
    %cst_35 = arith.constant 1.000000e+00 : f32
    %182 = vector.broadcast %cst_35 : f32 to vector<8x128xf32>
    %183 = arith.addf %182, %181 : vector<8x128xf32>
    %184 = arith.divf %182, %183 : vector<8x128xf32>
    %185 = vector.extract_strided_slice %178 {offsets = [0, 128], sizes = [8, 128], strides = [1, 1]} : vector<8x512xf32> to vector<8x128xf32>
    %186 = arith.negf %185 : vector<8x128xf32>
    %187 = math.exp %186 : vector<8x128xf32>
    %cst_36 = arith.constant 1.000000e+00 : f32
    %188 = vector.broadcast %cst_36 : f32 to vector<8x128xf32>
    %189 = arith.addf %188, %187 : vector<8x128xf32>
    %190 = arith.divf %188, %189 : vector<8x128xf32>
    %191 = vector.extract_strided_slice %178 {offsets = [0, 256], sizes = [8, 128], strides = [1, 1]} : vector<8x512xf32> to vector<8x128xf32>
    %192 = math.tanh %191 : vector<8x128xf32>
    %193 = vector.extract_strided_slice %178 {offsets = [0, 384], sizes = [8, 128], strides = [1, 1]} : vector<8x512xf32> to vector<8x128xf32>
    %194 = arith.negf %193 : vector<8x128xf32>
    %195 = math.exp %194 : vector<8x128xf32>
    %cst_37 = arith.constant 1.000000e+00 : f32
    %196 = vector.broadcast %cst_37 : f32 to vector<8x128xf32>
    %197 = arith.addf %196, %195 : vector<8x128xf32>
    %198 = arith.divf %196, %197 : vector<8x128xf32>
    %199 = arith.mulf %190, %171 : vector<8x128xf32>
    %200 = arith.mulf %184, %192 : vector<8x128xf32>
    %201 = arith.addf %199, %200 : vector<8x128xf32>
    %202 = math.tanh %201 : vector<8x128xf32>
    %203 = arith.mulf %198, %202 : vector<8x128xf32>
    %204 = arith.addi %5, %c4_i32 : i32
    %205 = vector.broadcast %204 : i32 to vector<8x1xi32>
    %206 = arith.cmpi slt, %205, %3 : vector<8x1xi32>
    %207 = vector.shape_cast %206 : vector<8x1xi1> to vector<8x1xi1>
    %208 = vector.broadcast %207 : vector<8x1xi1> to vector<8x128xi1>
    %209 = arith.select %208, %203, %168 : vector<8x128xi1>, vector<8x128xf32>
    %210 = vector.shape_cast %206 : vector<8x1xi1> to vector<8x1xi1>
    %211 = vector.broadcast %210 : vector<8x1xi1> to vector<8x128xi1>
    %212 = arith.select %211, %201, %171 : vector<8x128xi1>, vector<8x128xf32>
    %c5_i32 = arith.constant 5 : i32
    %213 = arith.truncf %209 : vector<8x128xf32> to vector<8x128xbf16>
    %214 = arith.index_cast %c5_i32 : i32 to index
    %c0_38 = arith.constant 0 : index
    %c0_39 = arith.constant 0 : index
    %215 = vector.load %arg3[%214, %c0_38, %c0_39] : memref<8x8x512xbf16, #tpu.memory_space<vmem>>, vector<1x8x512xbf16>
    %216 = vector.shape_cast %215 : vector<1x8x512xbf16> to vector<8x512xbf16>
    %217 = arith.extf %216 : vector<8x512xbf16> to vector<8x512xf32>
    %cst_40 = arith.constant dense<0.000000e+00> : vector<8x512xf32>
    %218 = tpu.matmul %213, %4, %cst_40 {dimension_numbers = #tpu.dot_dimension_numbers<[1], [0], [0], [1], [0, 0, 1, 1], [], []>} : vector<8x128xbf16>, vector<128x512xbf16>, vector<8x512xf32> -> vector<8x512xf32>
    %219 = arith.addf %217, %218 : vector<8x512xf32>
    %220 = vector.extract_strided_slice %219 {offsets = [0, 0], sizes = [8, 128], strides = [1, 1]} : vector<8x512xf32> to vector<8x128xf32>
    %221 = arith.negf %220 : vector<8x128xf32>
    %222 = math.exp %221 : vector<8x128xf32>
    %cst_41 = arith.constant 1.000000e+00 : f32
    %223 = vector.broadcast %cst_41 : f32 to vector<8x128xf32>
    %224 = arith.addf %223, %222 : vector<8x128xf32>
    %225 = arith.divf %223, %224 : vector<8x128xf32>
    %226 = vector.extract_strided_slice %219 {offsets = [0, 128], sizes = [8, 128], strides = [1, 1]} : vector<8x512xf32> to vector<8x128xf32>
    %227 = arith.negf %226 : vector<8x128xf32>
    %228 = math.exp %227 : vector<8x128xf32>
    %cst_42 = arith.constant 1.000000e+00 : f32
    %229 = vector.broadcast %cst_42 : f32 to vector<8x128xf32>
    %230 = arith.addf %229, %228 : vector<8x128xf32>
    %231 = arith.divf %229, %230 : vector<8x128xf32>
    %232 = vector.extract_strided_slice %219 {offsets = [0, 256], sizes = [8, 128], strides = [1, 1]} : vector<8x512xf32> to vector<8x128xf32>
    %233 = math.tanh %232 : vector<8x128xf32>
    %234 = vector.extract_strided_slice %219 {offsets = [0, 384], sizes = [8, 128], strides = [1, 1]} : vector<8x512xf32> to vector<8x128xf32>
    %235 = arith.negf %234 : vector<8x128xf32>
    %236 = math.exp %235 : vector<8x128xf32>
    %cst_43 = arith.constant 1.000000e+00 : f32
    %237 = vector.broadcast %cst_43 : f32 to vector<8x128xf32>
    %238 = arith.addf %237, %236 : vector<8x128xf32>
    %239 = arith.divf %237, %238 : vector<8x128xf32>
    %240 = arith.mulf %231, %212 : vector<8x128xf32>
    %241 = arith.mulf %225, %233 : vector<8x128xf32>
    %242 = arith.addf %240, %241 : vector<8x128xf32>
    %243 = math.tanh %242 : vector<8x128xf32>
    %244 = arith.mulf %239, %243 : vector<8x128xf32>
    %245 = arith.addi %5, %c5_i32 : i32
    %246 = vector.broadcast %245 : i32 to vector<8x1xi32>
    %247 = arith.cmpi slt, %246, %3 : vector<8x1xi32>
    %248 = vector.shape_cast %247 : vector<8x1xi1> to vector<8x1xi1>
    %249 = vector.broadcast %248 : vector<8x1xi1> to vector<8x128xi1>
    %250 = arith.select %249, %244, %209 : vector<8x128xi1>, vector<8x128xf32>
    %251 = vector.shape_cast %247 : vector<8x1xi1> to vector<8x1xi1>
    %252 = vector.broadcast %251 : vector<8x1xi1> to vector<8x128xi1>
    %253 = arith.select %252, %242, %212 : vector<8x128xi1>, vector<8x128xf32>
    %c6_i32 = arith.constant 6 : i32
    %254 = arith.truncf %250 : vector<8x128xf32> to vector<8x128xbf16>
    %255 = arith.index_cast %c6_i32 : i32 to index
    %c0_44 = arith.constant 0 : index
    %c0_45 = arith.constant 0 : index
    %256 = vector.load %arg3[%255, %c0_44, %c0_45] : memref<8x8x512xbf16, #tpu.memory_space<vmem>>, vector<1x8x512xbf16>
    %257 = vector.shape_cast %256 : vector<1x8x512xbf16> to vector<8x512xbf16>
    %258 = arith.extf %257 : vector<8x512xbf16> to vector<8x512xf32>
    %cst_46 = arith.constant dense<0.000000e+00> : vector<8x512xf32>
    %259 = tpu.matmul %254, %4, %cst_46 {dimension_numbers = #tpu.dot_dimension_numbers<[1], [0], [0], [1], [0, 0, 1, 1], [], []>} : vector<8x128xbf16>, vector<128x512xbf16>, vector<8x512xf32> -> vector<8x512xf32>
    %260 = arith.addf %258, %259 : vector<8x512xf32>
    %261 = vector.extract_strided_slice %260 {offsets = [0, 0], sizes = [8, 128], strides = [1, 1]} : vector<8x512xf32> to vector<8x128xf32>
    %262 = arith.negf %261 : vector<8x128xf32>
    %263 = math.exp %262 : vector<8x128xf32>
    %cst_47 = arith.constant 1.000000e+00 : f32
    %264 = vector.broadcast %cst_47 : f32 to vector<8x128xf32>
    %265 = arith.addf %264, %263 : vector<8x128xf32>
    %266 = arith.divf %264, %265 : vector<8x128xf32>
    %267 = vector.extract_strided_slice %260 {offsets = [0, 128], sizes = [8, 128], strides = [1, 1]} : vector<8x512xf32> to vector<8x128xf32>
    %268 = arith.negf %267 : vector<8x128xf32>
    %269 = math.exp %268 : vector<8x128xf32>
    %cst_48 = arith.constant 1.000000e+00 : f32
    %270 = vector.broadcast %cst_48 : f32 to vector<8x128xf32>
    %271 = arith.addf %270, %269 : vector<8x128xf32>
    %272 = arith.divf %270, %271 : vector<8x128xf32>
    %273 = vector.extract_strided_slice %260 {offsets = [0, 256], sizes = [8, 128], strides = [1, 1]} : vector<8x512xf32> to vector<8x128xf32>
    %274 = math.tanh %273 : vector<8x128xf32>
    %275 = vector.extract_strided_slice %260 {offsets = [0, 384], sizes = [8, 128], strides = [1, 1]} : vector<8x512xf32> to vector<8x128xf32>
    %276 = arith.negf %275 : vector<8x128xf32>
    %277 = math.exp %276 : vector<8x128xf32>
    %cst_49 = arith.constant 1.000000e+00 : f32
    %278 = vector.broadcast %cst_49 : f32 to vector<8x128xf32>
    %279 = arith.addf %278, %277 : vector<8x128xf32>
    %280 = arith.divf %278, %279 : vector<8x128xf32>
    %281 = arith.mulf %272, %253 : vector<8x128xf32>
    %282 = arith.mulf %266, %274 : vector<8x128xf32>
    %283 = arith.addf %281, %282 : vector<8x128xf32>
    %284 = math.tanh %283 : vector<8x128xf32>
    %285 = arith.mulf %280, %284 : vector<8x128xf32>
    %286 = arith.addi %5, %c6_i32 : i32
    %287 = vector.broadcast %286 : i32 to vector<8x1xi32>
    %288 = arith.cmpi slt, %287, %3 : vector<8x1xi32>
    %289 = vector.shape_cast %288 : vector<8x1xi1> to vector<8x1xi1>
    %290 = vector.broadcast %289 : vector<8x1xi1> to vector<8x128xi1>
    %291 = arith.select %290, %285, %250 : vector<8x128xi1>, vector<8x128xf32>
    %292 = vector.shape_cast %288 : vector<8x1xi1> to vector<8x1xi1>
    %293 = vector.broadcast %292 : vector<8x1xi1> to vector<8x128xi1>
    %294 = arith.select %293, %283, %253 : vector<8x128xi1>, vector<8x128xf32>
    %c7_i32 = arith.constant 7 : i32
    %295 = arith.truncf %291 : vector<8x128xf32> to vector<8x128xbf16>
    %296 = arith.index_cast %c7_i32 : i32 to index
    %c0_50 = arith.constant 0 : index
    %c0_51 = arith.constant 0 : index
    %297 = vector.load %arg3[%296, %c0_50, %c0_51] : memref<8x8x512xbf16, #tpu.memory_space<vmem>>, vector<1x8x512xbf16>
    %298 = vector.shape_cast %297 : vector<1x8x512xbf16> to vector<8x512xbf16>
    %299 = arith.extf %298 : vector<8x512xbf16> to vector<8x512xf32>
    %cst_52 = arith.constant dense<0.000000e+00> : vector<8x512xf32>
    %300 = tpu.matmul %295, %4, %cst_52 {dimension_numbers = #tpu.dot_dimension_numbers<[1], [0], [0], [1], [0, 0, 1, 1], [], []>} : vector<8x128xbf16>, vector<128x512xbf16>, vector<8x512xf32> -> vector<8x512xf32>
    %301 = arith.addf %299, %300 : vector<8x512xf32>
    %302 = vector.extract_strided_slice %301 {offsets = [0, 0], sizes = [8, 128], strides = [1, 1]} : vector<8x512xf32> to vector<8x128xf32>
    %303 = arith.negf %302 : vector<8x128xf32>
    %304 = math.exp %303 : vector<8x128xf32>
    %cst_53 = arith.constant 1.000000e+00 : f32
    %305 = vector.broadcast %cst_53 : f32 to vector<8x128xf32>
    %306 = arith.addf %305, %304 : vector<8x128xf32>
    %307 = arith.divf %305, %306 : vector<8x128xf32>
    %308 = vector.extract_strided_slice %301 {offsets = [0, 128], sizes = [8, 128], strides = [1, 1]} : vector<8x512xf32> to vector<8x128xf32>
    %309 = arith.negf %308 : vector<8x128xf32>
    %310 = math.exp %309 : vector<8x128xf32>
    %cst_54 = arith.constant 1.000000e+00 : f32
    %311 = vector.broadcast %cst_54 : f32 to vector<8x128xf32>
    %312 = arith.addf %311, %310 : vector<8x128xf32>
    %313 = arith.divf %311, %312 : vector<8x128xf32>
    %314 = vector.extract_strided_slice %301 {offsets = [0, 256], sizes = [8, 128], strides = [1, 1]} : vector<8x512xf32> to vector<8x128xf32>
    %315 = math.tanh %314 : vector<8x128xf32>
    %316 = vector.extract_strided_slice %301 {offsets = [0, 384], sizes = [8, 128], strides = [1, 1]} : vector<8x512xf32> to vector<8x128xf32>
    %317 = arith.negf %316 : vector<8x128xf32>
    %318 = math.exp %317 : vector<8x128xf32>
    %cst_55 = arith.constant 1.000000e+00 : f32
    %319 = vector.broadcast %cst_55 : f32 to vector<8x128xf32>
    %320 = arith.addf %319, %318 : vector<8x128xf32>
    %321 = arith.divf %319, %320 : vector<8x128xf32>
    %322 = arith.mulf %313, %294 : vector<8x128xf32>
    %323 = arith.mulf %307, %315 : vector<8x128xf32>
    %324 = arith.addf %322, %323 : vector<8x128xf32>
    %325 = math.tanh %324 : vector<8x128xf32>
    %326 = arith.mulf %321, %325 : vector<8x128xf32>
    %327 = arith.addi %5, %c7_i32 : i32
    %328 = vector.broadcast %327 : i32 to vector<8x1xi32>
    %329 = arith.cmpi slt, %328, %3 : vector<8x1xi32>
    %330 = vector.shape_cast %329 : vector<8x1xi1> to vector<8x1xi1>
    %331 = vector.broadcast %330 : vector<8x1xi1> to vector<8x128xi1>
    %332 = arith.select %331, %326, %291 : vector<8x128xi1>, vector<8x128xf32>
    %333 = vector.shape_cast %329 : vector<8x1xi1> to vector<8x1xi1>
    %334 = vector.broadcast %333 : vector<8x1xi1> to vector<8x128xi1>
    %335 = arith.select %334, %324, %294 : vector<8x128xi1>, vector<8x128xf32>
    %c8_i32_56 = arith.constant 8 : i32
    %c0_57 = arith.constant 0 : index
    %c0_58 = arith.constant 0 : index
    %336 = vector.load %arg6[%c0_57, %c0_58] : memref<8x128xf32, #tpu.memory_space<vmem>>, vector<8x128xf32>
    tpu.vector_store %arg6[%c0_57, %c0_58], %332 {strides = array<i32>} : memref<8x128xf32, #tpu.memory_space<vmem>>, vector<8x128xf32>,
    %c0_59 = arith.constant 0 : index
    %c0_60 = arith.constant 0 : index
    %337 = vector.load %arg7[%c0_59, %c0_60] : memref<8x128xf32, #tpu.memory_space<vmem>>, vector<8x128xf32>
    tpu.vector_store %arg7[%c0_59, %c0_60], %335 {strides = array<i32>} : memref<8x128xf32, #tpu.memory_space<vmem>>, vector<8x128xf32>,
    %c0_i32_61 = arith.constant 0 : i32
    %338 = arith.cmpi eq, %arg1, %c0_i32_61 : i32
    %339 = arith.extui %338 : i1 to i32
    %c0_i32_62 = arith.constant 0 : i32
    %340 = arith.cmpi ne, %339, %c0_i32_62 : i32
    scf.if %340 {
      %c0_63 = arith.constant 0 : index
      %c0_64 = arith.constant 0 : index
      %341 = vector.load %arg5[%c0_63, %c0_64] : memref<8x128xf32, #tpu.memory_space<vmem>>, vector<8x128xf32>
      tpu.vector_store %arg5[%c0_63, %c0_64], %332 {strides = array<i32>} : memref<8x128xf32, #tpu.memory_space<vmem>>, vector<8x128xf32>,
    } else {
    }
    return
  }
  func.func @transform_0(%arg0: i32, %arg1: i32) -> (i32, i32) {
    %c0_i32 = arith.constant 0 : i32
    %c0_i32_0 = arith.constant 0 : i32
    return %arg0, %c0_i32 : i32, i32
  }
  func.func @transform_1(%arg0: i32, %arg1: i32) -> (i32, i32, i32) {
    %c0_i32 = arith.constant 0 : i32
    %c0_i32_0 = arith.constant 0 : i32
    return %arg1, %arg0, %c0_i32 : i32, i32, i32
  }
  func.func @transform_2(%arg0: i32, %arg1: i32) -> (i32, i32) {
    %c0_i32 = arith.constant 0 : i32
    %c0_i32_0 = arith.constant 0 : i32
    %c0_i32_1 = arith.constant 0 : i32
    return %c0_i32, %c0_i32_0 : i32, i32
  }
  func.func @transform_3(%arg0: i32, %arg1: i32) -> (i32, i32) {
    %c0_i32 = arith.constant 0 : i32
    %c0_i32_0 = arith.constant 0 : i32
    return %arg0, %c0_i32 : i32, i32
  }
}

module attributes {stable_mosaic.version = 11 : i64} {
  func.func @elmo_gates_kernel(%arg0: i32, %arg1: memref<64x128xbf16, #tpu.memory_space<vmem>>, %arg2: memref<64x256xbf16, #tpu.memory_space<vmem>>, %arg3: memref<64x256xbf16, #tpu.memory_space<vmem>>, %arg4: memref<640x512xbf16, #tpu.memory_space<vmem>>, %arg5: memref<1x512xf32, #tpu.memory_space<vmem>>, %arg6: memref<64x512xbf16, #tpu.memory_space<vmem>>) attributes {dimension_semantics = [#tpu.dimension_semantics<parallel>], iteration_bounds = array<i64: 1>, scalar_prefetch = 0 : i64, scratch_operands = 0 : i64, tpu.core_type = #tpu.core_type<tc>, window_params = [{transform_indices = @transform_0, window_bounds = array<i64: 64, 128>}, {transform_indices = @transform_1, window_bounds = array<i64: 64, 256>}, {transform_indices = @transform_2, window_bounds = array<i64: 64, 256>}, {pipeline_mode = #tpu.pipeline_mode<synchronous>, transform_indices = @transform_3, window_bounds = array<i64: 640, 512>}, {pipeline_mode = #tpu.pipeline_mode<synchronous>, transform_indices = @transform_4, window_bounds = array<i64: 1, 512>}, {transform_indices = @transform_5, window_bounds = array<i64: 64, 512>}]} {
    %c0 = arith.constant 0 : index
    %c0_0 = arith.constant 0 : index
    %0 = vector.load %arg1[%c0, %c0_0] : memref<64x128xbf16, #tpu.memory_space<vmem>>, vector<64x128xbf16>
    %c0_1 = arith.constant 0 : index
    %c0_2 = arith.constant 0 : index
    %1 = vector.load %arg2[%c0_1, %c0_2] : memref<64x256xbf16, #tpu.memory_space<vmem>>, vector<64x256xbf16>
    %c0_3 = arith.constant 0 : index
    %c0_4 = arith.constant 0 : index
    %2 = vector.load %arg3[%c0_3, %c0_4] : memref<64x256xbf16, #tpu.memory_space<vmem>>, vector<64x256xbf16>
    %3 = tpu.concatenate %0, %1, %2 in 1 : vector<64x128xbf16>, vector<64x256xbf16>, vector<64x256xbf16> -> vector<64x640xbf16>
    %c0_5 = arith.constant 0 : index
    %c0_6 = arith.constant 0 : index
    %4 = vector.load %arg4[%c0_5, %c0_6] : memref<640x512xbf16, #tpu.memory_space<vmem>>, vector<640x512xbf16>
    %cst = arith.constant dense<0.000000e+00> : vector<64x512xf32>
    %5 = tpu.matmul %3, %4, %cst {dimension_numbers = #tpu.dot_dimension_numbers<[1], [0], [0], [1], [0, 0, 1, 1], [], []>} : vector<64x640xbf16>, vector<640x512xbf16>, vector<64x512xf32> -> vector<64x512xf32>
    %c0_7 = arith.constant 0 : index
    %c0_8 = arith.constant 0 : index
    %6 = vector.load %arg5[%c0_7, %c0_8] : memref<1x512xf32, #tpu.memory_space<vmem>>, vector<1x512xf32>
    %7 = vector.broadcast %6 : vector<1x512xf32> to vector<64x512xf32>
    %8 = arith.addf %5, %7 : vector<64x512xf32>
    %9 = arith.truncf %8 : vector<64x512xf32> to vector<64x512xbf16>
    %c0_9 = arith.constant 0 : index
    %c0_10 = arith.constant 0 : index
    %10 = vector.load %arg6[%c0_9, %c0_10] : memref<64x512xbf16, #tpu.memory_space<vmem>>, vector<64x512xbf16>
    tpu.vector_store %arg6[%c0_9, %c0_10], %9 {strides = array<i32>} : memref<64x512xbf16, #tpu.memory_space<vmem>>, vector<64x512xbf16>,
    return
  }
  func.func @transform_0(%arg0: i32) -> (i32, i32) {
    %c0_i32 = arith.constant 0 : i32
    %c0_i32_0 = arith.constant 0 : i32
    return %arg0, %c0_i32 : i32, i32
  }
  func.func @transform_1(%arg0: i32) -> (i32, i32) {
    %c0_i32 = arith.constant 0 : i32
    %c0_i32_0 = arith.constant 0 : i32
    return %arg0, %c0_i32 : i32, i32
  }
  func.func @transform_2(%arg0: i32) -> (i32, i32) {
    %c0_i32 = arith.constant 0 : i32
    %c0_i32_0 = arith.constant 0 : i32
    return %arg0, %c0_i32 : i32, i32
  }
  func.func @transform_3(%arg0: i32) -> (i32, i32) {
    %c0_i32 = arith.constant 0 : i32
    %c0_i32_0 = arith.constant 0 : i32
    %c0_i32_1 = arith.constant 0 : i32
    return %c0_i32, %c0_i32_0 : i32, i32
  }
  func.func @transform_4(%arg0: i32) -> (i32, i32) {
    %c0_i32 = arith.constant 0 : i32
    %c0_i32_0 = arith.constant 0 : i32
    %c0_i32_1 = arith.constant 0 : i32
    return %c0_i32, %c0_i32_0 : i32, i32
  }
  func.func @transform_5(%arg0: i32) -> (i32, i32) {
    %c0_i32 = arith.constant 0 : i32
    %c0_i32_0 = arith.constant 0 : i32
    return %arg0, %c0_i32 : i32, i32
  }
}

module attributes {stable_mosaic.version = 11 : i64} {
  func.func @lstm_kernel(%arg0: i32, %arg1: i32, %arg2: memref<8x1xi32, #tpu.memory_space<vmem>>, %arg3: memref<8x8x512xbf16, #tpu.memory_space<vmem>>, %arg4: memref<128x512xbf16, #tpu.memory_space<vmem>>, %arg5: memref<8x128xf32, #tpu.memory_space<vmem>>, %arg6: memref<8x128xf32, #tpu.memory_space<vmem>>, %arg7: memref<8x128xf32, #tpu.memory_space<vmem>>) attributes {dimension_semantics = [#tpu.dimension_semantics<parallel>, #tpu.dimension_semantics<arbitrary>], iteration_bounds = array<i64: 1, 1>, scalar_prefetch = 0 : i64, scratch_operands = 2 : i64, tpu.core_type = #tpu.core_type<tc>, window_params = [{transform_indices = @transform_0, window_bounds = array<i64: 8, 1>}, {transform_indices = @transform_1, window_bounds = array<i64: 8, 8, 512>}, {pipeline_mode = #tpu.pipeline_mode<synchronous>, transform_indices = @transform_2, window_bounds = array<i64: 128, 512>}, {transform_indices = @transform_3, window_bounds = array<i64: 8, 128>}]} {
    %c0_i32 = arith.constant 0 : i32
    %0 = arith.cmpi eq, %arg1, %c0_i32 : i32
    %1 = arith.extui %0 : i1 to i32
    %c0_i32_0 = arith.constant 0 : i32
    %2 = arith.cmpi ne, %1, %c0_i32_0 : i32
    scf.if %2 {
      %cst_63 = arith.constant 0.000000e+00 : f32
      %341 = vector.broadcast %cst_63 : f32 to vector<8x128xf32>
      %c0_64 = arith.constant 0 : index
      %c0_65 = arith.constant 0 : index
      %342 = vector.load %arg6[%c0_64, %c0_65] : memref<8x128xf32, #tpu.memory_space<vmem>>, vector<8x128xf32>
      tpu.vector_store %arg6[%c0_64, %c0_65], %341 {strides = array<i32>} : memref<8x128xf32, #tpu.memory_space<vmem>>, vector<8x128xf32>,
      %cst_66 = arith.constant 0.000000e+00 : f32
      %343 = vector.broadcast %cst_66 : f32 to vector<8x128xf32>
      %c0_67 = arith.constant 0 : index
      %c0_68 = arith.constant 0 : index
      %344 = vector.load %arg7[%c0_67, %c0_68] : memref<8x128xf32, #tpu.memory_space<vmem>>, vector<8x128xf32>
      tpu.vector_store %arg7[%c0_67, %c0_68], %343 {strides = array<i32>} : memref<8x128xf32, #tpu.memory_space<vmem>>, vector<8x128xf32>,
    } else {
    }
    %c0 = arith.constant 0 : index
    %c0_1 = arith.constant 0 : index
    %3 = vector.load %arg2[%c0, %c0_1] : memref<8x1xi32, #tpu.memory_space<vmem>>, vector<8x1xi32>
    %c0_2 = arith.constant 0 : index
    %c0_3 = arith.constant 0 : index
    %4 = vector.load %arg4[%c0_2, %c0_3] : memref<128x512xbf16, #tpu.memory_space<vmem>>, vector<128x512xbf16>
    %c8_i32 = arith.constant 8 : i32
    %5 = arith.muli %arg1, %c8_i32 : i32
    %c0_4 = arith.constant 0 : index
    %c0_5 = arith.constant 0 : index
    %6 = vector.load %arg6[%c0_4, %c0_5] : memref<8x128xf32, #tpu.memory_space<vmem>>, vector<8x128xf32>
    %c0_6 = arith.constant 0 : index
    %c0_7 = arith.constant 0 : index
    %7 = vector.load %arg7[%c0_6, %c0_7] : memref<8x128xf32, #tpu.memory_space<vmem>>, vector<8x128xf32>
    %c0_i32_8 = arith.constant 0 : i32
    %8 = arith.truncf %6 : vector<8x128xf32> to vector<8x128xbf16>
    %9 = arith.index_cast %c0_i32_8 : i32 to index
    %c0_9 = arith.constant 0 : index
    %c0_10 = arith.constant 0 : index
    %10 = vector.load %arg3[%9, %c0_9, %c0_10] : memref<8x8x512xbf16, #tpu.memory_space<vmem>>, vector<1x8x512xbf16>
    %11 = vector.shape_cast %10 : vector<1x8x512xbf16> to vector<8x512xbf16>
    %12 = arith.extf %11 : vector<8x512xbf16> to vector<8x512xf32>
    %cst = arith.constant dense<0.000000e+00> : vector<8x512xf32>
    %13 = tpu.matmul %8, %4, %cst {dimension_numbers = #tpu.dot_dimension_numbers<[1], [0], [0], [1], [0, 0, 1, 1], [], []>} : vector<8x128xbf16>, vector<128x512xbf16>, vector<8x512xf32> -> vector<8x512xf32>
    %14 = arith.addf %12, %13 : vector<8x512xf32>
    %15 = vector.extract_strided_slice %14 {offsets = [0, 0], sizes = [8, 128], strides = [1, 1]} : vector<8x512xf32> to vector<8x128xf32>
    %16 = arith.negf %15 : vector<8x128xf32>
    %17 = math.exp %16 : vector<8x128xf32>
    %cst_11 = arith.constant 1.000000e+00 : f32
    %18 = vector.broadcast %cst_11 : f32 to vector<8x128xf32>
    %19 = arith.addf %18, %17 : vector<8x128xf32>
    %20 = arith.divf %18, %19 : vector<8x128xf32>
    %21 = vector.extract_strided_slice %14 {offsets = [0, 128], sizes = [8, 128], strides = [1, 1]} : vector<8x512xf32> to vector<8x128xf32>
    %22 = arith.negf %21 : vector<8x128xf32>
    %23 = math.exp %22 : vector<8x128xf32>
    %cst_12 = arith.constant 1.000000e+00 : f32
    %24 = vector.broadcast %cst_12 : f32 to vector<8x128xf32>
    %25 = arith.addf %24, %23 : vector<8x128xf32>
    %26 = arith.divf %24, %25 : vector<8x128xf32>
    %27 = vector.extract_strided_slice %14 {offsets = [0, 256], sizes = [8, 128], strides = [1, 1]} : vector<8x512xf32> to vector<8x128xf32>
    %28 = math.tanh %27 : vector<8x128xf32>
    %29 = vector.extract_strided_slice %14 {offsets = [0, 384], sizes = [8, 128], strides = [1, 1]} : vector<8x512xf32> to vector<8x128xf32>
    %30 = arith.negf %29 : vector<8x128xf32>
    %31 = math.exp %30 : vector<8x128xf32>
    %cst_13 = arith.constant 1.000000e+00 : f32
    %32 = vector.broadcast %cst_13 : f32 to vector<8x128xf32>
    %33 = arith.addf %32, %31 : vector<8x128xf32>
    %34 = arith.divf %32, %33 : vector<8x128xf32>
    %35 = arith.mulf %26, %7 : vector<8x128xf32>
    %36 = arith.mulf %20, %28 : vector<8x128xf32>
    %37 = arith.addf %35, %36 : vector<8x128xf32>
    %38 = math.tanh %37 : vector<8x128xf32>
    %39 = arith.mulf %34, %38 : vector<8x128xf32>
    %40 = arith.addi %5, %c0_i32_8 : i32
    %41 = vector.broadcast %40 : i32 to vector<8x1xi32>
    %42 = arith.cmpi slt, %41, %3 : vector<8x1xi32>
    %43 = vector.shape_cast %42 : vector<8x1xi1> to vector<8x1xi1>
    %44 = vector.broadcast %43 : vector<8x1xi1> to vector<8x128xi1>
    %45 = arith.select %44, %39, %6 : vector<8x128xi1>, vector<8x128xf32>
    %46 = vector.shape_cast %42 : vector<8x1xi1> to vector<8x1xi1>
    %47 = vector.broadcast %46 : vector<8x1xi1> to vector<8x128xi1>
    %48 = arith.select %47, %37, %7 : vector<8x128xi1>, vector<8x128xf32>
    %c1_i32 = arith.constant 1 : i32
    %49 = arith.truncf %45 : vector<8x128xf32> to vector<8x128xbf16>
    %50 = arith.index_cast %c1_i32 : i32 to index
    %c0_14 = arith.constant 0 : index
    %c0_15 = arith.constant 0 : index
    %51 = vector.load %arg3[%50, %c0_14, %c0_15] : memref<8x8x512xbf16, #tpu.memory_space<vmem>>, vector<1x8x512xbf16>
    %52 = vector.shape_cast %51 : vector<1x8x512xbf16> to vector<8x512xbf16>
    %53 = arith.extf %52 : vector<8x512xbf16> to vector<8x512xf32>
    %cst_16 = arith.constant dense<0.000000e+00> : vector<8x512xf32>
    %54 = tpu.matmul %49, %4, %cst_16 {dimension_numbers = #tpu.dot_dimension_numbers<[1], [0], [0], [1], [0, 0, 1, 1], [], []>} : vector<8x128xbf16>, vector<128x512xbf16>, vector<8x512xf32> -> vector<8x512xf32>
    %55 = arith.addf %53, %54 : vector<8x512xf32>
    %56 = vector.extract_strided_slice %55 {offsets = [0, 0], sizes = [8, 128], strides = [1, 1]} : vector<8x512xf32> to vector<8x128xf32>
    %57 = arith.negf %56 : vector<8x128xf32>
    %58 = math.exp %57 : vector<8x128xf32>
    %cst_17 = arith.constant 1.000000e+00 : f32
    %59 = vector.broadcast %cst_17 : f32 to vector<8x128xf32>
    %60 = arith.addf %59, %58 : vector<8x128xf32>
    %61 = arith.divf %59, %60 : vector<8x128xf32>
    %62 = vector.extract_strided_slice %55 {offsets = [0, 128], sizes = [8, 128], strides = [1, 1]} : vector<8x512xf32> to vector<8x128xf32>
    %63 = arith.negf %62 : vector<8x128xf32>
    %64 = math.exp %63 : vector<8x128xf32>
    %cst_18 = arith.constant 1.000000e+00 : f32
    %65 = vector.broadcast %cst_18 : f32 to vector<8x128xf32>
    %66 = arith.addf %65, %64 : vector<8x128xf32>
    %67 = arith.divf %65, %66 : vector<8x128xf32>
    %68 = vector.extract_strided_slice %55 {offsets = [0, 256], sizes = [8, 128], strides = [1, 1]} : vector<8x512xf32> to vector<8x128xf32>
    %69 = math.tanh %68 : vector<8x128xf32>
    %70 = vector.extract_strided_slice %55 {offsets = [0, 384], sizes = [8, 128], strides = [1, 1]} : vector<8x512xf32> to vector<8x128xf32>
    %71 = arith.negf %70 : vector<8x128xf32>
    %72 = math.exp %71 : vector<8x128xf32>
    %cst_19 = arith.constant 1.000000e+00 : f32
    %73 = vector.broadcast %cst_19 : f32 to vector<8x128xf32>
    %74 = arith.addf %73, %72 : vector<8x128xf32>
    %75 = arith.divf %73, %74 : vector<8x128xf32>
    %76 = arith.mulf %67, %48 : vector<8x128xf32>
    %77 = arith.mulf %61, %69 : vector<8x128xf32>
    %78 = arith.addf %76, %77 : vector<8x128xf32>
    %79 = math.tanh %78 : vector<8x128xf32>
    %80 = arith.mulf %75, %79 : vector<8x128xf32>
    %81 = arith.addi %5, %c1_i32 : i32
    %82 = vector.broadcast %81 : i32 to vector<8x1xi32>
    %83 = arith.cmpi slt, %82, %3 : vector<8x1xi32>
    %84 = vector.shape_cast %83 : vector<8x1xi1> to vector<8x1xi1>
    %85 = vector.broadcast %84 : vector<8x1xi1> to vector<8x128xi1>
    %86 = arith.select %85, %80, %45 : vector<8x128xi1>, vector<8x128xf32>
    %87 = vector.shape_cast %83 : vector<8x1xi1> to vector<8x1xi1>
    %88 = vector.broadcast %87 : vector<8x1xi1> to vector<8x128xi1>
    %89 = arith.select %88, %78, %48 : vector<8x128xi1>, vector<8x128xf32>
    %c2_i32 = arith.constant 2 : i32
    %90 = arith.truncf %86 : vector<8x128xf32> to vector<8x128xbf16>
    %91 = arith.index_cast %c2_i32 : i32 to index
    %c0_20 = arith.constant 0 : index
    %c0_21 = arith.constant 0 : index
    %92 = vector.load %arg3[%91, %c0_20, %c0_21] : memref<8x8x512xbf16, #tpu.memory_space<vmem>>, vector<1x8x512xbf16>
    %93 = vector.shape_cast %92 : vector<1x8x512xbf16> to vector<8x512xbf16>
    %94 = arith.extf %93 : vector<8x512xbf16> to vector<8x512xf32>
    %cst_22 = arith.constant dense<0.000000e+00> : vector<8x512xf32>
    %95 = tpu.matmul %90, %4, %cst_22 {dimension_numbers = #tpu.dot_dimension_numbers<[1], [0], [0], [1], [0, 0, 1, 1], [], []>} : vector<8x128xbf16>, vector<128x512xbf16>, vector<8x512xf32> -> vector<8x512xf32>
    %96 = arith.addf %94, %95 : vector<8x512xf32>
    %97 = vector.extract_strided_slice %96 {offsets = [0, 0], sizes = [8, 128], strides = [1, 1]} : vector<8x512xf32> to vector<8x128xf32>
    %98 = arith.negf %97 : vector<8x128xf32>
    %99 = math.exp %98 : vector<8x128xf32>
    %cst_23 = arith.constant 1.000000e+00 : f32
    %100 = vector.broadcast %cst_23 : f32 to vector<8x128xf32>
    %101 = arith.addf %100, %99 : vector<8x128xf32>
    %102 = arith.divf %100, %101 : vector<8x128xf32>
    %103 = vector.extract_strided_slice %96 {offsets = [0, 128], sizes = [8, 128], strides = [1, 1]} : vector<8x512xf32> to vector<8x128xf32>
    %104 = arith.negf %103 : vector<8x128xf32>
    %105 = math.exp %104 : vector<8x128xf32>
    %cst_24 = arith.constant 1.000000e+00 : f32
    %106 = vector.broadcast %cst_24 : f32 to vector<8x128xf32>
    %107 = arith.addf %106, %105 : vector<8x128xf32>
    %108 = arith.divf %106, %107 : vector<8x128xf32>
    %109 = vector.extract_strided_slice %96 {offsets = [0, 256], sizes = [8, 128], strides = [1, 1]} : vector<8x512xf32> to vector<8x128xf32>
    %110 = math.tanh %109 : vector<8x128xf32>
    %111 = vector.extract_strided_slice %96 {offsets = [0, 384], sizes = [8, 128], strides = [1, 1]} : vector<8x512xf32> to vector<8x128xf32>
    %112 = arith.negf %111 : vector<8x128xf32>
    %113 = math.exp %112 : vector<8x128xf32>
    %cst_25 = arith.constant 1.000000e+00 : f32
    %114 = vector.broadcast %cst_25 : f32 to vector<8x128xf32>
    %115 = arith.addf %114, %113 : vector<8x128xf32>
    %116 = arith.divf %114, %115 : vector<8x128xf32>
    %117 = arith.mulf %108, %89 : vector<8x128xf32>
    %118 = arith.mulf %102, %110 : vector<8x128xf32>
    %119 = arith.addf %117, %118 : vector<8x128xf32>
    %120 = math.tanh %119 : vector<8x128xf32>
    %121 = arith.mulf %116, %120 : vector<8x128xf32>
    %122 = arith.addi %5, %c2_i32 : i32
    %123 = vector.broadcast %122 : i32 to vector<8x1xi32>
    %124 = arith.cmpi slt, %123, %3 : vector<8x1xi32>
    %125 = vector.shape_cast %124 : vector<8x1xi1> to vector<8x1xi1>
    %126 = vector.broadcast %125 : vector<8x1xi1> to vector<8x128xi1>
    %127 = arith.select %126, %121, %86 : vector<8x128xi1>, vector<8x128xf32>
    %128 = vector.shape_cast %124 : vector<8x1xi1> to vector<8x1xi1>
    %129 = vector.broadcast %128 : vector<8x1xi1> to vector<8x128xi1>
    %130 = arith.select %129, %119, %89 : vector<8x128xi1>, vector<8x128xf32>
    %c3_i32 = arith.constant 3 : i32
    %131 = arith.truncf %127 : vector<8x128xf32> to vector<8x128xbf16>
    %132 = arith.index_cast %c3_i32 : i32 to index
    %c0_26 = arith.constant 0 : index
    %c0_27 = arith.constant 0 : index
    %133 = vector.load %arg3[%132, %c0_26, %c0_27] : memref<8x8x512xbf16, #tpu.memory_space<vmem>>, vector<1x8x512xbf16>
    %134 = vector.shape_cast %133 : vector<1x8x512xbf16> to vector<8x512xbf16>
    %135 = arith.extf %134 : vector<8x512xbf16> to vector<8x512xf32>
    %cst_28 = arith.constant dense<0.000000e+00> : vector<8x512xf32>
    %136 = tpu.matmul %131, %4, %cst_28 {dimension_numbers = #tpu.dot_dimension_numbers<[1], [0], [0], [1], [0, 0, 1, 1], [], []>} : vector<8x128xbf16>, vector<128x512xbf16>, vector<8x512xf32> -> vector<8x512xf32>
    %137 = arith.addf %135, %136 : vector<8x512xf32>
    %138 = vector.extract_strided_slice %137 {offsets = [0, 0], sizes = [8, 128], strides = [1, 1]} : vector<8x512xf32> to vector<8x128xf32>
    %139 = arith.negf %138 : vector<8x128xf32>
    %140 = math.exp %139 : vector<8x128xf32>
    %cst_29 = arith.constant 1.000000e+00 : f32
    %141 = vector.broadcast %cst_29 : f32 to vector<8x128xf32>
    %142 = arith.addf %141, %140 : vector<8x128xf32>
    %143 = arith.divf %141, %142 : vector<8x128xf32>
    %144 = vector.extract_strided_slice %137 {offsets = [0, 128], sizes = [8, 128], strides = [1, 1]} : vector<8x512xf32> to vector<8x128xf32>
    %145 = arith.negf %144 : vector<8x128xf32>
    %146 = math.exp %145 : vector<8x128xf32>
    %cst_30 = arith.constant 1.000000e+00 : f32
    %147 = vector.broadcast %cst_30 : f32 to vector<8x128xf32>
    %148 = arith.addf %147, %146 : vector<8x128xf32>
    %149 = arith.divf %147, %148 : vector<8x128xf32>
    %150 = vector.extract_strided_slice %137 {offsets = [0, 256], sizes = [8, 128], strides = [1, 1]} : vector<8x512xf32> to vector<8x128xf32>
    %151 = math.tanh %150 : vector<8x128xf32>
    %152 = vector.extract_strided_slice %137 {offsets = [0, 384], sizes = [8, 128], strides = [1, 1]} : vector<8x512xf32> to vector<8x128xf32>
    %153 = arith.negf %152 : vector<8x128xf32>
    %154 = math.exp %153 : vector<8x128xf32>
    %cst_31 = arith.constant 1.000000e+00 : f32
    %155 = vector.broadcast %cst_31 : f32 to vector<8x128xf32>
    %156 = arith.addf %155, %154 : vector<8x128xf32>
    %157 = arith.divf %155, %156 : vector<8x128xf32>
    %158 = arith.mulf %149, %130 : vector<8x128xf32>
    %159 = arith.mulf %143, %151 : vector<8x128xf32>
    %160 = arith.addf %158, %159 : vector<8x128xf32>
    %161 = math.tanh %160 : vector<8x128xf32>
    %162 = arith.mulf %157, %161 : vector<8x128xf32>
    %163 = arith.addi %5, %c3_i32 : i32
    %164 = vector.broadcast %163 : i32 to vector<8x1xi32>
    %165 = arith.cmpi slt, %164, %3 : vector<8x1xi32>
    %166 = vector.shape_cast %165 : vector<8x1xi1> to vector<8x1xi1>
    %167 = vector.broadcast %166 : vector<8x1xi1> to vector<8x128xi1>
    %168 = arith.select %167, %162, %127 : vector<8x128xi1>, vector<8x128xf32>
    %169 = vector.shape_cast %165 : vector<8x1xi1> to vector<8x1xi1>
    %170 = vector.broadcast %169 : vector<8x1xi1> to vector<8x128xi1>
    %171 = arith.select %170, %160, %130 : vector<8x128xi1>, vector<8x128xf32>
    %c4_i32 = arith.constant 4 : i32
    %172 = arith.truncf %168 : vector<8x128xf32> to vector<8x128xbf16>
    %173 = arith.index_cast %c4_i32 : i32 to index
    %c0_32 = arith.constant 0 : index
    %c0_33 = arith.constant 0 : index
    %174 = vector.load %arg3[%173, %c0_32, %c0_33] : memref<8x8x512xbf16, #tpu.memory_space<vmem>>, vector<1x8x512xbf16>
    %175 = vector.shape_cast %174 : vector<1x8x512xbf16> to vector<8x512xbf16>
    %176 = arith.extf %175 : vector<8x512xbf16> to vector<8x512xf32>
    %cst_34 = arith.constant dense<0.000000e+00> : vector<8x512xf32>
    %177 = tpu.matmul %172, %4, %cst_34 {dimension_numbers = #tpu.dot_dimension_numbers<[1], [0], [0], [1], [0, 0, 1, 1], [], []>} : vector<8x128xbf16>, vector<128x512xbf16>, vector<8x512xf32> -> vector<8x512xf32>
    %178 = arith.addf %176, %177 : vector<8x512xf32>
    %179 = vector.extract_strided_slice %178 {offsets = [0, 0], sizes = [8, 128], strides = [1, 1]} : vector<8x512xf32> to vector<8x128xf32>
    %180 = arith.negf %179 : vector<8x128xf32>
    %181 = math.exp %180 : vector<8x128xf32>
    %cst_35 = arith.constant 1.000000e+00 : f32
    %182 = vector.broadcast %cst_35 : f32 to vector<8x128xf32>
    %183 = arith.addf %182, %181 : vector<8x128xf32>
    %184 = arith.divf %182, %183 : vector<8x128xf32>
    %185 = vector.extract_strided_slice %178 {offsets = [0, 128], sizes = [8, 128], strides = [1, 1]} : vector<8x512xf32> to vector<8x128xf32>
    %186 = arith.negf %185 : vector<8x128xf32>
    %187 = math.exp %186 : vector<8x128xf32>
    %cst_36 = arith.constant 1.000000e+00 : f32
    %188 = vector.broadcast %cst_36 : f32 to vector<8x128xf32>
    %189 = arith.addf %188, %187 : vector<8x128xf32>
    %190 = arith.divf %188, %189 : vector<8x128xf32>
    %191 = vector.extract_strided_slice %178 {offsets = [0, 256], sizes = [8, 128], strides = [1, 1]} : vector<8x512xf32> to vector<8x128xf32>
    %192 = math.tanh %191 : vector<8x128xf32>
    %193 = vector.extract_strided_slice %178 {offsets = [0, 384], sizes = [8, 128], strides = [1, 1]} : vector<8x512xf32> to vector<8x128xf32>
    %194 = arith.negf %193 : vector<8x128xf32>
    %195 = math.exp %194 : vector<8x128xf32>
    %cst_37 = arith.constant 1.000000e+00 : f32
    %196 = vector.broadcast %cst_37 : f32 to vector<8x128xf32>
    %197 = arith.addf %196, %195 : vector<8x128xf32>
    %198 = arith.divf %196, %197 : vector<8x128xf32>
    %199 = arith.mulf %190, %171 : vector<8x128xf32>
    %200 = arith.mulf %184, %192 : vector<8x128xf32>
    %201 = arith.addf %199, %200 : vector<8x128xf32>
    %202 = math.tanh %201 : vector<8x128xf32>
    %203 = arith.mulf %198, %202 : vector<8x128xf32>
    %204 = arith.addi %5, %c4_i32 : i32
    %205 = vector.broadcast %204 : i32 to vector<8x1xi32>
    %206 = arith.cmpi slt, %205, %3 : vector<8x1xi32>
    %207 = vector.shape_cast %206 : vector<8x1xi1> to vector<8x1xi1>
    %208 = vector.broadcast %207 : vector<8x1xi1> to vector<8x128xi1>
    %209 = arith.select %208, %203, %168 : vector<8x128xi1>, vector<8x128xf32>
    %210 = vector.shape_cast %206 : vector<8x1xi1> to vector<8x1xi1>
    %211 = vector.broadcast %210 : vector<8x1xi1> to vector<8x128xi1>
    %212 = arith.select %211, %201, %171 : vector<8x128xi1>, vector<8x128xf32>
    %c5_i32 = arith.constant 5 : i32
    %213 = arith.truncf %209 : vector<8x128xf32> to vector<8x128xbf16>
    %214 = arith.index_cast %c5_i32 : i32 to index
    %c0_38 = arith.constant 0 : index
    %c0_39 = arith.constant 0 : index
    %215 = vector.load %arg3[%214, %c0_38, %c0_39] : memref<8x8x512xbf16, #tpu.memory_space<vmem>>, vector<1x8x512xbf16>
    %216 = vector.shape_cast %215 : vector<1x8x512xbf16> to vector<8x512xbf16>
    %217 = arith.extf %216 : vector<8x512xbf16> to vector<8x512xf32>
    %cst_40 = arith.constant dense<0.000000e+00> : vector<8x512xf32>
    %218 = tpu.matmul %213, %4, %cst_40 {dimension_numbers = #tpu.dot_dimension_numbers<[1], [0], [0], [1], [0, 0, 1, 1], [], []>} : vector<8x128xbf16>, vector<128x512xbf16>, vector<8x512xf32> -> vector<8x512xf32>
    %219 = arith.addf %217, %218 : vector<8x512xf32>
    %220 = vector.extract_strided_slice %219 {offsets = [0, 0], sizes = [8, 128], strides = [1, 1]} : vector<8x512xf32> to vector<8x128xf32>
    %221 = arith.negf %220 : vector<8x128xf32>
    %222 = math.exp %221 : vector<8x128xf32>
    %cst_41 = arith.constant 1.000000e+00 : f32
    %223 = vector.broadcast %cst_41 : f32 to vector<8x128xf32>
    %224 = arith.addf %223, %222 : vector<8x128xf32>
    %225 = arith.divf %223, %224 : vector<8x128xf32>
    %226 = vector.extract_strided_slice %219 {offsets = [0, 128], sizes = [8, 128], strides = [1, 1]} : vector<8x512xf32> to vector<8x128xf32>
    %227 = arith.negf %226 : vector<8x128xf32>
    %228 = math.exp %227 : vector<8x128xf32>
    %cst_42 = arith.constant 1.000000e+00 : f32
    %229 = vector.broadcast %cst_42 : f32 to vector<8x128xf32>
    %230 = arith.addf %229, %228 : vector<8x128xf32>
    %231 = arith.divf %229, %230 : vector<8x128xf32>
    %232 = vector.extract_strided_slice %219 {offsets = [0, 256], sizes = [8, 128], strides = [1, 1]} : vector<8x512xf32> to vector<8x128xf32>
    %233 = math.tanh %232 : vector<8x128xf32>
    %234 = vector.extract_strided_slice %219 {offsets = [0, 384], sizes = [8, 128], strides = [1, 1]} : vector<8x512xf32> to vector<8x128xf32>
    %235 = arith.negf %234 : vector<8x128xf32>
    %236 = math.exp %235 : vector<8x128xf32>
    %cst_43 = arith.constant 1.000000e+00 : f32
    %237 = vector.broadcast %cst_43 : f32 to vector<8x128xf32>
    %238 = arith.addf %237, %236 : vector<8x128xf32>
    %239 = arith.divf %237, %238 : vector<8x128xf32>
    %240 = arith.mulf %231, %212 : vector<8x128xf32>
    %241 = arith.mulf %225, %233 : vector<8x128xf32>
    %242 = arith.addf %240, %241 : vector<8x128xf32>
    %243 = math.tanh %242 : vector<8x128xf32>
    %244 = arith.mulf %239, %243 : vector<8x128xf32>
    %245 = arith.addi %5, %c5_i32 : i32
    %246 = vector.broadcast %245 : i32 to vector<8x1xi32>
    %247 = arith.cmpi slt, %246, %3 : vector<8x1xi32>
    %248 = vector.shape_cast %247 : vector<8x1xi1> to vector<8x1xi1>
    %249 = vector.broadcast %248 : vector<8x1xi1> to vector<8x128xi1>
    %250 = arith.select %249, %244, %209 : vector<8x128xi1>, vector<8x128xf32>
    %251 = vector.shape_cast %247 : vector<8x1xi1> to vector<8x1xi1>
    %252 = vector.broadcast %251 : vector<8x1xi1> to vector<8x128xi1>
    %253 = arith.select %252, %242, %212 : vector<8x128xi1>, vector<8x128xf32>
    %c6_i32 = arith.constant 6 : i32
    %254 = arith.truncf %250 : vector<8x128xf32> to vector<8x128xbf16>
    %255 = arith.index_cast %c6_i32 : i32 to index
    %c0_44 = arith.constant 0 : index
    %c0_45 = arith.constant 0 : index
    %256 = vector.load %arg3[%255, %c0_44, %c0_45] : memref<8x8x512xbf16, #tpu.memory_space<vmem>>, vector<1x8x512xbf16>
    %257 = vector.shape_cast %256 : vector<1x8x512xbf16> to vector<8x512xbf16>
    %258 = arith.extf %257 : vector<8x512xbf16> to vector<8x512xf32>
    %cst_46 = arith.constant dense<0.000000e+00> : vector<8x512xf32>
    %259 = tpu.matmul %254, %4, %cst_46 {dimension_numbers = #tpu.dot_dimension_numbers<[1], [0], [0], [1], [0, 0, 1, 1], [], []>} : vector<8x128xbf16>, vector<128x512xbf16>, vector<8x512xf32> -> vector<8x512xf32>
    %260 = arith.addf %258, %259 : vector<8x512xf32>
    %261 = vector.extract_strided_slice %260 {offsets = [0, 0], sizes = [8, 128], strides = [1, 1]} : vector<8x512xf32> to vector<8x128xf32>
    %262 = arith.negf %261 : vector<8x128xf32>
    %263 = math.exp %262 : vector<8x128xf32>
    %cst_47 = arith.constant 1.000000e+00 : f32
    %264 = vector.broadcast %cst_47 : f32 to vector<8x128xf32>
    %265 = arith.addf %264, %263 : vector<8x128xf32>
    %266 = arith.divf %264, %265 : vector<8x128xf32>
    %267 = vector.extract_strided_slice %260 {offsets = [0, 128], sizes = [8, 128], strides = [1, 1]} : vector<8x512xf32> to vector<8x128xf32>
    %268 = arith.negf %267 : vector<8x128xf32>
    %269 = math.exp %268 : vector<8x128xf32>
    %cst_48 = arith.constant 1.000000e+00 : f32
    %270 = vector.broadcast %cst_48 : f32 to vector<8x128xf32>
    %271 = arith.addf %270, %269 : vector<8x128xf32>
    %272 = arith.divf %270, %271 : vector<8x128xf32>
    %273 = vector.extract_strided_slice %260 {offsets = [0, 256], sizes = [8, 128], strides = [1, 1]} : vector<8x512xf32> to vector<8x128xf32>
    %274 = math.tanh %273 : vector<8x128xf32>
    %275 = vector.extract_strided_slice %260 {offsets = [0, 384], sizes = [8, 128], strides = [1, 1]} : vector<8x512xf32> to vector<8x128xf32>
    %276 = arith.negf %275 : vector<8x128xf32>
    %277 = math.exp %276 : vector<8x128xf32>
    %cst_49 = arith.constant 1.000000e+00 : f32
    %278 = vector.broadcast %cst_49 : f32 to vector<8x128xf32>
    %279 = arith.addf %278, %277 : vector<8x128xf32>
    %280 = arith.divf %278, %279 : vector<8x128xf32>
    %281 = arith.mulf %272, %253 : vector<8x128xf32>
    %282 = arith.mulf %266, %274 : vector<8x128xf32>
    %283 = arith.addf %281, %282 : vector<8x128xf32>
    %284 = math.tanh %283 : vector<8x128xf32>
    %285 = arith.mulf %280, %284 : vector<8x128xf32>
    %286 = arith.addi %5, %c6_i32 : i32
    %287 = vector.broadcast %286 : i32 to vector<8x1xi32>
    %288 = arith.cmpi slt, %287, %3 : vector<8x1xi32>
    %289 = vector.shape_cast %288 : vector<8x1xi1> to vector<8x1xi1>
    %290 = vector.broadcast %289 : vector<8x1xi1> to vector<8x128xi1>
    %291 = arith.select %290, %285, %250 : vector<8x128xi1>, vector<8x128xf32>
    %292 = vector.shape_cast %288 : vector<8x1xi1> to vector<8x1xi1>
    %293 = vector.broadcast %292 : vector<8x1xi1> to vector<8x128xi1>
    %294 = arith.select %293, %283, %253 : vector<8x128xi1>, vector<8x128xf32>
    %c7_i32 = arith.constant 7 : i32
    %295 = arith.truncf %291 : vector<8x128xf32> to vector<8x128xbf16>
    %296 = arith.index_cast %c7_i32 : i32 to index
    %c0_50 = arith.constant 0 : index
    %c0_51 = arith.constant 0 : index
    %297 = vector.load %arg3[%296, %c0_50, %c0_51] : memref<8x8x512xbf16, #tpu.memory_space<vmem>>, vector<1x8x512xbf16>
    %298 = vector.shape_cast %297 : vector<1x8x512xbf16> to vector<8x512xbf16>
    %299 = arith.extf %298 : vector<8x512xbf16> to vector<8x512xf32>
    %cst_52 = arith.constant dense<0.000000e+00> : vector<8x512xf32>
    %300 = tpu.matmul %295, %4, %cst_52 {dimension_numbers = #tpu.dot_dimension_numbers<[1], [0], [0], [1], [0, 0, 1, 1], [], []>} : vector<8x128xbf16>, vector<128x512xbf16>, vector<8x512xf32> -> vector<8x512xf32>
    %301 = arith.addf %299, %300 : vector<8x512xf32>
    %302 = vector.extract_strided_slice %301 {offsets = [0, 0], sizes = [8, 128], strides = [1, 1]} : vector<8x512xf32> to vector<8x128xf32>
    %303 = arith.negf %302 : vector<8x128xf32>
    %304 = math.exp %303 : vector<8x128xf32>
    %cst_53 = arith.constant 1.000000e+00 : f32
    %305 = vector.broadcast %cst_53 : f32 to vector<8x128xf32>
    %306 = arith.addf %305, %304 : vector<8x128xf32>
    %307 = arith.divf %305, %306 : vector<8x128xf32>
    %308 = vector.extract_strided_slice %301 {offsets = [0, 128], sizes = [8, 128], strides = [1, 1]} : vector<8x512xf32> to vector<8x128xf32>
    %309 = arith.negf %308 : vector<8x128xf32>
    %310 = math.exp %309 : vector<8x128xf32>
    %cst_54 = arith.constant 1.000000e+00 : f32
    %311 = vector.broadcast %cst_54 : f32 to vector<8x128xf32>
    %312 = arith.addf %311, %310 : vector<8x128xf32>
    %313 = arith.divf %311, %312 : vector<8x128xf32>
    %314 = vector.extract_strided_slice %301 {offsets = [0, 256], sizes = [8, 128], strides = [1, 1]} : vector<8x512xf32> to vector<8x128xf32>
    %315 = math.tanh %314 : vector<8x128xf32>
    %316 = vector.extract_strided_slice %301 {offsets = [0, 384], sizes = [8, 128], strides = [1, 1]} : vector<8x512xf32> to vector<8x128xf32>
    %317 = arith.negf %316 : vector<8x128xf32>
    %318 = math.exp %317 : vector<8x128xf32>
    %cst_55 = arith.constant 1.000000e+00 : f32
    %319 = vector.broadcast %cst_55 : f32 to vector<8x128xf32>
    %320 = arith.addf %319, %318 : vector<8x128xf32>
    %321 = arith.divf %319, %320 : vector<8x128xf32>
    %322 = arith.mulf %313, %294 : vector<8x128xf32>
    %323 = arith.mulf %307, %315 : vector<8x128xf32>
    %324 = arith.addf %322, %323 : vector<8x128xf32>
    %325 = math.tanh %324 : vector<8x128xf32>
    %326 = arith.mulf %321, %325 : vector<8x128xf32>
    %327 = arith.addi %5, %c7_i32 : i32
    %328 = vector.broadcast %327 : i32 to vector<8x1xi32>
    %329 = arith.cmpi slt, %328, %3 : vector<8x1xi32>
    %330 = vector.shape_cast %329 : vector<8x1xi1> to vector<8x1xi1>
    %331 = vector.broadcast %330 : vector<8x1xi1> to vector<8x128xi1>
    %332 = arith.select %331, %326, %291 : vector<8x128xi1>, vector<8x128xf32>
    %333 = vector.shape_cast %329 : vector<8x1xi1> to vector<8x1xi1>
    %334 = vector.broadcast %333 : vector<8x1xi1> to vector<8x128xi1>
    %335 = arith.select %334, %324, %294 : vector<8x128xi1>, vector<8x128xf32>
    %c8_i32_56 = arith.constant 8 : i32
    %c0_57 = arith.constant 0 : index
    %c0_58 = arith.constant 0 : index
    %336 = vector.load %arg6[%c0_57, %c0_58] : memref<8x128xf32, #tpu.memory_space<vmem>>, vector<8x128xf32>
    tpu.vector_store %arg6[%c0_57, %c0_58], %332 {strides = array<i32>} : memref<8x128xf32, #tpu.memory_space<vmem>>, vector<8x128xf32>,
    %c0_59 = arith.constant 0 : index
    %c0_60 = arith.constant 0 : index
    %337 = vector.load %arg7[%c0_59, %c0_60] : memref<8x128xf32, #tpu.memory_space<vmem>>, vector<8x128xf32>
    tpu.vector_store %arg7[%c0_59, %c0_60], %335 {strides = array<i32>} : memref<8x128xf32, #tpu.memory_space<vmem>>, vector<8x128xf32>,
    %c0_i32_61 = arith.constant 0 : i32
    %338 = arith.cmpi eq, %arg1, %c0_i32_61 : i32
    %339 = arith.extui %338 : i1 to i32
    %c0_i32_62 = arith.constant 0 : i32
    %340 = arith.cmpi ne, %339, %c0_i32_62 : i32
    scf.if %340 {
      %c0_63 = arith.constant 0 : index
      %c0_64 = arith.constant 0 : index
      %341 = vector.load %arg5[%c0_63, %c0_64] : memref<8x128xf32, #tpu.memory_space<vmem>>, vector<8x128xf32>
      tpu.vector_store %arg5[%c0_63, %c0_64], %332 {strides = array<i32>} : memref<8x128xf32, #tpu.memory_space<vmem>>, vector<8x128xf32>,
    } else {
    }
    return
  }
  func.func @transform_0(%arg0: i32, %arg1: i32) -> (i32, i32) {
    %c0_i32 = arith.constant 0 : i32
    %c0_i32_0 = arith.constant 0 : i32
    return %arg0, %c0_i32 : i32, i32
  }
  func.func @transform_1(%arg0: i32, %arg1: i32) -> (i32, i32, i32) {
    %c0_i32 = arith.constant 0 : i32
    %c0_i32_0 = arith.constant 0 : i32
    return %arg1, %arg0, %c0_i32 : i32, i32, i32
  }
  func.func @transform_2(%arg0: i32, %arg1: i32) -> (i32, i32) {
    %c0_i32 = arith.constant 0 : i32
    %c0_i32_0 = arith.constant 0 : i32
    %c0_i32_1 = arith.constant 0 : i32
    return %c0_i32, %c0_i32_0 : i32, i32
  }
  func.func @transform_3(%arg0: i32, %arg1: i32) -> (i32, i32) {
    %c0_i32 = arith.constant 0 : i32
    %c0_i32_0 = arith.constant 0 : i32
    return %arg0, %c0_i32 : i32, i32
  }
}

</mosaic_0001>

<bundles_post_ra>
// kernel: sentiment_forward.3
= control target key start
LH: loop header
LB: loop body
LE: loop exit
PB: predicated region body
PF: predicated region fallthrough
CT: control target
= control target key end

     0   :  { %v1545_v1 = vmov 0   ;;  %v1546_v37 = vmov 0.0|0.0   ;;  %s2249_s2 = inlined_call_operand.vmem [shape: bf16[128,512], index: 2, kind: input, shape index: {}]   ;;  %s2250_s0 = inlined_call_operand.vmem [shape: s32[8,1], index: 0, kind: input, shape index: {}]   ;;  %s2251_s1 = inlined_call_operand.vmem [shape: bf16[8,8,512], index: 1, kind: input, shape index: {}]   ;;  %s2252_s3 = inlined_call_operand.vmem [shape: f32[8,128], index: 3, kind: output, shape index: {}]  }
   0x1   :  { %v1570_v0 = vld [vmem:[%s2249_s2 + $0x4] ss:$16 sps:$4 sm:$0xff]   ;;  %256 = vmatprep.mubr.bf16.mxu0 %v1545_v1  ;;  %297 = vmatprep.mubr.bf16.mxu1 %v1545_v1  ;;  %v1577_v2 = vld [vmem:[%s2249_s2] ss:$16 sps:$4 sm:$0xff]   ;;  %v1602_v6 = vld [vmem:[%s2249_s2 + $0xc] ss:$16 sps:$4 sm:$0xff]  }
   0x2   :  { %1335 = vset.pattern.permute.xlu0 %v1545_v1  ;;  %1336 = vset.pattern.permute.xlu1 %v1545_v1  ;;  %v1585_v3 = vld [vmem:[%s2249_s2 + $0x24] ss:$16 sps:$4 sm:$0xff]   ;;  %v1591_v4 = vld [vmem:[%s2249_s2 + $0x20] ss:$16 sps:$4 sm:$0xff]   ;;  %v1607_v7 = vld [vmem:[%s2249_s2 + $0x8] ss:$16 sps:$4 sm:$0xff]  }
   0x3   :  { %224 = vmatprep.subr.bf16.mxu0 %v1570_v0  ;;  %v1597_v5 = vld [vmem:[%s2249_s2 + $0x44] ss:$16 sps:$4 sm:$0xff]   ;;  %v1613_v8 = vld [vmem:[%s2249_s2 + $0x40] ss:$16 sps:$4 sm:$0xff]   ;;  %265 = vmatprep.subr.bf16.mxu1 %v1602_v6  ;;  %v1626_v10 = vld [vmem:[%s2249_s2 + $0x2c] ss:$16 sps:$4 sm:$0xff]  }
   0x4   :  { %225 = vmatpush1.bf16.msra.mxu0 %v1577_v2  ;;  %v1620_v9 = vld [vmem:[%s2249_s2 + $0x64] ss:$16 sps:$4 sm:$0xff]   ;;  %266 = vmatpush1.bf16.msra.mxu1 %v1607_v7  ;;  %v1631_v11 = vld [vmem:[%s2249_s2 + $0x28] ss:$16 sps:$4 sm:$0xff]   ;;  %v1638_v12 = vld [vmem:[%s2249_s2 + $0x60] ss:$16 sps:$4 sm:$0xff]  }
   0x5   :  { %226 = vmatprep.subr.bf16.mxu0 %v1585_v3  ;;  %267 = vmatprep.subr.bf16.mxu1 %v1626_v10  ;;  %v1643_v13 = vld [vmem:[%s2249_s2 + $0x84] ss:$16 sps:$4 sm:$0xff]   ;;  %v1648_v14 = vld [vmem:[%s2249_s2 + $0x4c] ss:$16 sps:$4 sm:$0xff]   ;;  %v1655_v15 = vld [vmem:[%s2249_s2 + $0x48] ss:$16 sps:$4 sm:$0xff]  }
   0x6   :  { %v1661_v16 = vld [vmem:[%s2249_s2 + $0x6c] ss:$16 sps:$4 sm:$0xff]   ;;  %v1667_v17 = vld [vmem:[%s2249_s2 + $0x80] ss:$16 sps:$4 sm:$0xff]   ;;  %v1673_v18 = vld [vmem:[%s2249_s2 + $0xa4] ss:$16 sps:$4 sm:$0xff]  }
   0x7   :  { %v1679_v19 = vld [vmem:[%s2249_s2 + $0x68] ss:$16 sps:$4 sm:$0xff]   ;;  %v1685_v20 = vld [vmem:[%s2249_s2 + $0x8c] ss:$16 sps:$4 sm:$0xff]   ;;  %v1691_v21 = vld [vmem:[%s2249_s2 + $0xa0] ss:$16 sps:$4 sm:$0xff]  }
   0x8   :  { %227 = vmatpush1.bf16.msra.mxu0 %v1591_v4  ;;  %268 = vmatpush1.bf16.msra.mxu1 %v1631_v11  ;;  %v1696_v22 = vld [vmem:[%s2249_s2 + $0xc4] ss:$16 sps:$4 sm:$0xff]   ;;  %v1703_v23 = vld [vmem:[%s2249_s2 + $0x88] ss:$16 sps:$4 sm:$0xff]   ;;  %v1709_v24 = vld [vmem:[%s2249_s2 + $0xac] ss:$16 sps:$4 sm:$0xff]  }
   0x9   :  { %228 = vmatprep.subr.bf16.mxu0 %v1597_v5  ;;  %269 = vmatprep.subr.bf16.mxu1 %v1648_v14  ;;  %v1714_v25 = vld [vmem:[%s2250_s0] sm:$0xff]  ;;  %v1735_v29 = vld [vmem:[%s2249_s2 + $0xa8] ss:$16 sps:$4 sm:$0xff]   ;;  %v1741_v30 = vld [vmem:[%s2249_s2 + $0xcc] ss:$16 sps:$4 sm:$0xff]  }
   0xa   :  { %vm1284_vm0 = vcmp.gt.s32.totalorder %v1714_v25, 0  ;;  %v1721_v26 = vld [vmem:[%s2249_s2 + $0xc0] ss:$16 sps:$4 sm:$0xff]   ;;  %vm1290_vm1 = vcmp.gt.s32.totalorder %v1714_v25, 1  ;;  %v1729_v28 = vld [vmem:[%s2249_s2 + $0xe4] ss:$16 sps:$4 sm:$0xff]  }
   0xb   :  { %v336_v27 = vsel %vm1284_vm0, 1, %v1545_v1  ;;  %v464_v31 = vsel %vm1290_vm1, 1, %v1545_v1  ;;  %v1748_v32 = vld [vmem:[%s2249_s2 + $0xe0] ss:$16 sps:$4 sm:$0xff]   ;;  %vm1308_vm2 = vcmp.gt.s32.totalorder %v1714_v25, 4  ;;  %vm1320_vm3 = vcmp.gt.s32.totalorder %v1714_v25, 6 }
   0xc   :  { %229 = vmatpush1.bf16.msra.mxu0 %v1613_v8  ;;  %270 = vmatpush1.bf16.msra.mxu1 %v1655_v15  ;;  %v1756_v33 = vld [vmem:[%s2249_s2 + $0xc8] ss:$16 sps:$4 sm:$0xff]   ;;  %v1762_v34 = vld [vmem:[%s2249_s2 + $0xec] ss:$16 sps:$4 sm:$0xff]   ;;  %v848_v35 = vsel %vm1308_vm2, 1, %v1545_v1  ;;  %v1104_v38 = vsel %vm1320_vm3, 1, %v1545_v1 }
   0xd   :  { %230 = vmatprep.subr.bf16.mxu0 %v1620_v9  ;;  %271 = vmatprep.subr.bf16.mxu1 %v1661_v16  ;;  %v1771_v36 = vld [vmem:[%s2249_s2 + $0xe8] ss:$16 sps:$4 sm:$0xff]   ;;  %v58_v39 = vld [vmem:[%s2251_s1] sm:$0xff]  ;;  %vm1296_vm6 = vcmp.gt.s32.totalorder %v1714_v25, 2  ;;  %vm1302_vm7 = vcmp.gt.s32.totalorder %v1714_v25, 3  ;;  %vm1314_vm8 = vcmp.gt.s32.totalorder %v1714_v25, 5 }
   0xe   :  { %338 = vperm.xlu0 %1335, %v336_v27   ;;  %v60_v40 = vunpack.c.l.bf16 %v58_v39  ;;  %v61_v41 = vunpack.c.h.bf16 %v58_v39  ;;  %v59_v43 = vld [vmem:[%s2251_s1 + $0x8] sm:$0xff]  ;;  %vm1326_vm9 = vcmp.gt.s32.totalorder %v1714_v25, 7 }
   0xf   :  { %v63_v50 = vunpack.c.h.bf16 %v59_v43  ;;  %v62_v56 = vunpack.c.l.bf16 %v59_v43 }
  0x10   :  { %231 = vmatpush1.bf16.msra.mxu0 %v1638_v12  ;;  %272 = vmatpush1.bf16.msra.mxu1 %v1679_v19 }
  0x11   :  { %232 = vmatprep.subr.bf16.mxu0 %v1643_v13  ;;  %273 = vmatprep.subr.bf16.mxu1 %v1685_v20 }
  0x12   :  { %466 = vperm.xlu0 %1335, %v464_v31  }
  0x14   :  { %233 = vmatpush1.bf16.msra.mxu0 %v1667_v17  ;;  %274 = vmatpush1.bf16.msra.mxu1 %v1703_v23 }
  0x15   :  { %234 = vmatprep.subr.bf16.mxu0 %v1673_v18  ;;  %275 = vmatprep.subr.bf16.mxu1 %v1709_v24 }
  0x16   :  { %850 = vperm.xlu0 %1335, %v848_v35  }
  0x18   :  { %235 = vmatpush1.bf16.msra.mxu0 %v1691_v21  ;;  %276 = vmatpush1.bf16.msra.mxu1 %v1735_v29 }
  0x19   :  { %236 = vmatprep.subr.bf16.mxu0 %v1696_v22  ;;  %277 = vmatprep.subr.bf16.mxu1 %v1741_v30 }
  0x1a   :  { %1106 = vperm.xlu0 %1335, %v1104_v38  }
  0x1c   :  { %237 = vmatpush1.bf16.msra.mxu0 %v1721_v26  ;;  %278 = vmatpush1.bf16.msra.mxu1 %v1756_v33 }
  0x1d   :  { %238 = vmatprep.subr.bf16.mxu0 %v1729_v28  ;;  %279 = vmatprep.subr.bf16.mxu1 %v1762_v34 }
  0x20   :  { %239 = vmatpush1.bf16.msra.mxu0 %v1748_v32  ;;  %280 = vmatpush1.bf16.msra.mxu1 %v1771_v36 }
  0x21   :  { %351 = vmatprep.subr.bf16.mxu0 %v1570_v0  ;;  %392 = vmatprep.subr.bf16.mxu1 %v1602_v6 }
  0x23   :  { %257 = vmatmul.mubr.bf16.vlgmr.msra.gmra.mrb[0].mxu0 %v1546_v37  ;;  %298 = vmatmul.mubr.bf16.vlgmr.msra.gmra.mrb[0].mxu1 %v1546_v37 }
  0x24   :  { %352 = vmatpush1.bf16.msra.mxu0 %v1577_v2  ;;  %383 = vmatprep.mubr.bf16.mxu0 %v1545_v1 }
  0x25   :  { %353 = vmatprep.subr.bf16.mxu0 %v1585_v3  ;;  %393 = vmatpush1.bf16.msra.mxu1 %v1607_v7 }
  0x26   :  { %394 = vmatprep.subr.bf16.mxu1 %v1626_v10  ;;  %424 = vmatprep.mubr.bf16.mxu1 %v1545_v1 }
  0x28   :  { %354 = vmatpush1.bf16.msra.mxu0 %v1591_v4 }
  0x29   :  { %355 = vmatprep.subr.bf16.mxu0 %v1597_v5  ;;  %395 = vmatpush1.bf16.msra.mxu1 %v1631_v11 }
  0x2a   :  { %396 = vmatprep.subr.bf16.mxu1 %v1648_v14 }
  0x2c   :  { %356 = vmatpush1.bf16.msra.mxu0 %v1613_v8 }
  0x2d   :  { %357 = vmatprep.subr.bf16.mxu0 %v1620_v9  ;;  %397 = vmatpush1.bf16.msra.mxu1 %v1655_v15 }
  0x2e   :  { %398 = vmatprep.subr.bf16.mxu1 %v1661_v16 }
  0x30   :  { %358 = vmatpush1.bf16.msra.mxu0 %v1638_v12 }
  0x31   :  { %359 = vmatprep.subr.bf16.mxu0 %v1643_v13  ;;  %399 = vmatpush1.bf16.msra.mxu1 %v1679_v19 }
  0x32   :  { %400 = vmatprep.subr.bf16.mxu1 %v1685_v20 }
  0x34   :  { %360 = vmatpush1.bf16.msra.mxu0 %v1667_v17 }
  0x35   :  { %361 = vmatprep.subr.bf16.mxu0 %v1673_v18  ;;  %401 = vmatpush1.bf16.msra.mxu1 %v1703_v23 }
  0x36   :  { %402 = vmatprep.subr.bf16.mxu1 %v1709_v24 }
  0x38   :  { %362 = vmatpush1.bf16.msra.mxu0 %v1691_v21 }
  0x39   :  { %363 = vmatprep.subr.bf16.mxu0 %v1696_v22  ;;  %403 = vmatpush1.bf16.msra.mxu1 %v1735_v29 }
  0x3a   :  { %404 = vmatprep.subr.bf16.mxu1 %v1741_v30 }
  0x3c   :  { %364 = vmatpush1.bf16.msra.mxu0 %v1721_v26 }
  0x3d   :  { %365 = vmatprep.subr.bf16.mxu0 %v1729_v28  ;;  %405 = vmatpush1.bf16.msra.mxu1 %v1756_v33 }
  0x3e   :  { %406 = vmatprep.subr.bf16.mxu1 %v1762_v34 }
  0x40   :  { %366 = vmatpush1.bf16.msra.mxu0 %v1748_v32 }
  0x41   :  { %479 = vmatprep.subr.bf16.mxu0 %v1570_v0  ;;  %407 = vmatpush1.bf16.msra.mxu1 %v1771_v36 }
  0x42   :  { %520 = vmatprep.subr.bf16.mxu1 %v1602_v6 }
  0x8d   :  { %v1821_v43 = vpop.permute.xlu0 %338 }
  0x8e   :  { %vm340_vm4 = vcmp.eq.s32.totalorder %v1821_v43, 1  ;;  %v1291_v43 = vld [vmem:[%s2251_s1 + $0x20] sm:$0xff] }
  0x8f   :  { %vm1327_vm5 = vmpackc.low %vm340_vm4, %vm340_vm4 }
  0xf6   :  { %v258_v42 = vpop.f32.mrb[0].mxu0  ;;  %v299_v52 = vpop.f32.mrb[0].mxu1 }
  0xf7   :  { %v306_v44 = vadd.f32 %v258_v42, %v60_v40  ;;  %v260_v45 = vpop.f32.mrb[1].mxu0  ;;  %v301_v53 = vpop.f32.mrb[1].mxu1  ;;  %v308_v59 = vadd.f32 %v299_v52, %v62_v56 }
  0xf8   :  { %v307_v46 = vadd.f32 %v260_v45, %v61_v41  ;;  %v262_v47 = vpop.f32.mrb[2].mxu0  ;;  %v309_v54 = vadd.f32 %v301_v53, %v63_v50  ;;  %v303_v55 = vpop.f32.mrb[2].mxu1  ;;  %v1232_v50 = vsel %vm1326_vm9, 1, %v1545_v1 }
  0xf9   :  { %v1281_v48 = vmul.f32 -1.442695, %v306_v44  ;;  %v263_v49 = vpop.f32.mrb[3].mxu0  ;;  %v304_v57 = vpop.f32.mrb[3].mxu1  ;;  %v592_v47 = vsel %vm1296_vm6, 1, %v1545_v1 }
  0xfa   :  { %v1282_v51 = vmul.f32 -1.442695, %v307_v46  ;;  %v1283_v58 = vmul.f32 -1.442695, %v309_v54  ;;  %594 = vperm.xlu1 %1336, %v592_v47   ;;  %v976_v49 = vsel %vm1314_vm8, 1, %v1545_v1  ;;  %v1286_v57 = vld [vmem:[%s2251_s1 + $0x18] sm:$0xff] }
  0xfb   :  { %1385 = vpow2.f32 %v1281_v48  ;;  %v720_v48 = vsel %vm1302_vm7, 1, %v1545_v1 }
  0xfc   :  { %1387 = vpow2.f32 %v1282_v51  ;;  %v1285_v51 = vld [vmem:[%s2251_s1 + $0x10] sm:$0xff] }
  0xfd   :  { %1389 = vpow2.f32 %v1283_v58  ;;  %v347_v52 = vunpack.c.l.bf16 %v1285_v51  ;;  %v348_v53 = vunpack.c.h.bf16 %v1285_v51 }
  0xfe   :  { %1391 = vtanh.f32 %v308_v59  ;;  %722 = vperm.xlu1 %1336, %v720_v48  }
 0x102   :  { %978 = vperm.xlu1 %1336, %v976_v49  }
 0x105   :  { %v1386_v60 = vpop.eup %1385 }
 0x106   :  { %v1388_v61 = vpop.eup %1387  ;;  %v313_v62 = vadd.f32 1.0, %v1386_v60  ;;  %1234 = vperm.xlu1 %1336, %v1232_v50  }
 0x107   :  { %v319_v63 = vadd.f32 1.0, %v1388_v61  ;;  %v1390_v27 = vpop.eup %1389 }
 0x108   :  { %1393 = vrcp.f32 %v313_v62  ;;  %v1392_v31 = vpop.eup %1391  ;;  %v326_v37 = vadd.f32 1.0, %v1390_v27 }
 0x109   :  { %1395 = vrcp.f32 %v319_v63 }
 0x10a   :  { %1397 = vrcp.f32 %v326_v37 }
 0x112   :  { %v1394_v35 = vpop.eup %1393 }
 0x113   :  { %v1396_v38 = vpop.eup %1395  ;;  %v330_v39 = vmul.f32 %v1394_v35, %v1392_v31  ;;  %v350_v35 = vunpack.c.h.bf16 %v1286_v57 }
 0x114   :  { %v329_v40 = vmul.f32 0.0, %v1396_v38  ;;  %v1398_v42 = vpop.eup %1397  ;;  %v349_v38 = vunpack.c.l.bf16 %v1286_v57 }
 0x116   :  { %v1818_v41 = vadd.f32 %v330_v39, %v329_v40 }
 0x118   :  { %1399 = vtanh.f32 %v1818_v41 }
 0x122   :  { %v1400_v44 = vpop.eup %1399 }
 0x123   :  { %v1823_v45 = vmul.f32 %v1400_v44, %v1398_v42 }
 0x125   :  { %v1328_v46 = vpack.c.bf16 %v1823_v45, %v1823_v45 }
 0x127   :  { %1329 = vmatmul.mubr.msk.bf16.vlgmr.msra.gmra.mrb[4].mxu0 %vm1327_vm5, %v1328_v46  ;;  %1332 = vmatmul.mubr.msk.bf16.vlgmr.msra.gmra.mrb[4].mxu1 %vm1327_vm5, %v1328_v46 }
 0x128   :  { %480 = vmatpush1.bf16.msra.mxu0 %v1577_v2  ;;  %521 = vmatpush1.bf16.msra.mxu1 %v1607_v7 }
 0x129   :  { %481 = vmatprep.subr.bf16.mxu0 %v1585_v3  ;;  %522 = vmatprep.subr.bf16.mxu1 %v1626_v10 }
 0x12a   :  { %511 = vmatprep.mubr.bf16.mxu0 %v1545_v1  ;;  %552 = vmatprep.mubr.bf16.mxu1 %v1545_v1 }
 0x12c   :  { %482 = vmatpush1.bf16.msra.mxu0 %v1591_v4  ;;  %523 = vmatpush1.bf16.msra.mxu1 %v1631_v11 }
 0x12d   :  { %483 = vmatprep.subr.bf16.mxu0 %v1597_v5  ;;  %524 = vmatprep.subr.bf16.mxu1 %v1648_v14 }
 0x130   :  { %484 = vmatpush1.bf16.msra.mxu0 %v1613_v8  ;;  %525 = vmatpush1.bf16.msra.mxu1 %v1655_v15 }
 0x131   :  { %485 = vmatprep.subr.bf16.mxu0 %v1620_v9  ;;  %526 = vmatprep.subr.bf16.mxu1 %v1661_v16 }
 0x134   :  { %486 = vmatpush1.bf16.msra.mxu0 %v1638_v12  ;;  %527 = vmatpush1.bf16.msra.mxu1 %v1679_v19 }
 0x135   :  { %487 = vmatprep.subr.bf16.mxu0 %v1643_v13  ;;  %528 = vmatprep.subr.bf16.mxu1 %v1685_v20 }
 0x138   :  { %488 = vmatpush1.bf16.msra.mxu0 %v1667_v17  ;;  %529 = vmatpush1.bf16.msra.mxu1 %v1703_v23 }
 0x139   :  { %489 = vmatprep.subr.bf16.mxu0 %v1673_v18  ;;  %530 = vmatprep.subr.bf16.mxu1 %v1709_v24 }
 0x13c   :  { %490 = vmatpush1.bf16.msra.mxu0 %v1691_v21  ;;  %531 = vmatpush1.bf16.msra.mxu1 %v1735_v29 }
 0x13d   :  { %491 = vmatprep.subr.bf16.mxu0 %v1696_v22  ;;  %532 = vmatprep.subr.bf16.mxu1 %v1741_v30 }
 0x140   :  { %492 = vmatpush1.bf16.msra.mxu0 %v1721_v26  ;;  %533 = vmatpush1.bf16.msra.mxu1 %v1756_v33 }
 0x141   :  { %493 = vmatprep.subr.bf16.mxu0 %v1729_v28  ;;  %534 = vmatprep.subr.bf16.mxu1 %v1762_v34 }
 0x144   :  { %494 = vmatpush1.bf16.msra.mxu0 %v1748_v32  ;;  %535 = vmatpush1.bf16.msra.mxu1 %v1771_v36 }
 0x145   :  { %607 = vmatprep.subr.bf16.mxu0 %v1570_v0  ;;  %648 = vmatprep.subr.bf16.mxu1 %v1602_v6 }
 0x1fa   :  { %v385_v54 = vpop.f32.mrb[4].mxu0  ;;  %v426_v55 = vpop.f32.mrb[4].mxu1 }
 0x1fb   :  { %v433_v56 = vadd.f32 %v385_v54, %v347_v52  ;;  %v387_v58 = vpop.f32.mrb[5].mxu0  ;;  %v428_v59 = vpop.f32.mrb[5].mxu1  ;;  %v435_v40 = vadd.f32 %v426_v55, %v349_v38  ;;  %v342_v52 = vsel %vm340_vm4, %v1818_v41, 0.0 }
 0x1fc   :  { %v434_v25 = vadd.f32 %v387_v58, %v348_v53  ;;  %v389_v60 = vpop.f32.mrb[6].mxu0  ;;  %v430_v61 = vpop.f32.mrb[6].mxu1  ;;  %v436_v37 = vadd.f32 %v428_v59, %v350_v35 }
 0x1fd   :  { %v1287_v62 = vmul.f32 -1.442695, %v433_v56  ;;  %v390_v63 = vpop.f32.mrb[7].mxu0  ;;  %v431_v27 = vpop.f32.mrb[7].mxu1  ;;  %v341_v61 = vsel %vm340_vm4, %v1823_v45, 0.0  ;;  %v475_v45 = vunpack.c.l.bf16 %v1291_v43 }
 0x1fe   :  { %v1288_v31 = vmul.f32 -1.442695, %v434_v25  ;;  %v1289_v39 = vmul.f32 -1.442695, %v436_v37  ;;  %v467_v55 = vpop.permute.xlu0 %466  ;;  %v476_v63 = vunpack.c.h.bf16 %v1291_v43  ;;  %v1292_v37 = vld [vmem:[%s2251_s1 + $0x28] sm:$0xff] }
 0x1ff   :  { %1401 = vpow2.f32 %v1287_v62  ;;  %vm468_vm10 = vcmp.eq.s32.totalorder %v467_v55, 1 }
 0x200   :  { %1403 = vpow2.f32 %v1288_v31 }
 0x201   :  { %1405 = vpow2.f32 %v1289_v39 }
 0x202   :  { %1407 = vtanh.f32 %v435_v40 }
 0x209   :  { %v1402_v42 = vpop.eup %1401 }
 0x20a   :  { %v1404_v44 = vpop.eup %1403  ;;  %v440_v46 = vadd.f32 1.0, %v1402_v42 }
 0x20b   :  { %v446_v47 = vadd.f32 1.0, %v1404_v44  ;;  %v1406_v48 = vpop.eup %1405 }
 0x20c   :  { %1409 = vrcp.f32 %v440_v46  ;;  %v1408_v49 = vpop.eup %1407  ;;  %v453_v54 = vadd.f32 1.0, %v1406_v48 }
 0x20d   :  { %1411 = vrcp.f32 %v446_v47 }
 0x20e   :  { %1413 = vrcp.f32 %v453_v54 }
 0x216   :  { %v1410_v50 = vpop.eup %1409 }
 0x217   :  { %v1412_v51 = vpop.eup %1411  ;;  %v457_v53 = vmul.f32 %v1410_v50, %v1408_v49  ;;  %v478_v50 = vunpack.c.h.bf16 %v1292_v37 }
 0x218   :  { %v456_v56 = vmul.f32 %v1412_v51, %v342_v52  ;;  %v1414_v59 = vpop.eup %1413 }
 0x21a   :  { %v458_v57 = vadd.f32 %v457_v53, %v456_v56 }
 0x21c   :  { %1415 = vtanh.f32 %v458_v57  ;;  %v1882_v58 = vsel %vm468_vm10, %v458_v57, %v342_v52  ;;  %v477_v52 = vunpack.c.l.bf16 %v1292_v37 }
 0x226   :  { %v1416_v25 = vpop.eup %1415 }
 0x227   :  { %v460_v60 = vmul.f32 %v1416_v25, %v1414_v59 }
 0x229   :  { %v1887_v62 = vsel %vm468_vm10, %v460_v60, %v341_v61 }
 0x22a   :  { %v471_v41 = vpack.c.bf16 %v1887_v62, %v1887_v62 }
 0x22c   :  { %512 = vmatmul.mubr.bf16.vlgmr.msra.gmra.mrb[8].mxu0 %v471_v41  ;;  %553 = vmatmul.mubr.bf16.vlgmr.msra.gmra.mrb[8].mxu1 %v471_v41  ;;  %v595_v41 = vpop.permute.xlu1 %594 }
 0x22d   :  { %608 = vmatpush1.bf16.msra.mxu0 %v1577_v2  ;;  %649 = vmatpush1.bf16.msra.mxu1 %v1607_v7  ;;  %vm596_vm11 = vcmp.eq.s32.totalorder %v595_v41, 1 }
 0x22e   :  { %609 = vmatprep.subr.bf16.mxu0 %v1585_v3  ;;  %650 = vmatprep.subr.bf16.mxu1 %v1626_v10 }
 0x22f   :  { %639 = vmatprep.mubr.bf16.mxu0 %v1545_v1  ;;  %680 = vmatprep.mubr.bf16.mxu1 %v1545_v1 }
 0x231   :  { %610 = vmatpush1.bf16.msra.mxu0 %v1591_v4  ;;  %651 = vmatpush1.bf16.msra.mxu1 %v1631_v11 }
 0x232   :  { %611 = vmatprep.subr.bf16.mxu0 %v1597_v5  ;;  %652 = vmatprep.subr.bf16.mxu1 %v1648_v14 }
 0x235   :  { %612 = vmatpush1.bf16.msra.mxu0 %v1613_v8  ;;  %653 = vmatpush1.bf16.msra.mxu1 %v1655_v15 }
 0x236   :  { %613 = vmatprep.subr.bf16.mxu0 %v1620_v9  ;;  %654 = vmatprep.subr.bf16.mxu1 %v1661_v16 }
 0x239   :  { %614 = vmatpush1.bf16.msra.mxu0 %v1638_v12  ;;  %655 = vmatpush1.bf16.msra.mxu1 %v1679_v19 }
 0x23a   :  { %615 = vmatprep.subr.bf16.mxu0 %v1643_v13  ;;  %656 = vmatprep.subr.bf16.mxu1 %v1685_v20 }
 0x23d   :  { %616 = vmatpush1.bf16.msra.mxu0 %v1667_v17  ;;  %657 = vmatpush1.bf16.msra.mxu1 %v1703_v23 }
 0x23e   :  { %617 = vmatprep.subr.bf16.mxu0 %v1673_v18  ;;  %658 = vmatprep.subr.bf16.mxu1 %v1709_v24 }
 0x241   :  { %618 = vmatpush1.bf16.msra.mxu0 %v1691_v21  ;;  %659 = vmatpush1.bf16.msra.mxu1 %v1735_v29 }
 0x242   :  { %619 = vmatprep.subr.bf16.mxu0 %v1696_v22  ;;  %660 = vmatprep.subr.bf16.mxu1 %v1741_v30 }
 0x245   :  { %620 = vmatpush1.bf16.msra.mxu0 %v1721_v26  ;;  %661 = vmatpush1.bf16.msra.mxu1 %v1756_v33 }
 0x246   :  { %621 = vmatprep.subr.bf16.mxu0 %v1729_v28  ;;  %662 = vmatprep.subr.bf16.mxu1 %v1762_v34 }
 0x249   :  { %622 = vmatpush1.bf16.msra.mxu0 %v1748_v32  ;;  %663 = vmatpush1.bf16.msra.mxu1 %v1771_v36 }
 0x24a   :  { %735 = vmatprep.subr.bf16.mxu0 %v1570_v0  ;;  %776 = vmatprep.subr.bf16.mxu1 %v1602_v6 }
 0x2ff   :  { %v513_v27 = vpop.f32.mrb[8].mxu0  ;;  %v554_v31 = vpop.f32.mrb[8].mxu1 }
 0x300   :  { %v561_v35 = vadd.f32 %v513_v27, %v475_v45  ;;  %v515_v38 = vpop.f32.mrb[9].mxu0  ;;  %v556_v39 = vpop.f32.mrb[9].mxu1  ;;  %v563_v54 = vadd.f32 %v554_v31, %v477_v52 }
 0x301   :  { %v562_v40 = vadd.f32 %v515_v38, %v476_v63  ;;  %v517_v42 = vpop.f32.mrb[10].mxu0  ;;  %v558_v44 = vpop.f32.mrb[10].mxu1  ;;  %v564_v51 = vadd.f32 %v556_v39, %v478_v50 }
 0x302   :  { %v1293_v46 = vmul.f32 -1.442695, %v561_v35  ;;  %v518_v47 = vpop.f32.mrb[11].mxu0  ;;  %v559_v48 = vpop.f32.mrb[11].mxu1 }
 0x303   :  { %v1294_v49 = vmul.f32 -1.442695, %v562_v40  ;;  %v1295_v53 = vmul.f32 -1.442695, %v564_v51 }
 0x304   :  { %1417 = vpow2.f32 %v1293_v46 }
 0x305   :  { %1419 = vpow2.f32 %v1294_v49  ;;  %v1298_v49 = vld [vmem:[%s2251_s1 + $0x38] sm:$0xff] }
 0x306   :  { %1421 = vpow2.f32 %v1295_v53 }
 0x307   :  { %1423 = vtanh.f32 %v563_v54 }
 0x30e   :  { %v1418_v56 = vpop.eup %1417 }
 0x30f   :  { %v1420_v55 = vpop.eup %1419  ;;  %v568_v57 = vadd.f32 1.0, %v1418_v56 }
 0x310   :  { %v574_v59 = vadd.f32 1.0, %v1420_v55  ;;  %v1422_v25 = vpop.eup %1421 }
 0x311   :  { %1425 = vrcp.f32 %v568_v57  ;;  %v1424_v60 = vpop.eup %1423  ;;  %v581_v45 = vadd.f32 1.0, %v1422_v25  ;;  %v606_v25 = vunpack.c.h.bf16 %v1298_v49 }
 0x312   :  { %1427 = vrcp.f32 %v574_v59 }
 0x313   :  { %1429 = vrcp.f32 %v581_v45 }
 0x31b   :  { %v1426_v61 = vpop.eup %1425 }
 0x31c   :  { %v1428_v43 = vpop.eup %1427  ;;  %v585_v63 = vmul.f32 %v1426_v61, %v1424_v60  ;;  %v605_v61 = vunpack.c.l.bf16 %v1298_v49 }
 0x31d   :  { %v584_v27 = vmul.f32 %v1428_v43, %v1882_v58  ;;  %v1430_v37 = vpop.eup %1429 }
 0x31f   :  { %v586_v35 = vadd.f32 %v585_v63, %v584_v27 }
 0x321   :  { %1431 = vtanh.f32 %v586_v35  ;;  %v1933_v31 = vsel %vm596_vm11, %v586_v35, %v1882_v58  ;;  %v1297_v58 = vld [vmem:[%s2251_s1 + $0x30] sm:$0xff] }
 0x322   :  { %v604_v44 = vunpack.c.h.bf16 %v1297_v58 }
 0x32b   :  { %v1432_v38 = vpop.eup %1431 }
 0x32c   :  { %v588_v39 = vmul.f32 %v1432_v38, %v1430_v37 }
 0x32e   :  { %v1936_v40 = vsel %vm596_vm11, %v588_v39, %v1887_v62  ;;  %v603_v62 = vunpack.c.l.bf16 %v1297_v58 }
 0x32f   :  { %v599_v42 = vpack.c.bf16 %v1936_v40, %v1936_v40 }
 0x331   :  { %640 = vmatmul.mubr.bf16.vlgmr.msra.gmra.mrb[12].mxu0 %v599_v42  ;;  %681 = vmatmul.mubr.bf16.vlgmr.msra.gmra.mrb[12].mxu1 %v599_v42 }
 0x332   :  { %736 = vmatpush1.bf16.msra.mxu0 %v1577_v2  ;;  %777 = vmatpush1.bf16.msra.mxu1 %v1607_v7 }
 0x333   :  { %737 = vmatprep.subr.bf16.mxu0 %v1585_v3  ;;  %778 = vmatprep.subr.bf16.mxu1 %v1626_v10 }
 0x334   :  { %767 = vmatprep.mubr.bf16.mxu0 %v1545_v1  ;;  %808 = vmatprep.mubr.bf16.mxu1 %v1545_v1 }
 0x336   :  { %738 = vmatpush1.bf16.msra.mxu0 %v1591_v4  ;;  %779 = vmatpush1.bf16.msra.mxu1 %v1631_v11 }
 0x337   :  { %739 = vmatprep.subr.bf16.mxu0 %v1597_v5  ;;  %780 = vmatprep.subr.bf16.mxu1 %v1648_v14 }
 0x33a   :  { %740 = vmatpush1.bf16.msra.mxu0 %v1613_v8  ;;  %781 = vmatpush1.bf16.msra.mxu1 %v1655_v15 }
 0x33b   :  { %741 = vmatprep.subr.bf16.mxu0 %v1620_v9  ;;  %782 = vmatprep.subr.bf16.mxu1 %v1661_v16 }
 0x33e   :  { %742 = vmatpush1.bf16.msra.mxu0 %v1638_v12  ;;  %783 = vmatpush1.bf16.msra.mxu1 %v1679_v19 }
 0x33f   :  { %743 = vmatprep.subr.bf16.mxu0 %v1643_v13  ;;  %784 = vmatprep.subr.bf16.mxu1 %v1685_v20 }
 0x342   :  { %744 = vmatpush1.bf16.msra.mxu0 %v1667_v17  ;;  %785 = vmatpush1.bf16.msra.mxu1 %v1703_v23 }
 0x343   :  { %745 = vmatprep.subr.bf16.mxu0 %v1673_v18  ;;  %786 = vmatprep.subr.bf16.mxu1 %v1709_v24 }
 0x346   :  { %746 = vmatpush1.bf16.msra.mxu0 %v1691_v21  ;;  %787 = vmatpush1.bf16.msra.mxu1 %v1735_v29 }
 0x347   :  { %747 = vmatprep.subr.bf16.mxu0 %v1696_v22  ;;  %788 = vmatprep.subr.bf16.mxu1 %v1741_v30 }
 0x34a   :  { %748 = vmatpush1.bf16.msra.mxu0 %v1721_v26  ;;  %789 = vmatpush1.bf16.msra.mxu1 %v1756_v33 }
 0x34b   :  { %749 = vmatprep.subr.bf16.mxu0 %v1729_v28  ;;  %790 = vmatprep.subr.bf16.mxu1 %v1762_v34 }
 0x34e   :  { %750 = vmatpush1.bf16.msra.mxu0 %v1748_v32  ;;  %791 = vmatpush1.bf16.msra.mxu1 %v1771_v36 }
 0x34f   :  { %863 = vmatprep.subr.bf16.mxu0 %v1570_v0  ;;  %904 = vmatprep.subr.bf16.mxu1 %v1602_v6 }
 0x404   :  { %v641_v46 = vpop.f32.mrb[12].mxu0  ;;  %v682_v47 = vpop.f32.mrb[12].mxu1 }
 0x405   :  { %v689_v48 = vadd.f32 %v641_v46, %v603_v62  ;;  %v643_v50 = vpop.f32.mrb[13].mxu0  ;;  %v684_v51 = vpop.f32.mrb[13].mxu1  ;;  %v691_v43 = vadd.f32 %v682_v47, %v605_v61 }
 0x406   :  { %v690_v52 = vadd.f32 %v643_v50, %v604_v44  ;;  %v645_v53 = vpop.f32.mrb[14].mxu0  ;;  %v686_v54 = vpop.f32.mrb[14].mxu1  ;;  %v692_v60 = vadd.f32 %v684_v51, %v606_v25 }
 0x407   :  { %v1299_v56 = vmul.f32 -1.442695, %v689_v48  ;;  %v646_v55 = vpop.f32.mrb[15].mxu0  ;;  %v687_v57 = vpop.f32.mrb[15].mxu1 }
 0x408   :  { %v1300_v59 = vmul.f32 -1.442695, %v690_v52  ;;  %v1301_v41 = vmul.f32 -1.442695, %v692_v60  ;;  %v723_v46 = vpop.permute.xlu1 %722 }
 0x409   :  { %1433 = vpow2.f32 %v1299_v56  ;;  %vm724_vm12 = vcmp.eq.s32.totalorder %v723_v46, 1  ;;  %v2047_v46 = vld [vmem:[%s2249_s2 + $0x8] ss:$16 sps:$4 sm:$0xff]  }
 0x40a   :  { %1435 = vpow2.f32 %v1300_v59 }
 0x40b   :  { %1437 = vpow2.f32 %v1301_v41 }
 0x40c   :  { %1439 = vtanh.f32 %v691_v43 }
 0x413   :  { %v1434_v45 = vpop.eup %1433 }
 0x414   :  { %v1436_v63 = vpop.eup %1435  ;;  %v696_v27 = vadd.f32 1.0, %v1434_v45 }
 0x415   :  { %v702_v35 = vadd.f32 1.0, %v1436_v63  ;;  %v1438_v37 = vpop.eup %1437 }
 0x416   :  { %1441 = vrcp.f32 %v696_v27  ;;  %v1440_v38 = vpop.eup %1439  ;;  %v709_v62 = vadd.f32 1.0, %v1438_v37  ;;  %v851_v27 = vpop.permute.xlu0 %850 }
 0x417   :  { %1443 = vrcp.f32 %v702_v35  ;;  %vm852_vm13 = vcmp.eq.s32.totalorder %v851_v27, 1 }
 0x418   :  { %1445 = vrcp.f32 %v709_v62 }
 0x420   :  { %v1442_v39 = vpop.eup %1441 }
 0x421   :  { %v1444_v42 = vpop.eup %1443  ;;  %v713_v58 = vmul.f32 %v1442_v39, %v1440_v38 }
 0x422   :  { %v712_v44 = vmul.f32 %v1444_v42, %v1933_v31  ;;  %v1446_v49 = vpop.eup %1445 }
 0x424   :  { %v714_v48 = vadd.f32 %v713_v58, %v712_v44  ;;  %v2041_v44 = vld [vmem:[%s2249_s2] ss:$16 sps:$4 sm:$0xff]  }
 0x426   :  { %1447 = vtanh.f32 %v714_v48  ;;  %v1982_v47 = vsel %vm724_vm12, %v714_v48, %v1933_v31  ;;  %v2053_v48 = vld [vmem:[%s2249_s2 + $0x24] ss:$16 sps:$4 sm:$0xff]  }
 0x430   :  { %v1448_v50 = vpop.eup %1447 }
 0x431   :  { %v716_v51 = vmul.f32 %v1448_v50, %v1446_v49  ;;  %v2067_v49 = vld [vmem:[%s2249_s2 + $0x20] ss:$16 sps:$4 sm:$0xff]   ;;  %v2073_v50 = vld [vmem:[%s2249_s2 + $0x28] ss:$16 sps:$4 sm:$0xff]  }
 0x433   :  { %v1985_v52 = vsel %vm724_vm12, %v716_v51, %v1936_v40  ;;  %v2079_v51 = vld [vmem:[%s2249_s2 + $0x44] ss:$16 sps:$4 sm:$0xff]  }
 0x434   :  { %v727_v53 = vpack.c.bf16 %v1985_v52, %v1985_v52 }
 0x436   :  { %768 = vmatmul.mubr.bf16.vlgmr.msra.gmra.mrb[16].mxu0 %v727_v53  ;;  %809 = vmatmul.mubr.bf16.vlgmr.msra.gmra.mrb[16].mxu1 %v727_v53  ;;  %v2091_v53 = vld [vmem:[%s2249_s2 + $0x40] ss:$16 sps:$4 sm:$0xff]  }
 0x437   :  { %864 = vmatpush1.bf16.msra.mxu0 %v1577_v2  ;;  %905 = vmatpush1.bf16.msra.mxu1 %v1607_v7  ;;  %v1303_v2 = vld [vmem:[%s2251_s1 + $0x40] sm:$0xff] }
 0x438   :  { %865 = vmatprep.subr.bf16.mxu0 %v1585_v3  ;;  %906 = vmatprep.subr.bf16.mxu1 %v1626_v10  ;;  %v731_v3 = vunpack.c.l.bf16 %v1303_v2 }
 0x439   :  { %895 = vmatprep.mubr.bf16.mxu0 %v1545_v1  ;;  %936 = vmatprep.mubr.bf16.mxu1 %v1545_v1 }
 0x43b   :  { %866 = vmatpush1.bf16.msra.mxu0 %v1591_v4  ;;  %907 = vmatpush1.bf16.msra.mxu1 %v1631_v11  ;;  %v732_v4 = vunpack.c.h.bf16 %v1303_v2  ;;  %v2097_v2 = vld [vmem:[%s2249_s2 + $0x48] ss:$16 sps:$4 sm:$0xff]  }
 0x43c   :  { %867 = vmatprep.subr.bf16.mxu0 %v1597_v5  ;;  %908 = vmatprep.subr.bf16.mxu1 %v1648_v14 }
 0x43f   :  { %868 = vmatpush1.bf16.msra.mxu0 %v1613_v8  ;;  %909 = vmatpush1.bf16.msra.mxu1 %v1655_v15 }
 0x440   :  { %869 = vmatprep.subr.bf16.mxu0 %v1620_v9  ;;  %910 = vmatprep.subr.bf16.mxu1 %v1661_v16  ;;  %v1304_v9 = vld [vmem:[%s2251_s1 + $0x48] sm:$0xff] }
 0x441   :  { %v733_v31 = vunpack.c.l.bf16 %v1304_v9 }
 0x443   :  { %870 = vmatpush1.bf16.msra.mxu0 %v1638_v12  ;;  %911 = vmatpush1.bf16.msra.mxu1 %v1679_v19 }
 0x444   :  { %871 = vmatprep.subr.bf16.mxu0 %v1643_v13  ;;  %912 = vmatprep.subr.bf16.mxu1 %v1685_v20 }
 0x447   :  { %872 = vmatpush1.bf16.msra.mxu0 %v1667_v17  ;;  %913 = vmatpush1.bf16.msra.mxu1 %v1703_v23  ;;  %v734_v17 = vunpack.c.h.bf16 %v1304_v9 }
 0x448   :  { %873 = vmatprep.subr.bf16.mxu0 %v1673_v18  ;;  %914 = vmatprep.subr.bf16.mxu1 %v1709_v24 }
 0x44b   :  { %874 = vmatpush1.bf16.msra.mxu0 %v1691_v21  ;;  %915 = vmatpush1.bf16.msra.mxu1 %v1735_v29 }
 0x44c   :  { %875 = vmatprep.subr.bf16.mxu0 %v1696_v22  ;;  %916 = vmatprep.subr.bf16.mxu1 %v1741_v30 }
 0x44f   :  { %876 = vmatpush1.bf16.msra.mxu0 %v1721_v26  ;;  %917 = vmatpush1.bf16.msra.mxu1 %v1756_v33 }
 0x450   :  { %877 = vmatprep.subr.bf16.mxu0 %v1729_v28  ;;  %918 = vmatprep.subr.bf16.mxu1 %v1762_v34 }
 0x453   :  { %878 = vmatpush1.bf16.msra.mxu0 %v1748_v32  ;;  %919 = vmatpush1.bf16.msra.mxu1 %v1771_v36 }
 0x454   :  { %991 = vmatprep.subr.bf16.mxu0 %v1570_v0  ;;  %1032 = vmatprep.subr.bf16.mxu1 %v1602_v6 }
 0x509   :  { %v769_v5 = vpop.f32.mrb[16].mxu0  ;;  %v810_v7 = vpop.f32.mrb[16].mxu1 }
 0x50a   :  { %v817_v8 = vadd.f32 %v769_v5, %v731_v3  ;;  %v771_v10 = vpop.f32.mrb[17].mxu0  ;;  %v812_v11 = vpop.f32.mrb[17].mxu1  ;;  %v819_v54 = vadd.f32 %v810_v7, %v733_v31  ;;  %v2103_v3 = vld [vmem:[%s2249_s2 + $0x64] ss:$16 sps:$4 sm:$0xff]   ;;  %v2115_v5 = vld [vmem:[%s2249_s2 + $0x60] ss:$16 sps:$4 sm:$0xff]  }
 0x50b   :  { %v818_v12 = vadd.f32 %v771_v10, %v732_v4  ;;  %v773_v13 = vpop.f32.mrb[18].mxu0  ;;  %v814_v0 = vpop.f32.mrb[18].mxu1  ;;  %v820_v18 = vadd.f32 %v812_v11, %v734_v17  ;;  %v2109_v4 = vld [vmem:[%s2249_s2 + $0x6c] ss:$16 sps:$4 sm:$0xff]   ;;  %v2122_v7 = vld [vmem:[%s2249_s2 + $0x84] ss:$16 sps:$4 sm:$0xff]  }
 0x50c   :  { %v1305_v14 = vmul.f32 -1.442695, %v817_v8  ;;  %v774_v6 = vpop.f32.mrb[19].mxu0  ;;  %v815_v15 = vpop.f32.mrb[19].mxu1  ;;  %v2129_v8 = vld [vmem:[%s2249_s2 + $0x80] ss:$16 sps:$4 sm:$0xff]  }
 0x50d   :  { %v1306_v16 = vmul.f32 -1.442695, %v818_v12  ;;  %v1307_v40 = vmul.f32 -1.442695, %v820_v18 }
 0x50e   :  { %1449 = vpow2.f32 %v1305_v14 }
 0x50f   :  { %1451 = vpow2.f32 %v1306_v16 }
 0x510   :  { %1453 = vpow2.f32 %v1307_v40 }
 0x511   :  { %1455 = vtanh.f32 %v819_v54 }
 0x518   :  { %v1450_v56 = vpop.eup %1449 }
 0x519   :  { %v1452_v55 = vpop.eup %1451  ;;  %v824_v57 = vadd.f32 1.0, %v1450_v56 }
 0x51a   :  { %v830_v59 = vadd.f32 1.0, %v1452_v55  ;;  %v1454_v25 = vpop.eup %1453 }
 0x51b   :  { %1457 = vrcp.f32 %v824_v57  ;;  %v1456_v60 = vpop.eup %1455  ;;  %v837_v45 = vadd.f32 1.0, %v1454_v25 }
 0x51c   :  { %1459 = vrcp.f32 %v830_v59 }
 0x51d   :  { %1461 = vrcp.f32 %v837_v45 }
 0x525   :  { %v1458_v61 = vpop.eup %1457 }
 0x526   :  { %v1460_v41 = vpop.eup %1459  ;;  %v841_v43 = vmul.f32 %v1458_v61, %v1456_v60  ;;  %v979_v61 = vpop.permute.xlu1 %978 }
 0x527   :  { %v840_v63 = vmul.f32 %v1460_v41, %v1982_v47  ;;  %v1462_v38 = vpop.eup %1461  ;;  %vm980_vm14 = vcmp.eq.s32.totalorder %v979_v61, 1 }
 0x529   :  { %v842_v35 = vadd.f32 %v841_v43, %v840_v63 }
 0x52b   :  { %1463 = vtanh.f32 %v842_v35  ;;  %v2031_v37 = vsel %vm852_vm13, %v842_v35, %v1982_v47  ;;  %v2059_v47 = vld [vmem:[%s2249_s2 + $0x2c] ss:$16 sps:$4 sm:$0xff]  }
 0x535   :  { %v1464_v39 = vpop.eup %1463 }
 0x536   :  { %v844_v42 = vmul.f32 %v1464_v39, %v1462_v38  ;;  %v1533_v39 = vld [vmem:[%s2249_s2 + $0x88] ss:$16 sps:$4 sm:$0xff]  }
 0x538   :  { %v2034_v58 = vsel %vm852_vm13, %v844_v42, %v1985_v52  ;;  %v2085_v52 = vld [vmem:[%s2249_s2 + $0x4c] ss:$16 sps:$4 sm:$0xff]  }
 0x539   :  { %v855_v62 = vpack.c.bf16 %v2034_v58, %v2034_v58  ;;  %v1534_v42 = vld [vmem:[%s2249_s2 + $0xac] ss:$16 sps:$4 sm:$0xff]  }
 0x53b   :  { %896 = vmatmul.mubr.bf16.vlgmr.msra.gmra.mrb[20].mxu0 %v855_v62  ;;  %937 = vmatmul.mubr.bf16.vlgmr.msra.gmra.mrb[20].mxu1 %v855_v62  ;;  %v1536_v62 = vld [vmem:[%s2249_s2 + $0xa8] ss:$16 sps:$4 sm:$0xff]  }
 0x53c   :  { %992 = vmatpush1.bf16.msra.mxu0 %v2041_v44  ;;  %1033 = vmatpush1.bf16.msra.mxu1 %v2047_v46 }
 0x53d   :  { %993 = vmatprep.subr.bf16.mxu0 %v2053_v48  ;;  %1034 = vmatprep.subr.bf16.mxu1 %v2059_v47 }
 0x53e   :  { %1023 = vmatprep.mubr.bf16.mxu0 %v1545_v1  ;;  %1064 = vmatprep.mubr.bf16.mxu1 %v1545_v1 }
 0x540   :  { %994 = vmatpush1.bf16.msra.mxu0 %v2067_v49  ;;  %1035 = vmatpush1.bf16.msra.mxu1 %v2073_v50 }
 0x541   :  { %995 = vmatprep.subr.bf16.mxu0 %v2079_v51  ;;  %1036 = vmatprep.subr.bf16.mxu1 %v2085_v52 }
 0x544   :  { %996 = vmatpush1.bf16.msra.mxu0 %v2091_v53  ;;  %1037 = vmatpush1.bf16.msra.mxu1 %v2097_v2 }
 0x545   :  { %997 = vmatprep.subr.bf16.mxu0 %v2103_v3  ;;  %1038 = vmatprep.subr.bf16.mxu1 %v2109_v4 }
 0x548   :  { %998 = vmatpush1.bf16.msra.mxu0 %v2115_v5  ;;  %1039 = vmatpush1.bf16.msra.mxu1 %v1679_v19  ;;  %v2136_v19 = vld [vmem:[%s2249_s2 + $0xa4] ss:$16 sps:$4 sm:$0xff]  }
 0x549   :  { %999 = vmatprep.subr.bf16.mxu0 %v2122_v7  ;;  %1040 = vmatprep.subr.bf16.mxu1 %v1685_v20  ;;  %v1529_v20 = vld [vmem:[%s2249_s2 + $0x4] ss:$16 sps:$4 sm:$0xff]  }
 0x54c   :  { %1000 = vmatpush1.bf16.msra.mxu0 %v2129_v8  ;;  %1041 = vmatpush1.bf16.msra.mxu1 %v1703_v23 }
 0x54d   :  { %1001 = vmatprep.subr.bf16.mxu0 %v2136_v19  ;;  %1042 = vmatprep.subr.bf16.mxu1 %v1709_v24 }
 0x550   :  { %1002 = vmatpush1.bf16.msra.mxu0 %v1691_v21  ;;  %1043 = vmatpush1.bf16.msra.mxu1 %v1735_v29  ;;  %v1530_v21 = vld [vmem:[%s2249_s2 + $0xc] ss:$16 sps:$4 sm:$0xff]  }
 0x551   :  { %1003 = vmatprep.subr.bf16.mxu0 %v1696_v22  ;;  %1044 = vmatprep.subr.bf16.mxu1 %v1741_v30  ;;  %v1309_v22 = vld [vmem:[%s2251_s1 + $0x50] sm:$0xff]  ;;  %v1310_v30 = vld [vmem:[%s2251_s1 + $0x58] sm:$0xff] }
 0x552   :  { %v859_v23 = vunpack.c.l.bf16 %v1309_v22  ;;  %v860_v24 = vunpack.c.h.bf16 %v1309_v22  ;;  %v862_v0 = vunpack.c.h.bf16 %v1310_v30  ;;  %v861_v6 = vunpack.c.l.bf16 %v1310_v30 }
 0x554   :  { %1004 = vmatpush1.bf16.msra.mxu0 %v1721_v26  ;;  %1045 = vmatpush1.bf16.msra.mxu1 %v1756_v33 }
 0x555   :  { %1005 = vmatprep.subr.bf16.mxu0 %v1729_v28  ;;  %1046 = vmatprep.subr.bf16.mxu1 %v1762_v34 }
 0x558   :  { %1006 = vmatpush1.bf16.msra.mxu0 %v1748_v32  ;;  %1047 = vmatpush1.bf16.msra.mxu1 %v1771_v36 }
 0x559   :  { %1119 = vmatprep.subr.bf16.mxu0 %v1529_v20  ;;  %1160 = vmatprep.subr.bf16.mxu1 %v1530_v21 }
 0x60e   :  { %v897_v26 = vpop.f32.mrb[20].mxu0  ;;  %v938_v28 = vpop.f32.mrb[20].mxu1 }
 0x60f   :  { %v945_v29 = vadd.f32 %v897_v26, %v859_v23  ;;  %v899_v32 = vpop.f32.mrb[21].mxu0  ;;  %v940_v33 = vpop.f32.mrb[21].mxu1  ;;  %v947_v16 = vadd.f32 %v938_v28, %v861_v6 }
 0x610   :  { %v946_v34 = vadd.f32 %v899_v32, %v860_v24  ;;  %v901_v36 = vpop.f32.mrb[22].mxu0  ;;  %v942_v9 = vpop.f32.mrb[22].mxu1  ;;  %v948_v14 = vadd.f32 %v940_v33, %v862_v0 }
 0x611   :  { %v1311_v10 = vmul.f32 -1.442695, %v945_v29  ;;  %v902_v11 = vpop.f32.mrb[23].mxu0  ;;  %v943_v12 = vpop.f32.mrb[23].mxu1 }
 0x612   :  { %v1312_v13 = vmul.f32 -1.442695, %v946_v34  ;;  %v1313_v15 = vmul.f32 -1.442695, %v948_v14 }
 0x613   :  { %1465 = vpow2.f32 %v1311_v10 }
 0x614   :  { %1467 = vpow2.f32 %v1312_v13 }
 0x615   :  { %1469 = vpow2.f32 %v1313_v15 }
 0x616   :  { %1471 = vtanh.f32 %v947_v16 }
 0x61d   :  { %v1466_v17 = vpop.eup %1465 }
 0x61e   :  { %v1468_v18 = vpop.eup %1467  ;;  %v952_v31 = vadd.f32 1.0, %v1466_v17  ;;  %v1107_v17 = vpop.permute.xlu0 %1106 }
 0x61f   :  { %v958_v40 = vadd.f32 1.0, %v1468_v18  ;;  %v1470_v54 = vpop.eup %1469  ;;  %vm1108_vm15 = vcmp.eq.s32.totalorder %v1107_v17, 1 }
 0x620   :  { %1473 = vrcp.f32 %v952_v31  ;;  %v1472_v56 = vpop.eup %1471  ;;  %v965_v25 = vadd.f32 1.0, %v1470_v54 }
 0x621   :  { %1475 = vrcp.f32 %v958_v40 }
 0x622   :  { %1477 = vrcp.f32 %v965_v25  ;;  %v1321_v25 = vld [vmem:[%s2251_s1 + $0x70] sm:$0xff] }
 0x623   :  { %v1116_v61 = vunpack.c.h.bf16 %v1321_v25 }
 0x62a   :  { %v1474_v55 = vpop.eup %1473 }
 0x62b   :  { %v1476_v57 = vpop.eup %1475  ;;  %v969_v59 = vmul.f32 %v1474_v55, %v1472_v56 }
 0x62c   :  { %v968_v60 = vmul.f32 %v1476_v57, %v2031_v37  ;;  %v1478_v45 = vpop.eup %1477 }
 0x62e   :  { %v970_v41 = vadd.f32 %v969_v59, %v968_v60  ;;  %v1115_v60 = vunpack.c.l.bf16 %v1321_v25 }
 0x630   :  { %1479 = vtanh.f32 %v970_v41  ;;  %v2164_v43 = vsel %vm980_vm14, %v970_v41, %v2031_v37  ;;  %v1532_v37 = vld [vmem:[%s2249_s2 + $0x8c] ss:$16 sps:$4 sm:$0xff]  }
 0x63a   :  { %v1480_v63 = vpop.eup %1479 }
 0x63b   :  { %v972_v27 = vmul.f32 %v1480_v63, %v1478_v45 }
 0x63d   :  { %v2167_v35 = vsel %vm980_vm14, %v972_v27, %v2034_v58  ;;  %v1535_v58 = vld [vmem:[%s2249_s2 + $0xa0] ss:$16 sps:$4 sm:$0xff]  }
 0x63e   :  { %v983_v38 = vpack.c.bf16 %v2167_v35, %v2167_v35 }
 0x640   :  { %1024 = vmatmul.mubr.bf16.vlgmr.msra.gmra.mrb[24].mxu0 %v983_v38  ;;  %1065 = vmatmul.mubr.bf16.vlgmr.msra.gmra.mrb[24].mxu1 %v983_v38 }
 0x641   :  { %1120 = vmatpush1.bf16.msra.mxu0 %v2041_v44  ;;  %1161 = vmatpush1.bf16.msra.mxu1 %v2047_v46  ;;  %v1537_v44 = vld [vmem:[%s2249_s2 + $0xc4] ss:$16 sps:$4 sm:$0xff]   ;;  %v1538_v46 = vld [vmem:[%s2249_s2 + $0xcc] ss:$16 sps:$4 sm:$0xff]  }
 0x642   :  { %1121 = vmatprep.subr.bf16.mxu0 %v2053_v48  ;;  %1162 = vmatprep.subr.bf16.mxu1 %v2059_v47  ;;  %v1539_v48 = vld [vmem:[%s2249_s2 + $0xc0] ss:$16 sps:$4 sm:$0xff]   ;;  %v1540_v47 = vld [vmem:[%s2249_s2 + $0xc8] ss:$16 sps:$4 sm:$0xff]  }
 0x643   :  { %1151 = vmatprep.mubr.bf16.mxu0 %v1545_v1  ;;  %1192 = vmatprep.mubr.bf16.mxu1 %v1545_v1  ;;  %v1531_v1 = vld [vmem:[%s2249_s2 + $0x68] ss:$16 sps:$4 sm:$0xff]  }
 0x645   :  { %1122 = vmatpush1.bf16.msra.mxu0 %v2067_v49  ;;  %1163 = vmatpush1.bf16.msra.mxu1 %v2073_v50  ;;  %v1541_v49 = vld [vmem:[%s2249_s2 + $0xe4] ss:$16 sps:$4 sm:$0xff]   ;;  %v1542_v50 = vld [vmem:[%s2249_s2 + $0xec] ss:$16 sps:$4 sm:$0xff]  }
 0x646   :  { %1123 = vmatprep.subr.bf16.mxu0 %v2079_v51  ;;  %1164 = vmatprep.subr.bf16.mxu1 %v2085_v52  ;;  %v1543_v51 = vld [vmem:[%s2249_s2 + $0xe0] ss:$16 sps:$4 sm:$0xff]   ;;  %v1544_v52 = vld [vmem:[%s2249_s2 + $0xe8] ss:$16 sps:$4 sm:$0xff]  }
 0x649   :  { %1124 = vmatpush1.bf16.msra.mxu0 %v2091_v53  ;;  %1165 = vmatpush1.bf16.msra.mxu1 %v2097_v2  ;;  %v1315_v53 = vld [vmem:[%s2251_s1 + $0x60] sm:$0xff] }
 0x64a   :  { %1125 = vmatprep.subr.bf16.mxu0 %v2103_v3  ;;  %1166 = vmatprep.subr.bf16.mxu1 %v2109_v4  ;;  %v987_v2 = vunpack.c.l.bf16 %v1315_v53  ;;  %v988_v3 = vunpack.c.h.bf16 %v1315_v53 }
 0x64d   :  { %1126 = vmatpush1.bf16.msra.mxu0 %v2115_v5  ;;  %1167 = vmatpush1.bf16.msra.mxu1 %v1531_v1 }
 0x64e   :  { %1127 = vmatprep.subr.bf16.mxu0 %v2122_v7  ;;  %1168 = vmatprep.subr.bf16.mxu1 %v1532_v37 }
 0x651   :  { %1128 = vmatpush1.bf16.msra.mxu0 %v2129_v8  ;;  %1169 = vmatpush1.bf16.msra.mxu1 %v1533_v39  ;;  %v1316_v8 = vld [vmem:[%s2251_s1 + $0x68] sm:$0xff] }
 0x652   :  { %1129 = vmatprep.subr.bf16.mxu0 %v2136_v19  ;;  %1170 = vmatprep.subr.bf16.mxu1 %v1534_v42  ;;  %v990_v30 = vunpack.c.h.bf16 %v1316_v8  ;;  %v989_v33 = vunpack.c.l.bf16 %v1316_v8 }
 0x655   :  { %1130 = vmatpush1.bf16.msra.mxu0 %v1535_v58  ;;  %1171 = vmatpush1.bf16.msra.mxu1 %v1536_v62 }
 0x656   :  { %1131 = vmatprep.subr.bf16.mxu0 %v1537_v44  ;;  %1172 = vmatprep.subr.bf16.mxu1 %v1538_v46 }
 0x659   :  { %1132 = vmatpush1.bf16.msra.mxu0 %v1539_v48  ;;  %1173 = vmatpush1.bf16.msra.mxu1 %v1540_v47 }
 0x65a   :  { %1133 = vmatprep.subr.bf16.mxu0 %v1541_v49  ;;  %1174 = vmatprep.subr.bf16.mxu1 %v1542_v50 }
 0x65d   :  { %1134 = vmatpush1.bf16.msra.mxu0 %v1543_v51  ;;  %1175 = vmatpush1.bf16.msra.mxu1 %v1544_v52 }
 0x713   :  { %v1025_v4 = vpop.f32.mrb[24].mxu0  ;;  %v1066_v5 = vpop.f32.mrb[24].mxu1 }
 0x714   :  { %v1073_v7 = vadd.f32 %v1025_v4, %v987_v2  ;;  %v1027_v19 = vpop.f32.mrb[25].mxu0  ;;  %v1068_v20 = vpop.f32.mrb[25].mxu1  ;;  %v1075_v36 = vadd.f32 %v1066_v5, %v989_v33 }
 0x715   :  { %v1074_v21 = vadd.f32 %v1027_v19, %v988_v3  ;;  %v1029_v22 = vpop.f32.mrb[26].mxu0  ;;  %v1070_v23 = vpop.f32.mrb[26].mxu1  ;;  %v1076_v32 = vadd.f32 %v1068_v20, %v990_v30 }
 0x716   :  { %v1317_v24 = vmul.f32 -1.442695, %v1073_v7  ;;  %v1030_v26 = vpop.f32.mrb[27].mxu0  ;;  %v1071_v28 = vpop.f32.mrb[27].mxu1 }
 0x717   :  { %v1318_v29 = vmul.f32 -1.442695, %v1074_v21  ;;  %v1319_v34 = vmul.f32 -1.442695, %v1076_v32  ;;  %v1235_v22 = vpop.permute.xlu1 %1234 }
 0x718   :  { %1481 = vpow2.f32 %v1317_v24  ;;  %vm1236_vm0 = vcmp.eq.s32.totalorder %v1235_v22, 1 }
 0x719   :  { %1483 = vpow2.f32 %v1318_v29 }
 0x71a   :  { %1485 = vpow2.f32 %v1319_v34 }
 0x71b   :  { %1487 = vtanh.f32 %v1075_v36 }
 0x722   :  { %v1482_v9 = vpop.eup %1481 }
 0x723   :  { %v1484_v10 = vpop.eup %1483  ;;  %v1080_v11 = vadd.f32 1.0, %v1482_v9 }
 0x724   :  { %v1086_v12 = vadd.f32 1.0, %v1484_v10  ;;  %v1486_v13 = vpop.eup %1485 }
 0x725   :  { %1489 = vrcp.f32 %v1080_v11  ;;  %v1488_v0 = vpop.eup %1487  ;;  %v1093_v16 = vadd.f32 1.0, %v1486_v13 }
 0x726   :  { %1491 = vrcp.f32 %v1086_v12 }
 0x727   :  { %1493 = vrcp.f32 %v1093_v16 }
 0x72f   :  { %v1490_v14 = vpop.eup %1489 }
 0x730   :  { %v1492_v6 = vpop.eup %1491  ;;  %v1097_v15 = vmul.f32 %v1490_v14, %v1488_v0 }
 0x731   :  { %v1096_v18 = vmul.f32 %v1492_v6, %v2164_v43  ;;  %v1494_v54 = vpop.eup %1493 }
 0x733   :  { %v1098_v31 = vadd.f32 %v1097_v15, %v1096_v18 }
 0x735   :  { %1495 = vtanh.f32 %v1098_v31  ;;  %v1110_v40 = vsel %vm1108_vm15, %v1098_v31, %v2164_v43  ;;  %v1322_v43 = vld [vmem:[%s2251_s1 + $0x78] sm:$0xff] }
 0x736   :  { %v1118_v44 = vunpack.c.h.bf16 %v1322_v43  ;;  %v1117_v48 = vunpack.c.l.bf16 %v1322_v43 }
 0x73f   :  { %v1496_v56 = vpop.eup %1495 }
 0x740   :  { %v1100_v55 = vmul.f32 %v1496_v56, %v1494_v54 }
 0x742   :  { %v1109_v57 = vsel %vm1108_vm15, %v1100_v55, %v2167_v35 }
 0x743   :  { %v1111_v59 = vpack.c.bf16 %v1109_v57, %v1109_v57 }
 0x745   :  { %1152 = vmatmul.mubr.bf16.vlgmr.msra.gmra.mrb[28].mxu0 %v1111_v59  ;;  %1193 = vmatmul.mubr.bf16.vlgmr.msra.gmra.mrb[28].mxu1 %v1111_v59 }
 0x818   :  { %v1153_v41 = vpop.f32.mrb[28].mxu0  ;;  %v1194_v45 = vpop.f32.mrb[28].mxu1 }
 0x819   :  { %v1201_v63 = vadd.f32 %v1153_v41, %v1115_v60  ;;  %v1155_v27 = vpop.f32.mrb[29].mxu0  ;;  %v1196_v38 = vpop.f32.mrb[29].mxu1  ;;  %v1203_v49 = vadd.f32 %v1194_v45, %v1117_v48 }
 0x81a   :  { %v1202_v1 = vadd.f32 %v1155_v27, %v1116_v61  ;;  %v1157_v35 = vpop.f32.mrb[30].mxu0  ;;  %v1198_v37 = vpop.f32.mrb[30].mxu1  ;;  %v1204_v46 = vadd.f32 %v1196_v38, %v1118_v44 }
 0x81b   :  { %v1323_v39 = vmul.f32 -1.442695, %v1201_v63  ;;  %v1158_v42 = vpop.f32.mrb[31].mxu0  ;;  %v1199_v58 = vpop.f32.mrb[31].mxu1 }
 0x81c   :  { %v1324_v62 = vmul.f32 -1.442695, %v1202_v1  ;;  %v1325_v47 = vmul.f32 -1.442695, %v1204_v46 }
 0x81d   :  { %1497 = vpow2.f32 %v1323_v39 }
 0x81e   :  { %1499 = vpow2.f32 %v1324_v62 }
 0x81f   :  { %1501 = vpow2.f32 %v1325_v47 }
 0x820   :  { %1503 = vtanh.f32 %v1203_v49 }
 0x827   :  { %v1498_v50 = vpop.eup %1497 }
 0x828   :  { %v1500_v51 = vpop.eup %1499  ;;  %v1208_v52 = vadd.f32 1.0, %v1498_v50 }
 0x829   :  { %v1214_v53 = vadd.f32 1.0, %v1500_v51  ;;  %v1502_v2 = vpop.eup %1501 }
 0x82a   :  { %1505 = vrcp.f32 %v1208_v52  ;;  %v1504_v3 = vpop.eup %1503  ;;  %v1221_v8 = vadd.f32 1.0, %v1502_v2 }
 0x82b   :  { %1507 = vrcp.f32 %v1214_v53 }
 0x82c   :  { %1509 = vrcp.f32 %v1221_v8 }
 0x834   :  { %v1506_v4 = vpop.eup %1505 }
 0x835   :  { %v1508_v5 = vpop.eup %1507  ;;  %v1225_v7 = vmul.f32 %v1506_v4, %v1504_v3 }
 0x836   :  { %v1224_v19 = vmul.f32 %v1508_v5, %v1110_v40  ;;  %v1510_v21 = vpop.eup %1509 }
 0x838   :  { %v1226_v20 = vadd.f32 %v1225_v7, %v1224_v19 }
 0x83a   :  { %1511 = vtanh.f32 %v1226_v20 }
 0x844   :  { %v1512_v23 = vpop.eup %1511 }
 0x845   :  { %v1228_v24 = vmul.f32 %v1512_v23, %v1510_v21 }
 0x847   :  { %v1237_v26 = vsel %vm1236_vm0, %v1228_v24, %v1109_v57 }
 0x848   :  { %1244 = vst [vmem:[%s2252_s3] sm:$0xff] %v1237_v26 }

// kernel: sentiment_forward.2
= control target key start
LH: loop header
LB: loop body
LE: loop exit
PB: predicated region body
PF: predicated region fallthrough
CT: control target
= control target key end

     0   :  { %s2924_s3 = inlined_call_operand.vmem [shape: bf16[640,512], index: 3, kind: input, shape index: {}]   ;;  %s2925_s1 = inlined_call_operand.vmem [shape: bf16[64,256], index: 1, kind: input, shape index: {}]   ;;  %s2926_s0 = inlined_call_operand.vmem [shape: bf16[64,128], index: 0, kind: input, shape index: {}]   ;;  %s2927_s2 = inlined_call_operand.vmem [shape: bf16[64,256], index: 2, kind: input, shape index: {}]   ;;  %s2928_s4 = inlined_call_operand.vmem [shape: f32[1,512], index: 4, kind: input, shape index: {}]   ;;  %s2929_s5 = inlined_call_operand.vmem [shape: bf16[64,512], index: 5, kind: output, shape index: {}]  }
   0x1   :  { %v1994_v0 = vld [vmem:[%s2924_s3 + $0x4] ss:$16 sps:$4 sm:$0xff]   ;;  %v1996_v1 = vld [vmem:[%s2924_s3 + $0xc] ss:$16 sps:$4 sm:$0xff]   ;;  %v1998_v2 = vld [vmem:[%s2924_s3] ss:$16 sps:$4 sm:$0xff]  }
   0x2   :  { %1131 = vmatprep.subr.bf16.mxu0 %v1994_v0  ;;  %v1999_v3 = vld [vmem:[%s2924_s3 + $0x8] ss:$16 sps:$4 sm:$0xff]   ;;  %1350 = vmatprep.subr.bf16.mxu1 %v1996_v1  ;;  %v2000_v4 = vld [vmem:[%s2924_s3 + $0x24] ss:$16 sps:$4 sm:$0xff]   ;;  %v2002_v5 = vld [vmem:[%s2924_s3 + $0x2c] ss:$16 sps:$4 sm:$0xff]  }
   0x3   :  { %1132 = vmatpush1.bf16.msra.mxu0 %v1998_v2  ;;  %1351 = vmatpush1.bf16.msra.mxu1 %v1999_v3  ;;  %v2004_v6 = vld [vmem:[%s2924_s3 + $0x20] ss:$16 sps:$4 sm:$0xff]   ;;  %v2005_v7 = vld [vmem:[%s2924_s3 + $0x28] ss:$16 sps:$4 sm:$0xff]   ;;  %v2006_v8 = vld [vmem:[%s2924_s3 + $0x44] ss:$16 sps:$4 sm:$0xff]  }
   0x4   :  { %1133 = vmatprep.subr.bf16.mxu0 %v2000_v4  ;;  %1352 = vmatprep.subr.bf16.mxu1 %v2002_v5  ;;  %v2008_v9 = vld [vmem:[%s2924_s3 + $0x4c] ss:$16 sps:$4 sm:$0xff]   ;;  %v2010_v10 = vld [vmem:[%s2924_s3 + $0x40] ss:$16 sps:$4 sm:$0xff]   ;;  %v2011_v11 = vld [vmem:[%s2924_s3 + $0x48] ss:$16 sps:$4 sm:$0xff]  }
   0x5   :  { %v2012_v12 = vld [vmem:[%s2924_s3 + $0x64] ss:$16 sps:$4 sm:$0xff]   ;;  %v2014_v13 = vld [vmem:[%s2924_s3 + $0x6c] ss:$16 sps:$4 sm:$0xff]   ;;  %v2016_v14 = vld [vmem:[%s2924_s3 + $0x60] ss:$16 sps:$4 sm:$0xff]  }
   0x6   :  { %v2017_v15 = vld [vmem:[%s2924_s3 + $0x68] ss:$16 sps:$4 sm:$0xff]   ;;  %v2018_v16 = vld [vmem:[%s2924_s3 + $0x84] ss:$16 sps:$4 sm:$0xff]   ;;  %v2020_v17 = vld [vmem:[%s2924_s3 + $0x8c] ss:$16 sps:$4 sm:$0xff]  }
   0x7   :  { %1134 = vmatpush1.bf16.msra.mxu0 %v2004_v6  ;;  %1353 = vmatpush1.bf16.msra.mxu1 %v2005_v7  ;;  %v2022_v18 = vld [vmem:[%s2924_s3 + $0x80] ss:$16 sps:$4 sm:$0xff]   ;;  %v2023_v19 = vld [vmem:[%s2924_s3 + $0x88] ss:$16 sps:$4 sm:$0xff]   ;;  %v2024_v20 = vld [vmem:[%s2924_s3 + $0xa4] ss:$16 sps:$4 sm:$0xff]  }
   0x8   :  { %1135 = vmatprep.subr.bf16.mxu0 %v2006_v8  ;;  %1354 = vmatprep.subr.bf16.mxu1 %v2008_v9  ;;  %v2026_v21 = vld [vmem:[%s2924_s3 + $0xac] ss:$16 sps:$4 sm:$0xff]   ;;  %v2028_v22 = vld [vmem:[%s2924_s3 + $0xa0] ss:$16 sps:$4 sm:$0xff]   ;;  %v2029_v23 = vld [vmem:[%s2924_s3 + $0xa8] ss:$16 sps:$4 sm:$0xff]  }
   0x9   :  { %v2030_v24 = vld [vmem:[%s2924_s3 + $0xc4] ss:$16 sps:$4 sm:$0xff]   ;;  %v2032_v25 = vld [vmem:[%s2924_s3 + $0xcc] ss:$16 sps:$4 sm:$0xff]   ;;  %v2034_v26 = vld [vmem:[%s2924_s3 + $0xc0] ss:$16 sps:$4 sm:$0xff]  }
   0xa   :  { %v2035_v27 = vld [vmem:[%s2924_s3 + $0xc8] ss:$16 sps:$4 sm:$0xff]   ;;  %v2036_v28 = vld [vmem:[%s2924_s3 + $0xe4] ss:$16 sps:$4 sm:$0xff]   ;;  %v2038_v29 = vld [vmem:[%s2924_s3 + $0xec] ss:$16 sps:$4 sm:$0xff]  }
   0xb   :  { %1136 = vmatpush1.bf16.msra.mxu0 %v2010_v10  ;;  %1355 = vmatpush1.bf16.msra.mxu1 %v2011_v11  ;;  %v2040_v30 = vld [vmem:[%s2924_s3 + $0xe0] ss:$16 sps:$4 sm:$0xff]   ;;  %v2041_v31 = vld [vmem:[%s2924_s3 + $0xe8] ss:$16 sps:$4 sm:$0xff]   ;;  %v2042_v32 = vld [vmem:[%s2924_s3 + $0x104] ss:$16 sps:$4 sm:$0xff]  }
   0xc   :  { %1137 = vmatprep.subr.bf16.mxu0 %v2012_v12  ;;  %1356 = vmatprep.subr.bf16.mxu1 %v2014_v13  ;;  %v2044_v33 = vld [vmem:[%s2924_s3 + $0x10c] ss:$16 sps:$4 sm:$0xff]   ;;  %v2046_v34 = vld [vmem:[%s2924_s3 + $0x100] ss:$16 sps:$4 sm:$0xff]   ;;  %v2047_v35 = vld [vmem:[%s2924_s3 + $0x108] ss:$16 sps:$4 sm:$0xff]  }
   0xd   :  { %v2048_v36 = vld [vmem:[%s2924_s3 + $0x124] ss:$16 sps:$4 sm:$0xff]   ;;  %v2050_v37 = vld [vmem:[%s2924_s3 + $0x12c] ss:$16 sps:$4 sm:$0xff]   ;;  %v2052_v38 = vld [vmem:[%s2924_s3 + $0x120] ss:$16 sps:$4 sm:$0xff]  }
   0xe   :  { %v2053_v39 = vld [vmem:[%s2924_s3 + $0x128] ss:$16 sps:$4 sm:$0xff]   ;;  %v2054_v40 = vld [vmem:[%s2924_s3 + $0x144] ss:$16 sps:$4 sm:$0xff]   ;;  %v2056_v41 = vld [vmem:[%s2924_s3 + $0x14c] ss:$16 sps:$4 sm:$0xff]  }
   0xf   :  { %1138 = vmatpush1.bf16.msra.mxu0 %v2016_v14  ;;  %1357 = vmatpush1.bf16.msra.mxu1 %v2017_v15  ;;  %v2058_v42 = vld [vmem:[%s2924_s3 + $0x140] ss:$16 sps:$4 sm:$0xff]   ;;  %v2059_v43 = vld [vmem:[%s2924_s3 + $0x148] ss:$16 sps:$4 sm:$0xff]   ;;  %v2060_v44 = vld [vmem:[%s2924_s3 + $0x164] ss:$16 sps:$4 sm:$0xff]  }
  0x10   :  { %1139 = vmatprep.subr.bf16.mxu0 %v2018_v16  ;;  %1358 = vmatprep.subr.bf16.mxu1 %v2020_v17  ;;  %v2062_v45 = vld [vmem:[%s2924_s3 + $0x16c] ss:$16 sps:$4 sm:$0xff]   ;;  %v2064_v46 = vld [vmem:[%s2924_s3 + $0x160] ss:$16 sps:$4 sm:$0xff]   ;;  %v2065_v47 = vld [vmem:[%s2924_s3 + $0x168] ss:$16 sps:$4 sm:$0xff]  }
  0x11   :  { %v2090_v48 = vld [vmem:[%s2925_s1] ss:$8 sps:$4 sm:$0xff]   ;;  %v2066_v49 = vld [vmem:[%s2924_s3 + $0x184] ss:$16 sps:$4 sm:$0xff]   ;;  %v2068_v50 = vld [vmem:[%s2924_s3 + $0x18c] ss:$16 sps:$4 sm:$0xff]  }
  0x12   :  { %1163 = vmatprep.mubr.bf16.mxu0 %v2090_v48  ;;  %1382 = vmatprep.mubr.bf16.mxu1 %v2090_v48  ;;  %v2070_v51 = vld [vmem:[%s2924_s3 + $0x180] ss:$16 sps:$4 sm:$0xff]   ;;  %v2071_v52 = vld [vmem:[%s2924_s3 + $0x188] ss:$16 sps:$4 sm:$0xff]   ;;  %v2072_v53 = vld [vmem:[%s2924_s3 + $0x1a4] ss:$16 sps:$4 sm:$0xff]  }
  0x13   :  { %1140 = vmatpush1.bf16.msra.mxu0 %v2022_v18  ;;  %1359 = vmatpush1.bf16.msra.mxu1 %v2023_v19  ;;  %v2074_v54 = vld [vmem:[%s2924_s3 + $0x1ac] ss:$16 sps:$4 sm:$0xff]   ;;  %v2076_v55 = vld [vmem:[%s2924_s3 + $0x1a0] ss:$16 sps:$4 sm:$0xff]   ;;  %v2077_v56 = vld [vmem:[%s2924_s3 + $0x1a8] ss:$16 sps:$4 sm:$0xff]  }
  0x14   :  { %1141 = vmatprep.subr.bf16.mxu0 %v2024_v20  ;;  %1360 = vmatprep.subr.bf16.mxu1 %v2026_v21  ;;  %v2078_v57 = vld [vmem:[%s2924_s3 + $0x1c4] ss:$16 sps:$4 sm:$0xff]   ;;  %v2080_v58 = vld [vmem:[%s2924_s3 + $0x1cc] ss:$16 sps:$4 sm:$0xff]   ;;  %v2082_v59 = vld [vmem:[%s2924_s3 + $0x1c0] ss:$16 sps:$4 sm:$0xff]  }
  0x15   :  { %v2083_v60 = vld [vmem:[%s2924_s3 + $0x1c8] ss:$16 sps:$4 sm:$0xff]   ;;  %v2084_v61 = vld [vmem:[%s2924_s3 + $0x1e4] ss:$16 sps:$4 sm:$0xff]   ;;  %v2086_v62 = vld [vmem:[%s2924_s3 + $0x1ec] ss:$16 sps:$4 sm:$0xff]  }
  0x16   :  { %v2088_v63 = vld [vmem:[%s2924_s3 + $0x1e0] ss:$16 sps:$4 sm:$0xff]   ;;  %v2089_v0 = vld [vmem:[%s2924_s3 + $0x1e8] ss:$16 sps:$4 sm:$0xff]   ;;  %v2095_v1 = vld [vmem:[%s2924_s3 + $0x204] ss:$16 sps:$4 sm:$0xff]  }
  0x17   :  { %1142 = vmatpush1.bf16.msra.mxu0 %v2028_v22  ;;  %1361 = vmatpush1.bf16.msra.mxu1 %v2029_v23  ;;  %v2098_v2 = vld [vmem:[%s2924_s3 + $0x20c] ss:$16 sps:$4 sm:$0xff]   ;;  %v2093_v3 = vld [vmem:[%s2924_s3 + $0x200] ss:$16 sps:$4 sm:$0xff]   ;;  %v2096_v5 = vld [vmem:[%s2924_s3 + $0x208] ss:$16 sps:$4 sm:$0xff]  }
  0x18   :  { %1143 = vmatprep.subr.bf16.mxu0 %v2030_v24  ;;  %1362 = vmatprep.subr.bf16.mxu1 %v2032_v25  ;;  %v2099_v4 = vld [vmem:[%s2926_s0] sm:$0xff]   ;;  %v2105_v7 = vld [vmem:[%s2924_s3 + $0x22c] ss:$16 sps:$4 sm:$0xff]   ;;  %v2103_v9 = vld [vmem:[%s2924_s3 + $0x228] ss:$16 sps:$4 sm:$0xff]  }
  0x19   :  { %v2102_v6 = vld [vmem:[%s2924_s3 + $0x224] ss:$16 sps:$4 sm:$0xff]   ;;  %v2100_v8 = vld [vmem:[%s2924_s3 + $0x220] ss:$16 sps:$4 sm:$0xff]   ;;  %v2111_v11 = vld [vmem:[%s2924_s3 + $0x24c] ss:$16 sps:$4 sm:$0xff]  }
  0x1a   :  { %v2108_v10 = vld [vmem:[%s2924_s3 + $0x244] ss:$16 sps:$4 sm:$0xff]   ;;  %v2106_v12 = vld [vmem:[%s2924_s3 + $0x240] ss:$16 sps:$4 sm:$0xff]   ;;  %v2109_v13 = vld [vmem:[%s2924_s3 + $0x248] ss:$16 sps:$4 sm:$0xff]  }
  0x1b   :  { %1144 = vmatpush1.bf16.msra.mxu0 %v2034_v26  ;;  %1363 = vmatpush1.bf16.msra.mxu1 %v2035_v27  ;;  %v2114_v14 = vld [vmem:[%s2924_s3 + $0x264] ss:$16 sps:$4 sm:$0xff]   ;;  %v2117_v15 = vld [vmem:[%s2924_s3 + $0x26c] ss:$16 sps:$4 sm:$0xff]   ;;  %v2154_v16 = vld [vmem:[%s2925_s1 + $0x10] ss:$8 sps:$4 sm:$0xff]  }
  0x1c   :  { %1145 = vmatprep.subr.bf16.mxu0 %v2036_v28  ;;  %1364 = vmatprep.subr.bf16.mxu1 %v2038_v29  ;;  %v2156_v17 = vld [vmem:[%s2926_s0 + $0x8] sm:$0xff]   ;;  %v2112_v18 = vld [vmem:[%s2924_s3 + $0x260] ss:$16 sps:$4 sm:$0xff]   ;;  %v2120_v20 = vld [vmem:[%s2924_s3 + $0x284] ss:$16 sps:$4 sm:$0xff]  }
  0x1d   :  { %v2115_v19 = vld [vmem:[%s2924_s3 + $0x268] ss:$16 sps:$4 sm:$0xff]   ;;  %v2123_v21 = vld [vmem:[%s2924_s3 + $0x28c] ss:$16 sps:$4 sm:$0xff]   ;;  %v2118_v22 = vld [vmem:[%s2924_s3 + $0x280] ss:$16 sps:$4 sm:$0xff]  }
  0x1e   :  { %v2121_v23 = vld [vmem:[%s2924_s3 + $0x288] ss:$16 sps:$4 sm:$0xff]   ;;  %v2126_v24 = vld [vmem:[%s2924_s3 + $0x2a4] ss:$16 sps:$4 sm:$0xff]   ;;  %v2129_v27 = vld [vmem:[%s2924_s3 + $0x2ac] ss:$16 sps:$4 sm:$0xff]  }
  0x1f   :  { %1146 = vmatpush1.bf16.msra.mxu0 %v2040_v30  ;;  %1365 = vmatpush1.bf16.msra.mxu1 %v2041_v31  ;;  %v2169_v25 = vld [vmem:[%s2925_s1 + $0x20] ss:$8 sps:$4 sm:$0xff]   ;;  %v2171_v26 = vld [vmem:[%s2926_s0 + $0x10] sm:$0xff]   ;;  %v2135_v31 = vld [vmem:[%s2924_s3 + $0x2cc] ss:$16 sps:$4 sm:$0xff]  }
  0x20   :  { %1147 = vmatprep.subr.bf16.mxu0 %v2042_v32  ;;  %1366 = vmatprep.subr.bf16.mxu1 %v2044_v33  ;;  %v2124_v28 = vld [vmem:[%s2924_s3 + $0x2a0] ss:$16 sps:$4 sm:$0xff]   ;;  %v2127_v29 = vld [vmem:[%s2924_s3 + $0x2a8] ss:$16 sps:$4 sm:$0xff]   ;;  %v2132_v30 = vld [vmem:[%s2924_s3 + $0x2c4] ss:$16 sps:$4 sm:$0xff]  }
  0x21   :  { %v2130_v32 = vld [vmem:[%s2924_s3 + $0x2c0] ss:$16 sps:$4 sm:$0xff]   ;;  %v2133_v33 = vld [vmem:[%s2924_s3 + $0x2c8] ss:$16 sps:$4 sm:$0xff]  }
  0x22   :  { %v2151_v48 = vld [vmem:[%s2924_s3 + $0x328] ss:$16 sps:$4 sm:$0xff]  }
  0x23   :  { %1148 = vmatpush1.bf16.msra.mxu0 %v2046_v34  ;;  %1367 = vmatpush1.bf16.msra.mxu1 %v2047_v35  ;;  %v2184_v34 = vld [vmem:[%s2925_s1 + $0x30] ss:$8 sps:$4 sm:$0xff]  }
  0x24   :  { %1149 = vmatprep.subr.bf16.mxu0 %v2048_v36  ;;  %1368 = vmatprep.subr.bf16.mxu1 %v2050_v37  ;;  %v2186_v35 = vld [vmem:[%s2926_s0 + $0x18] sm:$0xff]   ;;  %v2138_v36 = vld [vmem:[%s2924_s3 + $0x2e4] ss:$16 sps:$4 sm:$0xff]  }
  0x25   :  { %v2141_v37 = vld [vmem:[%s2924_s3 + $0x2ec] ss:$16 sps:$4 sm:$0xff]  }
  0x27   :  { %1150 = vmatpush1.bf16.msra.mxu0 %v2052_v38  ;;  %1369 = vmatpush1.bf16.msra.mxu1 %v2053_v39  ;;  %v2136_v38 = vld [vmem:[%s2924_s3 + $0x2e0] ss:$16 sps:$4 sm:$0xff]   ;;  %v2139_v39 = vld [vmem:[%s2924_s3 + $0x2e8] ss:$16 sps:$4 sm:$0xff]  }
  0x28   :  { %1151 = vmatprep.subr.bf16.mxu0 %v2054_v40  ;;  %1370 = vmatprep.subr.bf16.mxu1 %v2056_v41  ;;  %v2144_v40 = vld [vmem:[%s2924_s3 + $0x304] ss:$16 sps:$4 sm:$0xff]   ;;  %v2147_v41 = vld [vmem:[%s2924_s3 + $0x30c] ss:$16 sps:$4 sm:$0xff]  }
  0x2b   :  { %1152 = vmatpush1.bf16.msra.mxu0 %v2058_v42  ;;  %1371 = vmatpush1.bf16.msra.mxu1 %v2059_v43  ;;  %v2199_v42 = vld [vmem:[%s2927_s2] ss:$8 sps:$4 sm:$0xff]  }
  0x2c   :  { %1153 = vmatprep.subr.bf16.mxu0 %v2060_v44  ;;  %1372 = vmatprep.subr.bf16.mxu1 %v2062_v45  ;;  %v2142_v43 = vld [vmem:[%s2924_s3 + $0x300] ss:$16 sps:$4 sm:$0xff]   ;;  %v2145_v44 = vld [vmem:[%s2924_s3 + $0x308] ss:$16 sps:$4 sm:$0xff]   ;;  %v2150_v45 = vld [vmem:[%s2924_s3 + $0x324] ss:$16 sps:$4 sm:$0xff]  }
  0x2f   :  { %1154 = vmatpush1.bf16.msra.mxu0 %v2064_v46  ;;  %1373 = vmatpush1.bf16.msra.mxu1 %v2065_v47  ;;  %v2153_v46 = vld [vmem:[%s2924_s3 + $0x32c] ss:$16 sps:$4 sm:$0xff]   ;;  %v2148_v47 = vld [vmem:[%s2924_s3 + $0x320] ss:$16 sps:$4 sm:$0xff]  }
  0x30   :  { %1155 = vmatprep.subr.bf16.mxu0 %v2066_v49  ;;  %1374 = vmatprep.subr.bf16.mxu1 %v2068_v50  ;;  %v2159_v49 = vld [vmem:[%s2924_s3 + $0x344] ss:$16 sps:$4 sm:$0xff]   ;;  %v2162_v50 = vld [vmem:[%s2924_s3 + $0x34c] ss:$16 sps:$4 sm:$0xff]  }
  0x33   :  { %1156 = vmatpush1.bf16.msra.mxu0 %v2070_v51  ;;  %1375 = vmatpush1.bf16.msra.mxu1 %v2071_v52  ;;  %v2157_v51 = vld [vmem:[%s2924_s3 + $0x340] ss:$16 sps:$4 sm:$0xff]   ;;  %v2160_v52 = vld [vmem:[%s2924_s3 + $0x348] ss:$16 sps:$4 sm:$0xff]  }
  0x34   :  { %1157 = vmatprep.subr.bf16.mxu0 %v2072_v53  ;;  %1376 = vmatprep.subr.bf16.mxu1 %v2074_v54  ;;  %v2165_v53 = vld [vmem:[%s2924_s3 + $0x364] ss:$16 sps:$4 sm:$0xff]   ;;  %v2168_v54 = vld [vmem:[%s2924_s3 + $0x36c] ss:$16 sps:$4 sm:$0xff]  }
  0x37   :  { %1158 = vmatpush1.bf16.msra.mxu0 %v2076_v55  ;;  %1377 = vmatpush1.bf16.msra.mxu1 %v2077_v56  ;;  %v2163_v55 = vld [vmem:[%s2924_s3 + $0x360] ss:$16 sps:$4 sm:$0xff]   ;;  %v2166_v56 = vld [vmem:[%s2924_s3 + $0x368] ss:$16 sps:$4 sm:$0xff]  }
  0x38   :  { %1159 = vmatprep.subr.bf16.mxu0 %v2078_v57  ;;  %1378 = vmatprep.subr.bf16.mxu1 %v2080_v58  ;;  %v2174_v57 = vld [vmem:[%s2924_s3 + $0x384] ss:$16 sps:$4 sm:$0xff]   ;;  %v2177_v58 = vld [vmem:[%s2924_s3 + $0x38c] ss:$16 sps:$4 sm:$0xff]  }
  0x3b   :  { %1160 = vmatpush1.bf16.msra.mxu0 %v2082_v59  ;;  %1379 = vmatpush1.bf16.msra.mxu1 %v2083_v60  ;;  %v2172_v59 = vld [vmem:[%s2924_s3 + $0x380] ss:$16 sps:$4 sm:$0xff]   ;;  %v2175_v60 = vld [vmem:[%s2924_s3 + $0x388] ss:$16 sps:$4 sm:$0xff]  }
  0x3c   :  { %1161 = vmatprep.subr.bf16.mxu0 %v2084_v61  ;;  %1380 = vmatprep.subr.bf16.mxu1 %v2086_v62  ;;  %v2180_v61 = vld [vmem:[%s2924_s3 + $0x3a4] ss:$16 sps:$4 sm:$0xff]   ;;  %v2183_v62 = vld [vmem:[%s2924_s3 + $0x3ac] ss:$16 sps:$4 sm:$0xff]  }
  0x3f   :  { %1162 = vmatpush1.bf16.msra.mxu0 %v2088_v63  ;;  %1381 = vmatpush1.bf16.msra.mxu1 %v2089_v0  ;;  %v2178_v63 = vld [vmem:[%s2924_s3 + $0x3a0] ss:$16 sps:$4 sm:$0xff]   ;;  %v2181_v0 = vld [vmem:[%s2924_s3 + $0x3a8] ss:$16 sps:$4 sm:$0xff]  }
  0x40   :  { %1204 = vmatprep.subr.bf16.mxu0 %v2095_v1  ;;  %1423 = vmatprep.subr.bf16.mxu1 %v2098_v2  ;;  %v2189_v1 = vld [vmem:[%s2924_s3 + $0x3c4] ss:$16 sps:$4 sm:$0xff]   ;;  %v2192_v2 = vld [vmem:[%s2924_s3 + $0x3cc] ss:$16 sps:$4 sm:$0xff]  }
  0x42   :  { %1164 = vmatmul.mubr.bf16.vlgmr.msra.gmra.mrb[0].mxu0 %v2099_v4  ;;  %1383 = vmatmul.mubr.bf16.vlgmr.msra.gmra.mrb[0].mxu1 %v2099_v4  ;;  %v2190_v4 = vld [vmem:[%s2924_s3 + $0x3c8] ss:$16 sps:$4 sm:$0xff]  }
  0x43   :  { %1205 = vmatpush1.bf16.msra.mxu0 %v2093_v3  ;;  %1424 = vmatpush1.bf16.msra.mxu1 %v2096_v5  ;;  %v2187_v3 = vld [vmem:[%s2924_s3 + $0x3c0] ss:$16 sps:$4 sm:$0xff]   ;;  %v2195_v5 = vld [vmem:[%s2924_s3 + $0x3e4] ss:$16 sps:$4 sm:$0xff]  }
  0x44   :  { %1206 = vmatprep.subr.bf16.mxu0 %v2102_v6  ;;  %1425 = vmatprep.subr.bf16.mxu1 %v2105_v7  ;;  %v2198_v6 = vld [vmem:[%s2924_s3 + $0x3ec] ss:$16 sps:$4 sm:$0xff]   ;;  %v2193_v7 = vld [vmem:[%s2924_s3 + $0x3e0] ss:$16 sps:$4 sm:$0xff]  }
  0x45   :  { %1173 = vmatprep.mubr.bf16.mxu0 %v2154_v16  ;;  %1392 = vmatprep.mubr.bf16.mxu1 %v2154_v16  ;;  %v2214_v16 = vld [vmem:[%s2927_s2 + $0x10] ss:$8 sps:$4 sm:$0xff]  }
  0x47   :  { %1207 = vmatpush1.bf16.msra.mxu0 %v2100_v8  ;;  %1426 = vmatpush1.bf16.msra.mxu1 %v2103_v9  ;;  %v2196_v8 = vld [vmem:[%s2924_s3 + $0x3e8] ss:$16 sps:$4 sm:$0xff]   ;;  %v2204_v9 = vld [vmem:[%s2924_s3 + $0x404] ss:$16 sps:$4 sm:$0xff]  }
  0x48   :  { %1208 = vmatprep.subr.bf16.mxu0 %v2108_v10  ;;  %1427 = vmatprep.subr.bf16.mxu1 %v2111_v11  ;;  %v2207_v10 = vld [vmem:[%s2924_s3 + $0x40c] ss:$16 sps:$4 sm:$0xff]  }
  0x49   :  { %v2092_v11 = vld [vmem:[%s2925_s1 + $0x4] ss:$8 sps:$4 sm:$0xff]  }
  0x4a   :  { %1174 = vmatmul.mubr.bf16.gmra.mrb[4].mxu0 %v2156_v17  ;;  %1393 = vmatmul.mubr.bf16.gmra.mrb[4].mxu1 %v2156_v17  ;;  %v2208_v17 = vld [vmem:[%s2924_s3 + $0x420] ss:$16 sps:$4 sm:$0xff]  }
  0x4b   :  { %1209 = vmatpush1.bf16.msra.mxu0 %v2106_v12  ;;  %1428 = vmatpush1.bf16.msra.mxu1 %v2109_v13  ;;  %v2202_v12 = vld [vmem:[%s2924_s3 + $0x400] ss:$16 sps:$4 sm:$0xff]   ;;  %v2205_v13 = vld [vmem:[%s2924_s3 + $0x408] ss:$16 sps:$4 sm:$0xff]  }
  0x4c   :  { %1210 = vmatprep.subr.bf16.mxu0 %v2114_v14  ;;  %1429 = vmatprep.subr.bf16.mxu1 %v2117_v15  ;;  %v2210_v14 = vld [vmem:[%s2924_s3 + $0x424] ss:$16 sps:$4 sm:$0xff]   ;;  %v2213_v15 = vld [vmem:[%s2924_s3 + $0x42c] ss:$16 sps:$4 sm:$0xff]  }
  0x4d   :  { %1183 = vmatprep.mubr.bf16.mxu0 %v2169_v25  ;;  %1402 = vmatprep.mubr.bf16.mxu1 %v2169_v25  ;;  %v2228_v25 = vld [vmem:[%s2924_s3 + $0x46c] ss:$16 sps:$4 sm:$0xff]  }
  0x4f   :  { %1211 = vmatpush1.bf16.msra.mxu0 %v2112_v18  ;;  %1430 = vmatpush1.bf16.msra.mxu1 %v2115_v19  ;;  %v2211_v18 = vld [vmem:[%s2924_s3 + $0x428] ss:$16 sps:$4 sm:$0xff]   ;;  %v2219_v19 = vld [vmem:[%s2924_s3 + $0x444] ss:$16 sps:$4 sm:$0xff]  }
  0x50   :  { %1212 = vmatprep.subr.bf16.mxu0 %v2120_v20  ;;  %1431 = vmatprep.subr.bf16.mxu1 %v2123_v21  ;;  %v2222_v20 = vld [vmem:[%s2924_s3 + $0x44c] ss:$16 sps:$4 sm:$0xff]  }
  0x51   :  { %v2216_v21 = vld [vmem:[%s2925_s1 + $0x14] ss:$8 sps:$4 sm:$0xff]  }
  0x52   :  { %1184 = vmatmul.mubr.bf16.gmra.mrb[8].mxu0 %v2171_v26  ;;  %1403 = vmatmul.mubr.bf16.gmra.mrb[8].mxu1 %v2171_v26  ;;  %v2229_v26 = vld [vmem:[%s2927_s2 + $0x20] ss:$8 sps:$4 sm:$0xff]  }
  0x53   :  { %1213 = vmatpush1.bf16.msra.mxu0 %v2118_v22  ;;  %1432 = vmatpush1.bf16.msra.mxu1 %v2121_v23  ;;  %v2217_v22 = vld [vmem:[%s2924_s3 + $0x440] ss:$16 sps:$4 sm:$0xff]   ;;  %v2220_v23 = vld [vmem:[%s2924_s3 + $0x448] ss:$16 sps:$4 sm:$0xff]  }
  0x54   :  { %1214 = vmatprep.subr.bf16.mxu0 %v2126_v24  ;;  %1433 = vmatprep.subr.bf16.mxu1 %v2129_v27  ;;  %v2225_v24 = vld [vmem:[%s2924_s3 + $0x464] ss:$16 sps:$4 sm:$0xff]   ;;  %v2223_v27 = vld [vmem:[%s2924_s3 + $0x460] ss:$16 sps:$4 sm:$0xff]  }
  0x55   :  { %1193 = vmatprep.mubr.bf16.mxu0 %v2184_v34  ;;  %1412 = vmatprep.mubr.bf16.mxu1 %v2184_v34  ;;  %v2240_v34 = vld [vmem:[%s2924_s3 + $0x4a4] ss:$16 sps:$4 sm:$0xff]  }
  0x57   :  { %1215 = vmatpush1.bf16.msra.mxu0 %v2124_v28  ;;  %1434 = vmatpush1.bf16.msra.mxu1 %v2127_v29  ;;  %v2226_v28 = vld [vmem:[%s2924_s3 + $0x468] ss:$16 sps:$4 sm:$0xff]   ;;  %v2234_v29 = vld [vmem:[%s2924_s3 + $0x484] ss:$16 sps:$4 sm:$0xff]  }
  0x58   :  { %1216 = vmatprep.subr.bf16.mxu0 %v2132_v30  ;;  %1435 = vmatprep.subr.bf16.mxu1 %v2135_v31  ;;  %v2237_v30 = vld [vmem:[%s2924_s3 + $0x48c] ss:$16 sps:$4 sm:$0xff]  }
  0x59   :  { %v2231_v31 = vld [vmem:[%s2925_s1 + $0x24] ss:$8 sps:$4 sm:$0xff]  }
  0x5a   :  { %1194 = vmatmul.mubr.bf16.gmra.mrb[12].mxu0 %v2186_v35  ;;  %1413 = vmatmul.mubr.bf16.gmra.mrb[12].mxu1 %v2186_v35  ;;  %v2243_v35 = vld [vmem:[%s2924_s3 + $0x4ac] ss:$16 sps:$4 sm:$0xff]  }
  0x5b   :  { %1217 = vmatpush1.bf16.msra.mxu0 %v2130_v32  ;;  %1436 = vmatpush1.bf16.msra.mxu1 %v2133_v33  ;;  %v2232_v32 = vld [vmem:[%s2924_s3 + $0x480] ss:$16 sps:$4 sm:$0xff]   ;;  %v2235_v33 = vld [vmem:[%s2924_s3 + $0x488] ss:$16 sps:$4 sm:$0xff]  }
  0x5c   :  { %1218 = vmatprep.subr.bf16.mxu0 %v2138_v36  ;;  %1437 = vmatprep.subr.bf16.mxu1 %v2141_v37  ;;  %v2244_v36 = vld [vmem:[%s2927_s2 + $0x30] ss:$8 sps:$4 sm:$0xff]  }
  0x5d   :  { %1236 = vmatprep.mubr.bf16.mxu0 %v2199_v42  ;;  %1455 = vmatprep.mubr.bf16.mxu1 %v2199_v42  ;;  %v2238_v37 = vld [vmem:[%s2924_s3 + $0x4a0] ss:$16 sps:$4 sm:$0xff]  }
  0x5e   :  { %v2247_v42 = vld [vmem:[%s2924_s3 + $0x4c0] ss:$16 sps:$4 sm:$0xff]  }
  0x5f   :  { %1219 = vmatpush1.bf16.msra.mxu0 %v2136_v38  ;;  %1438 = vmatpush1.bf16.msra.mxu1 %v2139_v39  ;;  %v2241_v38 = vld [vmem:[%s2924_s3 + $0x4a8] ss:$16 sps:$4 sm:$0xff]   ;;  %v2249_v39 = vld [vmem:[%s2924_s3 + $0x4c4] ss:$16 sps:$4 sm:$0xff]  }
  0x60   :  { %1220 = vmatprep.subr.bf16.mxu0 %v2144_v40  ;;  %1439 = vmatprep.subr.bf16.mxu1 %v2147_v41  ;;  %v2252_v40 = vld [vmem:[%s2924_s3 + $0x4cc] ss:$16 sps:$4 sm:$0xff]  }
  0x61   :  { %v2246_v41 = vld [vmem:[%s2925_s1 + $0x34] ss:$8 sps:$4 sm:$0xff]  }
  0x63   :  { %1221 = vmatpush1.bf16.msra.mxu0 %v2142_v43  ;;  %1440 = vmatpush1.bf16.msra.mxu1 %v2145_v44  ;;  %v2250_v43 = vld [vmem:[%s2924_s3 + $0x4c8] ss:$16 sps:$4 sm:$0xff]   ;;  %v2255_v44 = vld [vmem:[%s2924_s3 + $0x4e4] ss:$16 sps:$4 sm:$0xff]  }
  0x64   :  { %1222 = vmatprep.subr.bf16.mxu0 %v2150_v45  ;;  %1441 = vmatprep.subr.bf16.mxu1 %v2153_v46  ;;  %v2258_v45 = vld [vmem:[%s2924_s3 + $0x4ec] ss:$16 sps:$4 sm:$0xff]   ;;  %v2253_v46 = vld [vmem:[%s2924_s3 + $0x4e0] ss:$16 sps:$4 sm:$0xff]  }
  0x67   :  { %1223 = vmatpush1.bf16.msra.mxu0 %v2148_v47  ;;  %1442 = vmatpush1.bf16.msra.mxu1 %v2151_v48  ;;  %v2256_v47 = vld [vmem:[%s2924_s3 + $0x4e8] ss:$16 sps:$4 sm:$0xff]   ;;  %v2262_v48 = vmov 0  }
  0x68   :  { %1224 = vmatprep.subr.bf16.mxu0 %v2159_v49  ;;  %1443 = vmatprep.subr.bf16.mxu1 %v2162_v50  ;;  %v2201_v49 = vld [vmem:[%s2927_s2 + $0x4] ss:$8 sps:$4 sm:$0xff]   ;;  %v2259_v50 = vld [vmem:[%s2927_s2 + $0x14] ss:$8 sps:$4 sm:$0xff]  }
  0x6b   :  { %1225 = vmatpush1.bf16.msra.mxu0 %v2157_v51  ;;  %1444 = vmatpush1.bf16.msra.mxu1 %v2160_v52  ;;  %v2260_v51 = vld [vmem:[%s2927_s2 + $0x24] ss:$8 sps:$4 sm:$0xff]   ;;  %v2261_v52 = vld [vmem:[%s2927_s2 + $0x34] ss:$8 sps:$4 sm:$0xff]  }
  0x6c   :  { %1226 = vmatprep.subr.bf16.mxu0 %v2165_v53  ;;  %1445 = vmatprep.subr.bf16.mxu1 %v2168_v54  ;;  %v311_v53 = vlaneseq }
  0x6e   :  { %v312_v54 = vshrl.u32 %v311_v53, 7 }
  0x6f   :  { %1227 = vmatpush1.bf16.msra.mxu0 %v2163_v55  ;;  %1446 = vmatpush1.bf16.msra.mxu1 %v2166_v56 }
  0x70   :  { %1228 = vmatprep.subr.bf16.mxu0 %v2174_v57  ;;  %1447 = vmatprep.subr.bf16.mxu1 %v2177_v58  ;;  %v313_v55 = vsub.s32 0, %v312_v54  ;;  %v321_v56 = vsub.s32 2, %v312_v54  ;;  %v309_v57 = vld [vmem:[%s2928_s4] sm:$0xf]  ;;  %v317_v58 = vsub.s32 1, %v312_v54 }
  0x73   :  { %1229 = vmatpush1.bf16.msra.mxu0 %v2172_v59  ;;  %1448 = vmatpush1.bf16.msra.mxu1 %v2175_v60  ;;  %v325_v59 = vsub.s32 3, %v312_v54  ;;  %v2836_v60 = vrot.slane %v309_v57, %v313_v55 }
  0x74   :  { %1230 = vmatprep.subr.bf16.mxu0 %v2180_v61  ;;  %1449 = vmatprep.subr.bf16.mxu1 %v2183_v62  ;;  %v2838_v61 = vrot.slane %v309_v57, %v321_v56  ;;  %v2840_v62 = vrot.slane %v309_v57, %v317_v58 }
  0x77   :  { %1231 = vmatpush1.bf16.msra.mxu0 %v2178_v63  ;;  %1450 = vmatpush1.bf16.msra.mxu1 %v2181_v0  ;;  %v2842_v63 = vrot.slane %v309_v57, %v325_v59 }
  0x78   :  { %1232 = vmatprep.subr.bf16.mxu0 %v2189_v1  ;;  %1451 = vmatprep.subr.bf16.mxu1 %v2192_v2 }
  0x7b   :  { %1233 = vmatpush1.bf16.msra.mxu0 %v2187_v3  ;;  %1452 = vmatpush1.bf16.msra.mxu1 %v2190_v4 }
  0x7c   :  { %1234 = vmatprep.subr.bf16.mxu0 %v2195_v5  ;;  %1453 = vmatprep.subr.bf16.mxu1 %v2198_v6 }
  0x7f   :  { %1235 = vmatpush1.bf16.msra.mxu0 %v2193_v7  ;;  %1454 = vmatpush1.bf16.msra.mxu1 %v2196_v8 }
  0x80   :  { %1277 = vmatprep.subr.bf16.mxu0 %v2204_v9  ;;  %1496 = vmatprep.subr.bf16.mxu1 %v2207_v10 }
  0x82   :  { %1237 = vmatmul.mubr.bf16.vlgmr.msra.gmra.mrb[0].mxu0 %v2092_v11  ;;  %1456 = vmatmul.mubr.bf16.vlgmr.msra.gmra.mrb[0].mxu1 %v2092_v11 }
  0x83   :  { %1278 = vmatpush1.bf16.msra.mxu0 %v2202_v12  ;;  %1497 = vmatpush1.bf16.msra.mxu1 %v2205_v13 }
  0x84   :  { %1279 = vmatprep.subr.bf16.mxu0 %v2210_v14  ;;  %1498 = vmatprep.subr.bf16.mxu1 %v2213_v15 }
  0x85   :  { %1246 = vmatprep.mubr.bf16.mxu0 %v2214_v16  ;;  %1465 = vmatprep.mubr.bf16.mxu1 %v2214_v16 }
  0x87   :  { %1280 = vmatpush1.bf16.msra.mxu0 %v2208_v17  ;;  %1499 = vmatpush1.bf16.msra.mxu1 %v2211_v18 }
  0x88   :  { %1281 = vmatprep.subr.bf16.mxu0 %v2219_v19  ;;  %1500 = vmatprep.subr.bf16.mxu1 %v2222_v20 }
  0x8a   :  { %1247 = vmatmul.mubr.bf16.gmra.mrb[4].mxu0 %v2216_v21  ;;  %1466 = vmatmul.mubr.bf16.gmra.mrb[4].mxu1 %v2216_v21 }
  0x8b   :  { %1282 = vmatpush1.bf16.msra.mxu0 %v2217_v22  ;;  %1501 = vmatpush1.bf16.msra.mxu1 %v2220_v23 }
  0x8c   :  { %1283 = vmatprep.subr.bf16.mxu0 %v2225_v24  ;;  %1502 = vmatprep.subr.bf16.mxu1 %v2228_v25 }
  0x8d   :  { %1256 = vmatprep.mubr.bf16.mxu0 %v2229_v26  ;;  %1475 = vmatprep.mubr.bf16.mxu1 %v2229_v26 }
  0x8f   :  { %1284 = vmatpush1.bf16.msra.mxu0 %v2223_v27  ;;  %1503 = vmatpush1.bf16.msra.mxu1 %v2226_v28 }
  0x90   :  { %1285 = vmatprep.subr.bf16.mxu0 %v2234_v29  ;;  %1504 = vmatprep.subr.bf16.mxu1 %v2237_v30 }
  0x92   :  { %1257 = vmatmul.mubr.bf16.gmra.mrb[8].mxu0 %v2231_v31  ;;  %1476 = vmatmul.mubr.bf16.gmra.mrb[8].mxu1 %v2231_v31 }
  0x93   :  { %1286 = vmatpush1.bf16.msra.mxu0 %v2232_v32  ;;  %1505 = vmatpush1.bf16.msra.mxu1 %v2235_v33 }
  0x94   :  { %1287 = vmatprep.subr.bf16.mxu0 %v2240_v34  ;;  %1506 = vmatprep.subr.bf16.mxu1 %v2243_v35 }
  0x95   :  { %1266 = vmatprep.mubr.bf16.mxu0 %v2244_v36  ;;  %1485 = vmatprep.mubr.bf16.mxu1 %v2244_v36 }
  0x97   :  { %1288 = vmatpush1.bf16.msra.mxu0 %v2238_v37  ;;  %1507 = vmatpush1.bf16.msra.mxu1 %v2241_v38 }
  0x98   :  { %1289 = vmatprep.subr.bf16.mxu0 %v2249_v39  ;;  %1508 = vmatprep.subr.bf16.mxu1 %v2252_v40 }
  0x9a   :  { %1267 = vmatmul.mubr.bf16.gmra.mrb[12].mxu0 %v2246_v41  ;;  %1486 = vmatmul.mubr.bf16.gmra.mrb[12].mxu1 %v2246_v41 }
  0x9b   :  { %1290 = vmatpush1.bf16.msra.mxu0 %v2247_v42  ;;  %1509 = vmatpush1.bf16.msra.mxu1 %v2250_v43 }
  0x9c   :  { %1291 = vmatprep.subr.bf16.mxu0 %v2255_v44  ;;  %1510 = vmatprep.subr.bf16.mxu1 %v2258_v45 }
  0x9d   :  { %1309 = vmatprep.mubr.bf16.mxu0 %v2262_v48  ;;  %1528 = vmatprep.mubr.bf16.mxu1 %v2262_v48 }
  0x9f   :  { %1292 = vmatpush1.bf16.msra.mxu0 %v2253_v46  ;;  %1511 = vmatpush1.bf16.msra.mxu1 %v2256_v47 }
  0xa2   :  { %1310 = vmatmul.mubr.bf16.vlgmr.msra.gmra.mrb[0].mxu0 %v2201_v49  ;;  %1529 = vmatmul.mubr.bf16.vlgmr.msra.gmra.mrb[0].mxu1 %v2201_v49 }
  0xa3   :  { %1319 = vmatprep.mubr.bf16.mxu0 %v2262_v48  ;;  %1538 = vmatprep.mubr.bf16.mxu1 %v2262_v48 }
  0xaa   :  { %1320 = vmatmul.mubr.bf16.gmra.mrb[4].mxu0 %v2259_v50  ;;  %1539 = vmatmul.mubr.bf16.gmra.mrb[4].mxu1 %v2259_v50 }
  0xab   :  { %1329 = vmatprep.mubr.bf16.mxu0 %v2262_v48  ;;  %1548 = vmatprep.mubr.bf16.mxu1 %v2262_v48 }
  0xb2   :  { %1330 = vmatmul.mubr.bf16.gmra.mrb[8].mxu0 %v2260_v51  ;;  %1549 = vmatmul.mubr.bf16.gmra.mrb[8].mxu1 %v2260_v51 }
  0xb3   :  { %1339 = vmatprep.mubr.bf16.mxu0 %v2262_v48  ;;  %1558 = vmatprep.mubr.bf16.mxu1 %v2262_v48 }
  0xba   :  { %1340 = vmatmul.mubr.bf16.gmra.mrb[12].mxu0 %v2261_v52  ;;  %1559 = vmatmul.mubr.bf16.gmra.mrb[12].mxu1 %v2261_v52 }
 0x175   :  { %v1311_v0 = vpop.f32.mrb[0].mxu0  ;;  %v1530_v1 = vpop.f32.mrb[0].mxu1 }
 0x176   :  { %v1897_v2 = vadd.f32 %v1311_v0, %v2836_v60  ;;  %v1913_v3 = vadd.f32 %v1530_v1, %v2838_v61  ;;  %v1313_v4 = vpop.f32.mrb[1].mxu0  ;;  %v1532_v5 = vpop.f32.mrb[1].mxu1 }
 0x177   :  { %v1898_v6 = vadd.f32 %v1313_v4, %v2840_v62  ;;  %v1914_v7 = vadd.f32 %v1532_v5, %v2842_v63  ;;  %v1315_v8 = vpop.f32.mrb[2].mxu0  ;;  %v1534_v9 = vpop.f32.mrb[2].mxu1 }
 0x178   :  { %v1899_v10 = vadd.f32 %v1315_v8, %v2836_v60  ;;  %v1915_v11 = vadd.f32 %v1534_v9, %v2838_v61  ;;  %v1317_v12 = vpop.f32.mrb[3].mxu0  ;;  %v1536_v13 = vpop.f32.mrb[3].mxu1 }
 0x179   :  { %v1881_v14 = vpack.c.bf16 %v1898_v6, %v1897_v2  ;;  %v1882_v15 = vpack.c.bf16 %v1914_v7, %v1913_v3  ;;  %v1900_v16 = vadd.f32 %v1317_v12, %v2840_v62  ;;  %v1916_v17 = vadd.f32 %v1536_v13, %v2842_v63 }
 0x17b   :  { %1665 = vst [vmem:[%s2929_s5] sm:$0xff] %v1881_v14  ;;  %1666 = vst [vmem:[%s2929_s5 + $0x8] sm:$0xff] %v1882_v15  ;;  %v1883_v18 = vpack.c.bf16 %v1900_v16, %v1899_v10  ;;  %v1884_v19 = vpack.c.bf16 %v1916_v17, %v1915_v11 }
 0x17d   :  { %1667 = vst [vmem:[%s2929_s5 + $0x10] sm:$0xff] %v1883_v18  ;;  %1668 = vst [vmem:[%s2929_s5 + $0x18] sm:$0xff] %v1884_v19  ;;  %v1321_v20 = vpop.f32.mrb[4].mxu0  ;;  %v1540_v21 = vpop.f32.mrb[4].mxu1 }
 0x17e   :  { %v1901_v22 = vadd.f32 %v1321_v20, %v2836_v60  ;;  %v1917_v23 = vadd.f32 %v1540_v21, %v2838_v61  ;;  %v1323_v24 = vpop.f32.mrb[5].mxu0  ;;  %v1542_v25 = vpop.f32.mrb[5].mxu1 }
 0x17f   :  { %v1902_v26 = vadd.f32 %v1323_v24, %v2840_v62  ;;  %v1918_v27 = vadd.f32 %v1542_v25, %v2842_v63  ;;  %v1325_v28 = vpop.f32.mrb[6].mxu0  ;;  %v1544_v29 = vpop.f32.mrb[6].mxu1 }
 0x180   :  { %v1903_v30 = vadd.f32 %v1325_v28, %v2836_v60  ;;  %v1919_v31 = vadd.f32 %v1544_v29, %v2838_v61  ;;  %v1327_v32 = vpop.f32.mrb[7].mxu0  ;;  %v1546_v33 = vpop.f32.mrb[7].mxu1 }
 0x181   :  { %v1885_v34 = vpack.c.bf16 %v1902_v26, %v1901_v22  ;;  %v1886_v35 = vpack.c.bf16 %v1918_v27, %v1917_v23  ;;  %v1904_v36 = vadd.f32 %v1327_v32, %v2840_v62  ;;  %v1920_v37 = vadd.f32 %v1546_v33, %v2842_v63 }
 0x183   :  { %1669 = vst [vmem:[%s2929_s5 + $0x20] sm:$0xff] %v1885_v34  ;;  %1670 = vst [vmem:[%s2929_s5 + $0x28] sm:$0xff] %v1886_v35  ;;  %v1887_v38 = vpack.c.bf16 %v1904_v36, %v1903_v30  ;;  %v1888_v39 = vpack.c.bf16 %v1920_v37, %v1919_v31 }
 0x185   :  { %1671 = vst [vmem:[%s2929_s5 + $0x30] sm:$0xff] %v1887_v38  ;;  %1672 = vst [vmem:[%s2929_s5 + $0x38] sm:$0xff] %v1888_v39  ;;  %v1331_v40 = vpop.f32.mrb[8].mxu0  ;;  %v1550_v41 = vpop.f32.mrb[8].mxu1 }
 0x186   :  { %v1905_v42 = vadd.f32 %v1331_v40, %v2836_v60  ;;  %v1921_v43 = vadd.f32 %v1550_v41, %v2838_v61  ;;  %v1333_v44 = vpop.f32.mrb[9].mxu0  ;;  %v1552_v45 = vpop.f32.mrb[9].mxu1 }
 0x187   :  { %v1906_v46 = vadd.f32 %v1333_v44, %v2840_v62  ;;  %v1922_v47 = vadd.f32 %v1552_v45, %v2842_v63  ;;  %v1335_v48 = vpop.f32.mrb[10].mxu0  ;;  %v1554_v49 = vpop.f32.mrb[10].mxu1 }
 0x188   :  { %v1907_v50 = vadd.f32 %v1335_v48, %v2836_v60  ;;  %v1923_v51 = vadd.f32 %v1554_v49, %v2838_v61  ;;  %v1337_v52 = vpop.f32.mrb[11].mxu0  ;;  %v1556_v53 = vpop.f32.mrb[11].mxu1 }
 0x189   :  { %v1889_v54 = vpack.c.bf16 %v1906_v46, %v1905_v42  ;;  %v1890_v55 = vpack.c.bf16 %v1922_v47, %v1921_v43  ;;  %v1908_v56 = vadd.f32 %v1337_v52, %v2840_v62  ;;  %v1924_v57 = vadd.f32 %v1556_v53, %v2842_v63 }
 0x18b   :  { %1673 = vst [vmem:[%s2929_s5 + $0x40] sm:$0xff] %v1889_v54  ;;  %1674 = vst [vmem:[%s2929_s5 + $0x48] sm:$0xff] %v1890_v55  ;;  %v1891_v58 = vpack.c.bf16 %v1908_v56, %v1907_v50  ;;  %v1892_v59 = vpack.c.bf16 %v1924_v57, %v1923_v51 }
 0x18d   :  { %1675 = vst [vmem:[%s2929_s5 + $0x50] sm:$0xff] %v1891_v58  ;;  %1676 = vst [vmem:[%s2929_s5 + $0x58] sm:$0xff] %v1892_v59  ;;  %v1341_v0 = vpop.f32.mrb[12].mxu0  ;;  %v1560_v1 = vpop.f32.mrb[12].mxu1 }
 0x18e   :  { %v1909_v2 = vadd.f32 %v1341_v0, %v2836_v60  ;;  %v1925_v3 = vadd.f32 %v1560_v1, %v2838_v61  ;;  %v1343_v4 = vpop.f32.mrb[13].mxu0  ;;  %v1562_v5 = vpop.f32.mrb[13].mxu1 }
 0x18f   :  { %v1910_v6 = vadd.f32 %v1343_v4, %v2840_v62  ;;  %v1926_v7 = vadd.f32 %v1562_v5, %v2842_v63  ;;  %v1345_v8 = vpop.f32.mrb[14].mxu0  ;;  %v1564_v9 = vpop.f32.mrb[14].mxu1 }
 0x190   :  { %v1911_v10 = vadd.f32 %v1345_v8, %v2836_v60  ;;  %v1927_v11 = vadd.f32 %v1564_v9, %v2838_v61  ;;  %v1347_v12 = vpop.f32.mrb[15].mxu0  ;;  %v1566_v13 = vpop.f32.mrb[15].mxu1 }
 0x191   :  { %v1893_v14 = vpack.c.bf16 %v1910_v6, %v1909_v2  ;;  %v1894_v15 = vpack.c.bf16 %v1926_v7, %v1925_v3  ;;  %v1912_v16 = vadd.f32 %v1347_v12, %v2840_v62  ;;  %v1928_v17 = vadd.f32 %v1566_v13, %v2842_v63 }
 0x193   :  { %1677 = vst [vmem:[%s2929_s5 + $0x60] sm:$0xff] %v1893_v14  ;;  %1678 = vst [vmem:[%s2929_s5 + $0x68] sm:$0xff] %v1894_v15  ;;  %v1895_v18 = vpack.c.bf16 %v1912_v16, %v1911_v10  ;;  %v1896_v60 = vpack.c.bf16 %v1928_v17, %v1927_v11 }
 0x195   :  { %1679 = vst [vmem:[%s2929_s5 + $0x70] sm:$0xff] %v1895_v18  ;;  %1680 = vst [vmem:[%s2929_s5 + $0x78] sm:$0xff] %v1896_v60 }

// kernel: sentiment_forward.3
= control target key start
LH: loop header
LB: loop body
LE: loop exit
PB: predicated region body
PF: predicated region fallthrough
CT: control target
= control target key end

     0   :  { %v1545_v1 = vmov 0   ;;  %v1546_v37 = vmov 0.0|0.0   ;;  %s2249_s2 = inlined_call_operand.vmem [shape: bf16[128,512], index: 2, kind: input, shape index: {}]   ;;  %s2250_s0 = inlined_call_operand.vmem [shape: s32[8,1], index: 0, kind: input, shape index: {}]   ;;  %s2251_s1 = inlined_call_operand.vmem [shape: bf16[8,8,512], index: 1, kind: input, shape index: {}]   ;;  %s2252_s3 = inlined_call_operand.vmem [shape: f32[8,128], index: 3, kind: output, shape index: {}]  }
   0x1   :  { %v1570_v0 = vld [vmem:[%s2249_s2 + $0x4] ss:$16 sps:$4 sm:$0xff]   ;;  %256 = vmatprep.mubr.bf16.mxu0 %v1545_v1  ;;  %297 = vmatprep.mubr.bf16.mxu1 %v1545_v1  ;;  %v1577_v2 = vld [vmem:[%s2249_s2] ss:$16 sps:$4 sm:$0xff]   ;;  %v1602_v6 = vld [vmem:[%s2249_s2 + $0xc] ss:$16 sps:$4 sm:$0xff]  }
   0x2   :  { %1335 = vset.pattern.permute.xlu0 %v1545_v1  ;;  %1336 = vset.pattern.permute.xlu1 %v1545_v1  ;;  %v1585_v3 = vld [vmem:[%s2249_s2 + $0x24] ss:$16 sps:$4 sm:$0xff]   ;;  %v1591_v4 = vld [vmem:[%s2249_s2 + $0x20] ss:$16 sps:$4 sm:$0xff]   ;;  %v1607_v7 = vld [vmem:[%s2249_s2 + $0x8] ss:$16 sps:$4 sm:$0xff]  }
   0x3   :  { %224 = vmatprep.subr.bf16.mxu0 %v1570_v0  ;;  %v1597_v5 = vld [vmem:[%s2249_s2 + $0x44] ss:$16 sps:$4 sm:$0xff]   ;;  %v1613_v8 = vld [vmem:[%s2249_s2 + $0x40] ss:$16 sps:$4 sm:$0xff]   ;;  %265 = vmatprep.subr.bf16.mxu1 %v1602_v6  ;;  %v1626_v10 = vld [vmem:[%s2249_s2 + $0x2c] ss:$16 sps:$4 sm:$0xff]  }
   0x4   :  { %225 = vmatpush1.bf16.msra.mxu0 %v1577_v2  ;;  %v1620_v9 = vld [vmem:[%s2249_s2 + $0x64] ss:$16 sps:$4 sm:$0xff]   ;;  %266 = vmatpush1.bf16.msra.mxu1 %v1607_v7  ;;  %v1631_v11 = vld [vmem:[%s2249_s2 + $0x28] ss:$16 sps:$4 sm:$0xff]   ;;  %v1638_v12 = vld [vmem:[%s2249_s2 + $0x60] ss:$16 sps:$4 sm:$0xff]  }
   0x5   :  { %226 = vmatprep.subr.bf16.mxu0 %v1585_v3  ;;  %267 = vmatprep.subr.bf16.mxu1 %v1626_v10  ;;  %v1643_v13 = vld [vmem:[%s2249_s2 + $0x84] ss:$16 sps:$4 sm:$0xff]   ;;  %v1648_v14 = vld [vmem:[%s2249_s2 + $0x4c] ss:$16 sps:$4 sm:$0xff]   ;;  %v1655_v15 = vld [vmem:[%s2249_s2 + $0x48] ss:$16 sps:$4 sm:$0xff]  }
   0x6   :  { %v1661_v16 = vld [vmem:[%s2249_s2 + $0x6c] ss:$16 sps:$4 sm:$0xff]   ;;  %v1667_v17 = vld [vmem:[%s2249_s2 + $0x80] ss:$16 sps:$4 sm:$0xff]   ;;  %v1673_v18 = vld [vmem:[%s2249_s2 + $0xa4] ss:$16 sps:$4 sm:$0xff]  }
   0x7   :  { %v1679_v19 = vld [vmem:[%s2249_s2 + $0x68] ss:$16 sps:$4 sm:$0xff]   ;;  %v1685_v20 = vld [vmem:[%s2249_s2 + $0x8c] ss:$16 sps:$4 sm:$0xff]   ;;  %v1691_v21 = vld [vmem:[%s2249_s2 + $0xa0] ss:$16 sps:$4 sm:$0xff]  }
   0x8   :  { %227 = vmatpush1.bf16.msra.mxu0 %v1591_v4  ;;  %268 = vmatpush1.bf16.msra.mxu1 %v1631_v11  ;;  %v1696_v22 = vld [vmem:[%s2249_s2 + $0xc4] ss:$16 sps:$4 sm:$0xff]   ;;  %v1703_v23 = vld [vmem:[%s2249_s2 + $0x88] ss:$16 sps:$4 sm:$0xff]   ;;  %v1709_v24 = vld [vmem:[%s2249_s2 + $0xac] ss:$16 sps:$4 sm:$0xff]  }
   0x9   :  { %228 = vmatprep.subr.bf16.mxu0 %v1597_v5  ;;  %269 = vmatprep.subr.bf16.mxu1 %v1648_v14  ;;  %v1714_v25 = vld [vmem:[%s2250_s0] sm:$0xff]  ;;  %v1735_v29 = vld [vmem:[%s2249_s2 + $0xa8] ss:$16 sps:$4 sm:$0xff]   ;;  %v1741_v30 = vld [vmem:[%s2249_s2 + $0xcc] ss:$16 sps:$4 sm:$0xff]  }
   0xa   :  { %vm1284_vm0 = vcmp.gt.s32.totalorder %v1714_v25, 0  ;;  %v1721_v26 = vld [vmem:[%s2249_s2 + $0xc0] ss:$16 sps:$4 sm:$0xff]   ;;  %vm1290_vm1 = vcmp.gt.s32.totalorder %v1714_v25, 1  ;;  %v1729_v28 = vld [vmem:[%s2249_s2 + $0xe4] ss:$16 sps:$4 sm:$0xff]  }
   0xb   :  { %v336_v27 = vsel %vm1284_vm0, 1, %v1545_v1  ;;  %v464_v31 = vsel %vm1290_vm1, 1, %v1545_v1  ;;  %v1748_v32 = vld [vmem:[%s2249_s2 + $0xe0] ss:$16 sps:$4 sm:$0xff]   ;;  %vm1308_vm2 = vcmp.gt.s32.totalorder %v1714_v25, 4  ;;  %vm1320_vm3 = vcmp.gt.s32.totalorder %v1714_v25, 6 }
   0xc   :  { %229 = vmatpush1.bf16.msra.mxu0 %v1613_v8  ;;  %270 = vmatpush1.bf16.msra.mxu1 %v1655_v15  ;;  %v1756_v33 = vld [vmem:[%s2249_s2 + $0xc8] ss:$16 sps:$4 sm:$0xff]   ;;  %v1762_v34 = vld [vmem:[%s2249_s2 + $0xec] ss:$16 sps:$4 sm:$0xff]   ;;  %v848_v35 = vsel %vm1308_vm2, 1, %v1545_v1  ;;  %v1104_v38 = vsel %vm1320_vm3, 1, %v1545_v1 }
   0xd   :  { %230 = vmatprep.subr.bf16.mxu0 %v1620_v9  ;;  %271 = vmatprep.subr.bf16.mxu1 %v1661_v16  ;;  %v1771_v36 = vld [vmem:[%s2249_s2 + $0xe8] ss:$16 sps:$4 sm:$0xff]   ;;  %v58_v39 = vld [vmem:[%s2251_s1] sm:$0xff]  ;;  %vm1296_vm6 = vcmp.gt.s32.totalorder %v1714_v25, 2  ;;  %vm1302_vm7 = vcmp.gt.s32.totalorder %v1714_v25, 3  ;;  %vm1314_vm8 = vcmp.gt.s32.totalorder %v1714_v25, 5 }
   0xe   :  { %338 = vperm.xlu0 %1335, %v336_v27   ;;  %v60_v40 = vunpack.c.l.bf16 %v58_v39  ;;  %v61_v41 = vunpack.c.h.bf16 %v58_v39  ;;  %v59_v43 = vld [vmem:[%s2251_s1 + $0x8] sm:$0xff]  ;;  %vm1326_vm9 = vcmp.gt.s32.totalorder %v1714_v25, 7 }
   0xf   :  { %v63_v50 = vunpack.c.h.bf16 %v59_v43  ;;  %v62_v56 = vunpack.c.l.bf16 %v59_v43 }
  0x10   :  { %231 = vmatpush1.bf16.msra.mxu0 %v1638_v12  ;;  %272 = vmatpush1.bf16.msra.mxu1 %v1679_v19 }
  0x11   :  { %232 = vmatprep.subr.bf16.mxu0 %v1643_v13  ;;  %273 = vmatprep.subr.bf16.mxu1 %v1685_v20 }
  0x12   :  { %466 = vperm.xlu0 %1335, %v464_v31  }
  0x14   :  { %233 = vmatpush1.bf16.msra.mxu0 %v1667_v17  ;;  %274 = vmatpush1.bf16.msra.mxu1 %v1703_v23 }
  0x15   :  { %234 = vmatprep.subr.bf16.mxu0 %v1673_v18  ;;  %275 = vmatprep.subr.bf16.mxu1 %v1709_v24 }
  0x16   :  { %850 = vperm.xlu0 %1335, %v848_v35  }
  0x18   :  { %235 = vmatpush1.bf16.msra.mxu0 %v1691_v21  ;;  %276 = vmatpush1.bf16.msra.mxu1 %v1735_v29 }
  0x19   :  { %236 = vmatprep.subr.bf16.mxu0 %v1696_v22  ;;  %277 = vmatprep.subr.bf16.mxu1 %v1741_v30 }
  0x1a   :  { %1106 = vperm.xlu0 %1335, %v1104_v38  }
  0x1c   :  { %237 = vmatpush1.bf16.msra.mxu0 %v1721_v26  ;;  %278 = vmatpush1.bf16.msra.mxu1 %v1756_v33 }
  0x1d   :  { %238 = vmatprep.subr.bf16.mxu0 %v1729_v28  ;;  %279 = vmatprep.subr.bf16.mxu1 %v1762_v34 }
  0x20   :  { %239 = vmatpush1.bf16.msra.mxu0 %v1748_v32  ;;  %280 = vmatpush1.bf16.msra.mxu1 %v1771_v36 }
  0x21   :  { %351 = vmatprep.subr.bf16.mxu0 %v1570_v0  ;;  %392 = vmatprep.subr.bf16.mxu1 %v1602_v6 }
  0x23   :  { %257 = vmatmul.mubr.bf16.vlgmr.msra.gmra.mrb[0].mxu0 %v1546_v37  ;;  %298 = vmatmul.mubr.bf16.vlgmr.msra.gmra.mrb[0].mxu1 %v1546_v37 }
  0x24   :  { %352 = vmatpush1.bf16.msra.mxu0 %v1577_v2  ;;  %383 = vmatprep.mubr.bf16.mxu0 %v1545_v1 }
  0x25   :  { %353 = vmatprep.subr.bf16.mxu0 %v1585_v3  ;;  %393 = vmatpush1.bf16.msra.mxu1 %v1607_v7 }
  0x26   :  { %394 = vmatprep.subr.bf16.mxu1 %v1626_v10  ;;  %424 = vmatprep.mubr.bf16.mxu1 %v1545_v1 }
  0x28   :  { %354 = vmatpush1.bf16.msra.mxu0 %v1591_v4 }
  0x29   :  { %355 = vmatprep.subr.bf16.mxu0 %v1597_v5  ;;  %395 = vmatpush1.bf16.msra.mxu1 %v1631_v11 }
  0x2a   :  { %396 = vmatprep.subr.bf16.mxu1 %v1648_v14 }
  0x2c   :  { %356 = vmatpush1.bf16.msra.mxu0 %v1613_v8 }
  0x2d   :  { %357 = vmatprep.subr.bf16.mxu0 %v1620_v9  ;;  %397 = vmatpush1.bf16.msra.mxu1 %v1655_v15 }
  0x2e   :  { %398 = vmatprep.subr.bf16.mxu1 %v1661_v16 }
  0x30   :  { %358 = vmatpush1.bf16.msra.mxu0 %v1638_v12 }
  0x31   :  { %359 = vmatprep.subr.bf16.mxu0 %v1643_v13  ;;  %399 = vmatpush1.bf16.msra.mxu1 %v1679_v19 }
  0x32   :  { %400 = vmatprep.subr.bf16.mxu1 %v1685_v20 }
  0x34   :  { %360 = vmatpush1.bf16.msra.mxu0 %v1667_v17 }
  0x35   :  { %361 = vmatprep.subr.bf16.mxu0 %v1673_v18  ;;  %401 = vmatpush1.bf16.msra.mxu1 %v1703_v23 }
  0x36   :  { %402 = vmatprep.subr.bf16.mxu1 %v1709_v24 }
  0x38   :  { %362 = vmatpush1.bf16.msra.mxu0 %v1691_v21 }
  0x39   :  { %363 = vmatprep.subr.bf16.mxu0 %v1696_v22  ;;  %403 = vmatpush1.bf16.msra.mxu1 %v1735_v29 }
  0x3a   :  { %404 = vmatprep.subr.bf16.mxu1 %v1741_v30 }
  0x3c   :  { %364 = vmatpush1.bf16.msra.mxu0 %v1721_v26 }
  0x3d   :  { %365 = vmatprep.subr.bf16.mxu0 %v1729_v28  ;;  %405 = vmatpush1.bf16.msra.mxu1 %v1756_v33 }
  0x3e   :  { %406 = vmatprep.subr.bf16.mxu1 %v1762_v34 }
  0x40   :  { %366 = vmatpush1.bf16.msra.mxu0 %v1748_v32 }
  0x41   :  { %479 = vmatprep.subr.bf16.mxu0 %v1570_v0  ;;  %407 = vmatpush1.bf16.msra.mxu1 %v1771_v36 }
  0x42   :  { %520 = vmatprep.subr.bf16.mxu1 %v1602_v6 }
  0x8d   :  { %v1821_v43 = vpop.permute.xlu0 %338 }
  0x8e   :  { %vm340_vm4 = vcmp.eq.s32.totalorder %v1821_v43, 1  ;;  %v1291_v43 = vld [vmem:[%s2251_s1 + $0x20] sm:$0xff] }
  0x8f   :  { %vm1327_vm5 = vmpackc.low %vm340_vm4, %vm340_vm4 }
  0xf6   :  { %v258_v42 = vpop.f32.mrb[0].mxu0  ;;  %v299_v52 = vpop.f32.mrb[0].mxu1 }
  0xf7   :  { %v306_v44 = vadd.f32 %v258_v42, %v60_v40  ;;  %v260_v45 = vpop.f32.mrb[1].mxu0  ;;  %v301_v53 = vpop.f32.mrb[1].mxu1  ;;  %v308_v59 = vadd.f32 %v299_v52, %v62_v56 }
  0xf8   :  { %v307_v46 = vadd.f32 %v260_v45, %v61_v41  ;;  %v262_v47 = vpop.f32.mrb[2].mxu0  ;;  %v309_v54 = vadd.f32 %v301_v53, %v63_v50  ;;  %v303_v55 = vpop.f32.mrb[2].mxu1  ;;  %v1232_v50 = vsel %vm1326_vm9, 1, %v1545_v1 }
  0xf9   :  { %v1281_v48 = vmul.f32 -1.442695, %v306_v44  ;;  %v263_v49 = vpop.f32.mrb[3].mxu0  ;;  %v304_v57 = vpop.f32.mrb[3].mxu1  ;;  %v592_v47 = vsel %vm1296_vm6, 1, %v1545_v1 }
  0xfa   :  { %v1282_v51 = vmul.f32 -1.442695, %v307_v46  ;;  %v1283_v58 = vmul.f32 -1.442695, %v309_v54  ;;  %594 = vperm.xlu1 %1336, %v592_v47   ;;  %v976_v49 = vsel %vm1314_vm8, 1, %v1545_v1  ;;  %v1286_v57 = vld [vmem:[%s2251_s1 + $0x18] sm:$0xff] }
  0xfb   :  { %1385 = vpow2.f32 %v1281_v48  ;;  %v720_v48 = vsel %vm1302_vm7, 1, %v1545_v1 }
  0xfc   :  { %1387 = vpow2.f32 %v1282_v51  ;;  %v1285_v51 = vld [vmem:[%s2251_s1 + $0x10] sm:$0xff] }
  0xfd   :  { %1389 = vpow2.f32 %v1283_v58  ;;  %v347_v52 = vunpack.c.l.bf16 %v1285_v51  ;;  %v348_v53 = vunpack.c.h.bf16 %v1285_v51 }
  0xfe   :  { %1391 = vtanh.f32 %v308_v59  ;;  %722 = vperm.xlu1 %1336, %v720_v48  }
 0x102   :  { %978 = vperm.xlu1 %1336, %v976_v49  }
 0x105   :  { %v1386_v60 = vpop.eup %1385 }
 0x106   :  { %v1388_v61 = vpop.eup %1387  ;;  %v313_v62 = vadd.f32 1.0, %v1386_v60  ;;  %1234 = vperm.xlu1 %1336, %v1232_v50  }
 0x107   :  { %v319_v63 = vadd.f32 1.0, %v1388_v61  ;;  %v1390_v27 = vpop.eup %1389 }
 0x108   :  { %1393 = vrcp.f32 %v313_v62  ;;  %v1392_v31 = vpop.eup %1391  ;;  %v326_v37 = vadd.f32 1.0, %v1390_v27 }
 0x109   :  { %1395 = vrcp.f32 %v319_v63 }
 0x10a   :  { %1397 = vrcp.f32 %v326_v37 }
 0x112   :  { %v1394_v35 = vpop.eup %1393 }
 0x113   :  { %v1396_v38 = vpop.eup %1395  ;;  %v330_v39 = vmul.f32 %v1394_v35, %v1392_v31  ;;  %v350_v35 = vunpack.c.h.bf16 %v1286_v57 }
 0x114   :  { %v329_v40 = vmul.f32 0.0, %v1396_v38  ;;  %v1398_v42 = vpop.eup %1397  ;;  %v349_v38 = vunpack.c.l.bf16 %v1286_v57 }
 0x116   :  { %v1818_v41 = vadd.f32 %v330_v39, %v329_v40 }
 0x118   :  { %1399 = vtanh.f32 %v1818_v41 }
 0x122   :  { %v1400_v44 = vpop.eup %1399 }
 0x123   :  { %v1823_v45 = vmul.f32 %v1400_v44, %v1398_v42 }
 0x125   :  { %v1328_v46 = vpack.c.bf16 %v1823_v45, %v1823_v45 }
 0x127   :  { %1329 = vmatmul.mubr.msk.bf16.vlgmr.msra.gmra.mrb[4].mxu0 %vm1327_vm5, %v1328_v46  ;;  %1332 = vmatmul.mubr.msk.bf16.vlgmr.msra.gmra.mrb[4].mxu1 %vm1327_vm5, %v1328_v46 }
 0x128   :  { %480 = vmatpush1.bf16.msra.mxu0 %v1577_v2  ;;  %521 = vmatpush1.bf16.msra.mxu1 %v1607_v7 }
 0x129   :  { %481 = vmatprep.subr.bf16.mxu0 %v1585_v3  ;;  %522 = vmatprep.subr.bf16.mxu1 %v1626_v10 }
 0x12a   :  { %511 = vmatprep.mubr.bf16.mxu0 %v1545_v1  ;;  %552 = vmatprep.mubr.bf16.mxu1 %v1545_v1 }
 0x12c   :  { %482 = vmatpush1.bf16.msra.mxu0 %v1591_v4  ;;  %523 = vmatpush1.bf16.msra.mxu1 %v1631_v11 }
 0x12d   :  { %483 = vmatprep.subr.bf16.mxu0 %v1597_v5  ;;  %524 = vmatprep.subr.bf16.mxu1 %v1648_v14 }
 0x130   :  { %484 = vmatpush1.bf16.msra.mxu0 %v1613_v8  ;;  %525 = vmatpush1.bf16.msra.mxu1 %v1655_v15 }
 0x131   :  { %485 = vmatprep.subr.bf16.mxu0 %v1620_v9  ;;  %526 = vmatprep.subr.bf16.mxu1 %v1661_v16 }
 0x134   :  { %486 = vmatpush1.bf16.msra.mxu0 %v1638_v12  ;;  %527 = vmatpush1.bf16.msra.mxu1 %v1679_v19 }
 0x135   :  { %487 = vmatprep.subr.bf16.mxu0 %v1643_v13  ;;  %528 = vmatprep.subr.bf16.mxu1 %v1685_v20 }
 0x138   :  { %488 = vmatpush1.bf16.msra.mxu0 %v1667_v17  ;;  %529 = vmatpush1.bf16.msra.mxu1 %v1703_v23 }
 0x139   :  { %489 = vmatprep.subr.bf16.mxu0 %v1673_v18  ;;  %530 = vmatprep.subr.bf16.mxu1 %v1709_v24 }
 0x13c   :  { %490 = vmatpush1.bf16.msra.mxu0 %v1691_v21  ;;  %531 = vmatpush1.bf16.msra.mxu1 %v1735_v29 }
 0x13d   :  { %491 = vmatprep.subr.bf16.mxu0 %v1696_v22  ;;  %532 = vmatprep.subr.bf16.mxu1 %v1741_v30 }
 0x140   :  { %492 = vmatpush1.bf16.msra.mxu0 %v1721_v26  ;;  %533 = vmatpush1.bf16.msra.mxu1 %v1756_v33 }
 0x141   :  { %493 = vmatprep.subr.bf16.mxu0 %v1729_v28  ;;  %534 = vmatprep.subr.bf16.mxu1 %v1762_v34 }
 0x144   :  { %494 = vmatpush1.bf16.msra.mxu0 %v1748_v32  ;;  %535 = vmatpush1.bf16.msra.mxu1 %v1771_v36 }
 0x145   :  { %607 = vmatprep.subr.bf16.mxu0 %v1570_v0  ;;  %648 = vmatprep.subr.bf16.mxu1 %v1602_v6 }
 0x1fa   :  { %v385_v54 = vpop.f32.mrb[4].mxu0  ;;  %v426_v55 = vpop.f32.mrb[4].mxu1 }
 0x1fb   :  { %v433_v56 = vadd.f32 %v385_v54, %v347_v52  ;;  %v387_v58 = vpop.f32.mrb[5].mxu0  ;;  %v428_v59 = vpop.f32.mrb[5].mxu1  ;;  %v435_v40 = vadd.f32 %v426_v55, %v349_v38  ;;  %v342_v52 = vsel %vm340_vm4, %v1818_v41, 0.0 }
 0x1fc   :  { %v434_v25 = vadd.f32 %v387_v58, %v348_v53  ;;  %v389_v60 = vpop.f32.mrb[6].mxu0  ;;  %v430_v61 = vpop.f32.mrb[6].mxu1  ;;  %v436_v37 = vadd.f32 %v428_v59, %v350_v35 }
 0x1fd   :  { %v1287_v62 = vmul.f32 -1.442695, %v433_v56  ;;  %v390_v63 = vpop.f32.mrb[7].mxu0  ;;  %v431_v27 = vpop.f32.mrb[7].mxu1  ;;  %v341_v61 = vsel %vm340_vm4, %v1823_v45, 0.0  ;;  %v475_v45 = vunpack.c.l.bf16 %v1291_v43 }
 0x1fe   :  { %v1288_v31 = vmul.f32 -1.442695, %v434_v25  ;;  %v1289_v39 = vmul.f32 -1.442695, %v436_v37  ;;  %v467_v55 = vpop.permute.xlu0 %466  ;;  %v476_v63 = vunpack.c.h.bf16 %v1291_v43  ;;  %v1292_v37 = vld [vmem:[%s2251_s1 + $0x28] sm:$0xff] }
 0x1ff   :  { %1401 = vpow2.f32 %v1287_v62  ;;  %vm468_vm10 = vcmp.eq.s32.totalorder %v467_v55, 1 }
 0x200   :  { %1403 = vpow2.f32 %v1288_v31 }
 0x201   :  { %1405 = vpow2.f32 %v1289_v39 }
 0x202   :  { %1407 = vtanh.f32 %v435_v40 }
 0x209   :  { %v1402_v42 = vpop.eup %1401 }
 0x20a   :  { %v1404_v44 = vpop.eup %1403  ;;  %v440_v46 = vadd.f32 1.0, %v1402_v42 }
 0x20b   :  { %v446_v47 = vadd.f32 1.0, %v1404_v44  ;;  %v1406_v48 = vpop.eup %1405 }
 0x20c   :  { %1409 = vrcp.f32 %v440_v46  ;;  %v1408_v49 = vpop.eup %1407  ;;  %v453_v54 = vadd.f32 1.0, %v1406_v48 }
 0x20d   :  { %1411 = vrcp.f32 %v446_v47 }
 0x20e   :  { %1413 = vrcp.f32 %v453_v54 }
 0x216   :  { %v1410_v50 = vpop.eup %1409 }
 0x217   :  { %v1412_v51 = vpop.eup %1411  ;;  %v457_v53 = vmul.f32 %v1410_v50, %v1408_v49  ;;  %v478_v50 = vunpack.c.h.bf16 %v1292_v37 }
 0x218   :  { %v456_v56 = vmul.f32 %v1412_v51, %v342_v52  ;;  %v1414_v59 = vpop.eup %1413 }
 0x21a   :  { %v458_v57 = vadd.f32 %v457_v53, %v456_v56 }
 0x21c   :  { %1415 = vtanh.f32 %v458_v57  ;;  %v1882_v58 = vsel %vm468_vm10, %v458_v57, %v342_v52  ;;  %v477_v52 = vunpack.c.l.bf16 %v1292_v37 }
 0x226   :  { %v1416_v25 = vpop.eup %1415 }
 0x227   :  { %v460_v60 = vmul.f32 %v1416_v25, %v1414_v59 }
 0x229   :  { %v1887_v62 = vsel %vm468_vm10, %v460_v60, %v341_v61 }
 0x22a   :  { %v471_v41 = vpack.c.bf16 %v1887_v62, %v1887_v62 }
 0x22c   :  { %512 = vmatmul.mubr.bf16.vlgmr.msra.gmra.mrb[8].mxu0 %v471_v41  ;;  %553 = vmatmul.mubr.bf16.vlgmr.msra.gmra.mrb[8].mxu1 %v471_v41  ;;  %v595_v41 = vpop.permute.xlu1 %594 }
 0x22d   :  { %608 = vmatpush1.bf16.msra.mxu0 %v1577_v2  ;;  %649 = vmatpush1.bf16.msra.mxu1 %v1607_v7  ;;  %vm596_vm11 = vcmp.eq.s32.totalorder %v595_v41, 1 }
 0x22e   :  { %609 = vmatprep.subr.bf16.mxu0 %v1585_v3  ;;  %650 = vmatprep.subr.bf16.mxu1 %v1626_v10 }
 0x22f   :  { %639 = vmatprep.mubr.bf16.mxu0 %v1545_v1  ;;  %680 = vmatprep.mubr.bf16.mxu1 %v1545_v1 }
 0x231   :  { %610 = vmatpush1.bf16.msra.mxu0 %v1591_v4  ;;  %651 = vmatpush1.bf16.msra.mxu1 %v1631_v11 }
 0x232   :  { %611 = vmatprep.subr.bf16.mxu0 %v1597_v5  ;;  %652 = vmatprep.subr.bf16.mxu1 %v1648_v14 }
 0x235   :  { %612 = vmatpush1.bf16.msra.mxu0 %v1613_v8  ;;  %653 = vmatpush1.bf16.msra.mxu1 %v1655_v15 }
 0x236   :  { %613 = vmatprep.subr.bf16.mxu0 %v1620_v9  ;;  %654 = vmatprep.subr.bf16.mxu1 %v1661_v16 }
 0x239   :  { %614 = vmatpush1.bf16.msra.mxu0 %v1638_v12  ;;  %655 = vmatpush1.bf16.msra.mxu1 %v1679_v19 }
 0x23a   :  { %615 = vmatprep.subr.bf16.mxu0 %v1643_v13  ;;  %656 = vmatprep.subr.bf16.mxu1 %v1685_v20 }
 0x23d   :  { %616 = vmatpush1.bf16.msra.mxu0 %v1667_v17  ;;  %657 = vmatpush1.bf16.msra.mxu1 %v1703_v23 }
 0x23e   :  { %617 = vmatprep.subr.bf16.mxu0 %v1673_v18  ;;  %658 = vmatprep.subr.bf16.mxu1 %v1709_v24 }
 0x241   :  { %618 = vmatpush1.bf16.msra.mxu0 %v1691_v21  ;;  %659 = vmatpush1.bf16.msra.mxu1 %v1735_v29 }
 0x242   :  { %619 = vmatprep.subr.bf16.mxu0 %v1696_v22  ;;  %660 = vmatprep.subr.bf16.mxu1 %v1741_v30 }
 0x245   :  { %620 = vmatpush1.bf16.msra.mxu0 %v1721_v26  ;;  %661 = vmatpush1.bf16.msra.mxu1 %v1756_v33 }
 0x246   :  { %621 = vmatprep.subr.bf16.mxu0 %v1729_v28  ;;  %662 = vmatprep.subr.bf16.mxu1 %v1762_v34 }
 0x249   :  { %622 = vmatpush1.bf16.msra.mxu0 %v1748_v32  ;;  %663 = vmatpush1.bf16.msra.mxu1 %v1771_v36 }
 0x24a   :  { %735 = vmatprep.subr.bf16.mxu0 %v1570_v0  ;;  %776 = vmatprep.subr.bf16.mxu1 %v1602_v6 }
 0x2ff   :  { %v513_v27 = vpop.f32.mrb[8].mxu0  ;;  %v554_v31 = vpop.f32.mrb[8].mxu1 }
 0x300   :  { %v561_v35 = vadd.f32 %v513_v27, %v475_v45  ;;  %v515_v38 = vpop.f32.mrb[9].mxu0  ;;  %v556_v39 = vpop.f32.mrb[9].mxu1  ;;  %v563_v54 = vadd.f32 %v554_v31, %v477_v52 }
 0x301   :  { %v562_v40 = vadd.f32 %v515_v38, %v476_v63  ;;  %v517_v42 = vpop.f32.mrb[10].mxu0  ;;  %v558_v44 = vpop.f32.mrb[10].mxu1  ;;  %v564_v51 = vadd.f32 %v556_v39, %v478_v50 }
 0x302   :  { %v1293_v46 = vmul.f32 -1.442695, %v561_v35  ;;  %v518_v47 = vpop.f32.mrb[11].mxu0  ;;  %v559_v48 = vpop.f32.mrb[11].mxu1 }
 0x303   :  { %v1294_v49 = vmul.f32 -1.442695, %v562_v40  ;;  %v1295_v53 = vmul.f32 -1.442695, %v564_v51 }
 0x304   :  { %1417 = vpow2.f32 %v1293_v46 }
 0x305   :  { %1419 = vpow2.f32 %v1294_v49  ;;  %v1298_v49 = vld [vmem:[%s2251_s1 + $0x38] sm:$0xff] }
 0x306   :  { %1421 = vpow2.f32 %v1295_v53 }
 0x307   :  { %1423 = vtanh.f32 %v563_v54 }
 0x30e   :  { %v1418_v56 = vpop.eup %1417 }
 0x30f   :  { %v1420_v55 = vpop.eup %1419  ;;  %v568_v57 = vadd.f32 1.0, %v1418_v56 }
 0x310   :  { %v574_v59 = vadd.f32 1.0, %v1420_v55  ;;  %v1422_v25 = vpop.eup %1421 }
 0x311   :  { %1425 = vrcp.f32 %v568_v57  ;;  %v1424_v60 = vpop.eup %1423  ;;  %v581_v45 = vadd.f32 1.0, %v1422_v25  ;;  %v606_v25 = vunpack.c.h.bf16 %v1298_v49 }
 0x312   :  { %1427 = vrcp.f32 %v574_v59 }
 0x313   :  { %1429 = vrcp.f32 %v581_v45 }
 0x31b   :  { %v1426_v61 = vpop.eup %1425 }
 0x31c   :  { %v1428_v43 = vpop.eup %1427  ;;  %v585_v63 = vmul.f32 %v1426_v61, %v1424_v60  ;;  %v605_v61 = vunpack.c.l.bf16 %v1298_v49 }
 0x31d   :  { %v584_v27 = vmul.f32 %v1428_v43, %v1882_v58  ;;  %v1430_v37 = vpop.eup %1429 }
 0x31f   :  { %v586_v35 = vadd.f32 %v585_v63, %v584_v27 }
 0x321   :  { %1431 = vtanh.f32 %v586_v35  ;;  %v1933_v31 = vsel %vm596_vm11, %v586_v35, %v1882_v58  ;;  %v1297_v58 = vld [vmem:[%s2251_s1 + $0x30] sm:$0xff] }
 0x322   :  { %v604_v44 = vunpack.c.h.bf16 %v1297_v58 }
 0x32b   :  { %v1432_v38 = vpop.eup %1431 }
 0x32c   :  { %v588_v39 = vmul.f32 %v1432_v38, %v1430_v37 }
 0x32e   :  { %v1936_v40 = vsel %vm596_vm11, %v588_v39, %v1887_v62  ;;  %v603_v62 = vunpack.c.l.bf16 %v1297_v58 }
 0x32f   :  { %v599_v42 = vpack.c.bf16 %v1936_v40, %v1936_v40 }
 0x331   :  { %640 = vmatmul.mubr.bf16.vlgmr.msra.gmra.mrb[12].mxu0 %v599_v42  ;;  %681 = vmatmul.mubr.bf16.vlgmr.msra.gmra.mrb[12].mxu1 %v599_v42 }
 0x332   :  { %736 = vmatpush1.bf16.msra.mxu0 %v1577_v2  ;;  %777 = vmatpush1.bf16.msra.mxu1 %v1607_v7 }
 0x333   :  { %737 = vmatprep.subr.bf16.mxu0 %v1585_v3  ;;  %778 = vmatprep.subr.bf16.mxu1 %v1626_v10 }
 0x334   :  { %767 = vmatprep.mubr.bf16.mxu0 %v1545_v1  ;;  %808 = vmatprep.mubr.bf16.mxu1 %v1545_v1 }
 0x336   :  { %738 = vmatpush1.bf16.msra.mxu0 %v1591_v4  ;;  %779 = vmatpush1.bf16.msra.mxu1 %v1631_v11 }
 0x337   :  { %739 = vmatprep.subr.bf16.mxu0 %v1597_v5  ;;  %780 = vmatprep.subr.bf16.mxu1 %v1648_v14 }
 0x33a   :  { %740 = vmatpush1.bf16.msra.mxu0 %v1613_v8  ;;  %781 = vmatpush1.bf16.msra.mxu1 %v1655_v15 }
 0x33b   :  { %741 = vmatprep.subr.bf16.mxu0 %v1620_v9  ;;  %782 = vmatprep.subr.bf16.mxu1 %v1661_v16 }
 0x33e   :  { %742 = vmatpush1.bf16.msra.mxu0 %v1638_v12  ;;  %783 = vmatpush1.bf16.msra.mxu1 %v1679_v19 }
 0x33f   :  { %743 = vmatprep.subr.bf16.mxu0 %v1643_v13  ;;  %784 = vmatprep.subr.bf16.mxu1 %v1685_v20 }
 0x342   :  { %744 = vmatpush1.bf16.msra.mxu0 %v1667_v17  ;;  %785 = vmatpush1.bf16.msra.mxu1 %v1703_v23 }
 0x343   :  { %745 = vmatprep.subr.bf16.mxu0 %v1673_v18  ;;  %786 = vmatprep.subr.bf16.mxu1 %v1709_v24 }
 0x346   :  { %746 = vmatpush1.bf16.msra.mxu0 %v1691_v21  ;;  %787 = vmatpush1.bf16.msra.mxu1 %v1735_v29 }
 0x347   :  { %747 = vmatprep.subr.bf16.mxu0 %v1696_v22  ;;  %788 = vmatprep.subr.bf16.mxu1 %v1741_v30 }
 0x34a   :  { %748 = vmatpush1.bf16.msra.mxu0 %v1721_v26  ;;  %789 = vmatpush1.bf16.msra.mxu1 %v1756_v33 }
 0x34b   :  { %749 = vmatprep.subr.bf16.mxu0 %v1729_v28  ;;  %790 = vmatprep.subr.bf16.mxu1 %v1762_v34 }
 0x34e   :  { %750 = vmatpush1.bf16.msra.mxu0 %v1748_v32  ;;  %791 = vmatpush1.bf16.msra.mxu1 %v1771_v36 }
 0x34f   :  { %863 = vmatprep.subr.bf16.mxu0 %v1570_v0  ;;  %904 = vmatprep.subr.bf16.mxu1 %v1602_v6 }
 0x404   :  { %v641_v46 = vpop.f32.mrb[12].mxu0  ;;  %v682_v47 = vpop.f32.mrb[12].mxu1 }
 0x405   :  { %v689_v48 = vadd.f32 %v641_v46, %v603_v62  ;;  %v643_v50 = vpop.f32.mrb[13].mxu0  ;;  %v684_v51 = vpop.f32.mrb[13].mxu1  ;;  %v691_v43 = vadd.f32 %v682_v47, %v605_v61 }
 0x406   :  { %v690_v52 = vadd.f32 %v643_v50, %v604_v44  ;;  %v645_v53 = vpop.f32.mrb[14].mxu0  ;;  %v686_v54 = vpop.f32.mrb[14].mxu1  ;;  %v692_v60 = vadd.f32 %v684_v51, %v606_v25 }
 0x407   :  { %v1299_v56 = vmul.f32 -1.442695, %v689_v48  ;;  %v646_v55 = vpop.f32.mrb[15].mxu0  ;;  %v687_v57 = vpop.f32.mrb[15].mxu1 }
 0x408   :  { %v1300_v59 = vmul.f32 -1.442695, %v690_v52  ;;  %v1301_v41 = vmul.f32 -1.442695, %v692_v60  ;;  %v723_v46 = vpop.permute.xlu1 %722 }
 0x409   :  { %1433 = vpow2.f32 %v1299_v56  ;;  %vm724_vm12 = vcmp.eq.s32.totalorder %v723_v46, 1  ;;  %v2047_v46 = vld [vmem:[%s2249_s2 + $0x8] ss:$16 sps:$4 sm:$0xff]  }
 0x40a   :  { %1435 = vpow2.f32 %v1300_v59 }
 0x40b   :  { %1437 = vpow2.f32 %v1301_v41 }
 0x40c   :  { %1439 = vtanh.f32 %v691_v43 }
 0x413   :  { %v1434_v45 = vpop.eup %1433 }
 0x414   :  { %v1436_v63 = vpop.eup %1435  ;;  %v696_v27 = vadd.f32 1.0, %v1434_v45 }
 0x415   :  { %v702_v35 = vadd.f32 1.0, %v1436_v63  ;;  %v1438_v37 = vpop.eup %1437 }
 0x416   :  { %1441 = vrcp.f32 %v696_v27  ;;  %v1440_v38 = vpop.eup %1439  ;;  %v709_v62 = vadd.f32 1.0, %v1438_v37  ;;  %v851_v27 = vpop.permute.xlu0 %850 }
 0x417   :  { %1443 = vrcp.f32 %v702_v35  ;;  %vm852_vm13 = vcmp.eq.s32.totalorder %v851_v27, 1 }
 0x418   :  { %1445 = vrcp.f32 %v709_v62 }
 0x420   :  { %v1442_v39 = vpop.eup %1441 }
 0x421   :  { %v1444_v42 = vpop.eup %1443  ;;  %v713_v58 = vmul.f32 %v1442_v39, %v1440_v38 }
 0x422   :  { %v712_v44 = vmul.f32 %v1444_v42, %v1933_v31  ;;  %v1446_v49 = vpop.eup %1445 }
 0x424   :  { %v714_v48 = vadd.f32 %v713_v58, %v712_v44  ;;  %v2041_v44 = vld [vmem:[%s2249_s2] ss:$16 sps:$4 sm:$0xff]  }
 0x426   :  { %1447 = vtanh.f32 %v714_v48  ;;  %v1982_v47 = vsel %vm724_vm12, %v714_v48, %v1933_v31  ;;  %v2053_v48 = vld [vmem:[%s2249_s2 + $0x24] ss:$16 sps:$4 sm:$0xff]  }
 0x430   :  { %v1448_v50 = vpop.eup %1447 }
 0x431   :  { %v716_v51 = vmul.f32 %v1448_v50, %v1446_v49  ;;  %v2067_v49 = vld [vmem:[%s2249_s2 + $0x20] ss:$16 sps:$4 sm:$0xff]   ;;  %v2073_v50 = vld [vmem:[%s2249_s2 + $0x28] ss:$16 sps:$4 sm:$0xff]  }
 0x433   :  { %v1985_v52 = vsel %vm724_vm12, %v716_v51, %v1936_v40  ;;  %v2079_v51 = vld [vmem:[%s2249_s2 + $0x44] ss:$16 sps:$4 sm:$0xff]  }
 0x434   :  { %v727_v53 = vpack.c.bf16 %v1985_v52, %v1985_v52 }
 0x436   :  { %768 = vmatmul.mubr.bf16.vlgmr.msra.gmra.mrb[16].mxu0 %v727_v53  ;;  %809 = vmatmul.mubr.bf16.vlgmr.msra.gmra.mrb[16].mxu1 %v727_v53  ;;  %v2091_v53 = vld [vmem:[%s2249_s2 + $0x40] ss:$16 sps:$4 sm:$0xff]  }
 0x437   :  { %864 = vmatpush1.bf16.msra.mxu0 %v1577_v2  ;;  %905 = vmatpush1.bf16.msra.mxu1 %v1607_v7  ;;  %v1303_v2 = vld [vmem:[%s2251_s1 + $0x40] sm:$0xff] }
 0x438   :  { %865 = vmatprep.subr.bf16.mxu0 %v1585_v3  ;;  %906 = vmatprep.subr.bf16.mxu1 %v1626_v10  ;;  %v731_v3 = vunpack.c.l.bf16 %v1303_v2 }
 0x439   :  { %895 = vmatprep.mubr.bf16.mxu0 %v1545_v1  ;;  %936 = vmatprep.mubr.bf16.mxu1 %v1545_v1 }
 0x43b   :  { %866 = vmatpush1.bf16.msra.mxu0 %v1591_v4  ;;  %907 = vmatpush1.bf16.msra.mxu1 %v1631_v11  ;;  %v732_v4 = vunpack.c.h.bf16 %v1303_v2  ;;  %v2097_v2 = vld [vmem:[%s2249_s2 + $0x48] ss:$16 sps:$4 sm:$0xff]  }
 0x43c   :  { %867 = vmatprep.subr.bf16.mxu0 %v1597_v5  ;;  %908 = vmatprep.subr.bf16.mxu1 %v1648_v14 }
 0x43f   :  { %868 = vmatpush1.bf16.msra.mxu0 %v1613_v8  ;;  %909 = vmatpush1.bf16.msra.mxu1 %v1655_v15 }
 0x440   :  { %869 = vmatprep.subr.bf16.mxu0 %v1620_v9  ;;  %910 = vmatprep.subr.bf16.mxu1 %v1661_v16  ;;  %v1304_v9 = vld [vmem:[%s2251_s1 + $0x48] sm:$0xff] }
 0x441   :  { %v733_v31 = vunpack.c.l.bf16 %v1304_v9 }
 0x443   :  { %870 = vmatpush1.bf16.msra.mxu0 %v1638_v12  ;;  %911 = vmatpush1.bf16.msra.mxu1 %v1679_v19 }
 0x444   :  { %871 = vmatprep.subr.bf16.mxu0 %v1643_v13  ;;  %912 = vmatprep.subr.bf16.mxu1 %v1685_v20 }
 0x447   :  { %872 = vmatpush1.bf16.msra.mxu0 %v1667_v17  ;;  %913 = vmatpush1.bf16.msra.mxu1 %v1703_v23  ;;  %v734_v17 = vunpack.c.h.bf16 %v1304_v9 }
 0x448   :  { %873 = vmatprep.subr.bf16.mxu0 %v1673_v18  ;;  %914 = vmatprep.subr.bf16.mxu1 %v1709_v24 }
 0x44b   :  { %874 = vmatpush1.bf16.msra.mxu0 %v1691_v21  ;;  %915 = vmatpush1.bf16.msra.mxu1 %v1735_v29 }
 0x44c   :  { %875 = vmatprep.subr.bf16.mxu0 %v1696_v22  ;;  %916 = vmatprep.subr.bf16.mxu1 %v1741_v30 }
 0x44f   :  { %876 = vmatpush1.bf16.msra.mxu0 %v1721_v26  ;;  %917 = vmatpush1.bf16.msra.mxu1 %v1756_v33 }
 0x450   :  { %877 = vmatprep.subr.bf16.mxu0 %v1729_v28  ;;  %918 = vmatprep.subr.bf16.mxu1 %v1762_v34 }
 0x453   :  { %878 = vmatpush1.bf16.msra.mxu0 %v1748_v32  ;;  %919 = vmatpush1.bf16.msra.mxu1 %v1771_v36 }
 0x454   :  { %991 = vmatprep.subr.bf16.mxu0 %v1570_v0  ;;  %1032 = vmatprep.subr.bf16.mxu1 %v1602_v6 }
 0x509   :  { %v769_v5 = vpop.f32.mrb[16].mxu0  ;;  %v810_v7 = vpop.f32.mrb[16].mxu1 }
 0x50a   :  { %v817_v8 = vadd.f32 %v769_v5, %v731_v3  ;;  %v771_v10 = vpop.f32.mrb[17].mxu0  ;;  %v812_v11 = vpop.f32.mrb[17].mxu1  ;;  %v819_v54 = vadd.f32 %v810_v7, %v733_v31  ;;  %v2103_v3 = vld [vmem:[%s2249_s2 + $0x64] ss:$16 sps:$4 sm:$0xff]   ;;  %v2115_v5 = vld [vmem:[%s2249_s2 + $0x60] ss:$16 sps:$4 sm:$0xff]  }
 0x50b   :  { %v818_v12 = vadd.f32 %v771_v10, %v732_v4  ;;  %v773_v13 = vpop.f32.mrb[18].mxu0  ;;  %v814_v0 = vpop.f32.mrb[18].mxu1  ;;  %v820_v18 = vadd.f32 %v812_v11, %v734_v17  ;;  %v2109_v4 = vld [vmem:[%s2249_s2 + $0x6c] ss:$16 sps:$4 sm:$0xff]   ;;  %v2122_v7 = vld [vmem:[%s2249_s2 + $0x84] ss:$16 sps:$4 sm:$0xff]  }
 0x50c   :  { %v1305_v14 = vmul.f32 -1.442695, %v817_v8  ;;  %v774_v6 = vpop.f32.mrb[19].mxu0  ;;  %v815_v15 = vpop.f32.mrb[19].mxu1  ;;  %v2129_v8 = vld [vmem:[%s2249_s2 + $0x80] ss:$16 sps:$4 sm:$0xff]  }
 0x50d   :  { %v1306_v16 = vmul.f32 -1.442695, %v818_v12  ;;  %v1307_v40 = vmul.f32 -1.442695, %v820_v18 }
 0x50e   :  { %1449 = vpow2.f32 %v1305_v14 }
 0x50f   :  { %1451 = vpow2.f32 %v1306_v16 }
 0x510   :  { %1453 = vpow2.f32 %v1307_v40 }
 0x511   :  { %1455 = vtanh.f32 %v819_v54 }
 0x518   :  { %v1450_v56 = vpop.eup %1449 }
 0x519   :  { %v1452_v55 = vpop.eup %1451  ;;  %v824_v57 = vadd.f32 1.0, %v1450_v56 }
 0x51a   :  { %v830_v59 = vadd.f32 1.0, %v1452_v55  ;;  %v1454_v25 = vpop.eup %1453 }
 0x51b   :  { %1457 = vrcp.f32 %v824_v57  ;;  %v1456_v60 = vpop.eup %1455  ;;  %v837_v45 = vadd.f32 1.0, %v1454_v25 }
 0x51c   :  { %1459 = vrcp.f32 %v830_v59 }
 0x51d   :  { %1461 = vrcp.f32 %v837_v45 }
 0x525   :  { %v1458_v61 = vpop.eup %1457 }
 0x526   :  { %v1460_v41 = vpop.eup %1459  ;;  %v841_v43 = vmul.f32 %v1458_v61, %v1456_v60  ;;  %v979_v61 = vpop.permute.xlu1 %978 }
 0x527   :  { %v840_v63 = vmul.f32 %v1460_v41, %v1982_v47  ;;  %v1462_v38 = vpop.eup %1461  ;;  %vm980_vm14 = vcmp.eq.s32.totalorder %v979_v61, 1 }
 0x529   :  { %v842_v35 = vadd.f32 %v841_v43, %v840_v63 }
 0x52b   :  { %1463 = vtanh.f32 %v842_v35  ;;  %v2031_v37 = vsel %vm852_vm13, %v842_v35, %v1982_v47  ;;  %v2059_v47 = vld [vmem:[%s2249_s2 + $0x2c] ss:$16 sps:$4 sm:$0xff]  }
 0x535   :  { %v1464_v39 = vpop.eup %1463 }
 0x536   :  { %v844_v42 = vmul.f32 %v1464_v39, %v1462_v38  ;;  %v1533_v39 = vld [vmem:[%s2249_s2 + $0x88] ss:$16 sps:$4 sm:$0xff]  }
 0x538   :  { %v2034_v58 = vsel %vm852_vm13, %v844_v42, %v1985_v52  ;;  %v2085_v52 = vld [vmem:[%s2249_s2 + $0x4c] ss:$16 sps:$4 sm:$0xff]  }
 0x539   :  { %v855_v62 = vpack.c.bf16 %v2034_v58, %v2034_v58  ;;  %v1534_v42 = vld [vmem:[%s2249_s2 + $0xac] ss:$16 sps:$4 sm:$0xff]  }
 0x53b   :  { %896 = vmatmul.mubr.bf16.vlgmr.msra.gmra.mrb[20].mxu0 %v855_v62  ;;  %937 = vmatmul.mubr.bf16.vlgmr.msra.gmra.mrb[20].mxu1 %v855_v62  ;;  %v1536_v62 = vld [vmem:[%s2249_s2 + $0xa8] ss:$16 sps:$4 sm:$0xff]  }
 0x53c   :  { %992 = vmatpush1.bf16.msra.mxu0 %v2041_v44  ;;  %1033 = vmatpush1.bf16.msra.mxu1 %v2047_v46 }
 0x53d   :  { %993 = vmatprep.subr.bf16.mxu0 %v2053_v48  ;;  %1034 = vmatprep.subr.bf16.mxu1 %v2059_v47 }
 0x53e   :  { %1023 = vmatprep.mubr.bf16.mxu0 %v1545_v1  ;;  %1064 = vmatprep.mubr.bf16.mxu1 %v1545_v1 }
 0x540   :  { %994 = vmatpush1.bf16.msra.mxu0 %v2067_v49  ;;  %1035 = vmatpush1.bf16.msra.mxu1 %v2073_v50 }
 0x541   :  { %995 = vmatprep.subr.bf16.mxu0 %v2079_v51  ;;  %1036 = vmatprep.subr.bf16.mxu1 %v2085_v52 }
 0x544   :  { %996 = vmatpush1.bf16.msra.mxu0 %v2091_v53  ;;  %1037 = vmatpush1.bf16.msra.mxu1 %v2097_v2 }
 0x545   :  { %997 = vmatprep.subr.bf16.mxu0 %v2103_v3  ;;  %1038 = vmatprep.subr.bf16.mxu1 %v2109_v4 }
 0x548   :  { %998 = vmatpush1.bf16.msra.mxu0 %v2115_v5  ;;  %1039 = vmatpush1.bf16.msra.mxu1 %v1679_v19  ;;  %v2136_v19 = vld [vmem:[%s2249_s2 + $0xa4] ss:$16 sps:$4 sm:$0xff]  }
 0x549   :  { %999 = vmatprep.subr.bf16.mxu0 %v2122_v7  ;;  %1040 = vmatprep.subr.bf16.mxu1 %v1685_v20  ;;  %v1529_v20 = vld [vmem:[%s2249_s2 + $0x4] ss:$16 sps:$4 sm:$0xff]  }
 0x54c   :  { %1000 = vmatpush1.bf16.msra.mxu0 %v2129_v8  ;;  %1041 = vmatpush1.bf16.msra.mxu1 %v1703_v23 }
 0x54d   :  { %1001 = vmatprep.subr.bf16.mxu0 %v2136_v19  ;;  %1042 = vmatprep.subr.bf16.mxu1 %v1709_v24 }
 0x550   :  { %1002 = vmatpush1.bf16.msra.mxu0 %v1691_v21  ;;  %1043 = vmatpush1.bf16.msra.mxu1 %v1735_v29  ;;  %v1530_v21 = vld [vmem:[%s2249_s2 + $0xc] ss:$16 sps:$4 sm:$0xff]  }
 0x551   :  { %1003 = vmatprep.subr.bf16.mxu0 %v1696_v22  ;;  %1044 = vmatprep.subr.bf16.mxu1 %v1741_v30  ;;  %v1309_v22 = vld [vmem:[%s2251_s1 + $0x50] sm:$0xff]  ;;  %v1310_v30 = vld [vmem:[%s2251_s1 + $0x58] sm:$0xff] }
 0x552   :  { %v859_v23 = vunpack.c.l.bf16 %v1309_v22  ;;  %v860_v24 = vunpack.c.h.bf16 %v1309_v22  ;;  %v862_v0 = vunpack.c.h.bf16 %v1310_v30  ;;  %v861_v6 = vunpack.c.l.bf16 %v1310_v30 }
 0x554   :  { %1004 = vmatpush1.bf16.msra.mxu0 %v1721_v26  ;;  %1045 = vmatpush1.bf16.msra.mxu1 %v1756_v33 }
 0x555   :  { %1005 = vmatprep.subr.bf16.mxu0 %v1729_v28  ;;  %1046 = vmatprep.subr.bf16.mxu1 %v1762_v34 }
 0x558   :  { %1006 = vmatpush1.bf16.msra.mxu0 %v1748_v32  ;;  %1047 = vmatpush1.bf16.msra.mxu1 %v1771_v36 }
 0x559   :  { %1119 = vmatprep.subr.bf16.mxu0 %v1529_v20  ;;  %1160 = vmatprep.subr.bf16.mxu1 %v1530_v21 }
 0x60e   :  { %v897_v26 = vpop.f32.mrb[20].mxu0  ;;  %v938_v28 = vpop.f32.mrb[20].mxu1 }
 0x60f   :  { %v945_v29 = vadd.f32 %v897_v26, %v859_v23  ;;  %v899_v32 = vpop.f32.mrb[21].mxu0  ;;  %v940_v33 = vpop.f32.mrb[21].mxu1  ;;  %v947_v16 = vadd.f32 %v938_v28, %v861_v6 }
 0x610   :  { %v946_v34 = vadd.f32 %v899_v32, %v860_v24  ;;  %v901_v36 = vpop.f32.mrb[22].mxu0  ;;  %v942_v9 = vpop.f32.mrb[22].mxu1  ;;  %v948_v14 = vadd.f32 %v940_v33, %v862_v0 }
 0x611   :  { %v1311_v10 = vmul.f32 -1.442695, %v945_v29  ;;  %v902_v11 = vpop.f32.mrb[23].mxu0  ;;  %v943_v12 = vpop.f32.mrb[23].mxu1 }
 0x612   :  { %v1312_v13 = vmul.f32 -1.442695, %v946_v34  ;;  %v1313_v15 = vmul.f32 -1.442695, %v948_v14 }
 0x613   :  { %1465 = vpow2.f32 %v1311_v10 }
 0x614   :  { %1467 = vpow2.f32 %v1312_v13 }
 0x615   :  { %1469 = vpow2.f32 %v1313_v15 }
 0x616   :  { %1471 = vtanh.f32 %v947_v16 }
 0x61d   :  { %v1466_v17 = vpop.eup %1465 }
 0x61e   :  { %v1468_v18 = vpop.eup %1467  ;;  %v952_v31 = vadd.f32 1.0, %v1466_v17  ;;  %v1107_v17 = vpop.permute.xlu0 %1106 }
 0x61f   :  { %v958_v40 = vadd.f32 1.0, %v1468_v18  ;;  %v1470_v54 = vpop.eup %1469  ;;  %vm1108_vm15 = vcmp.eq.s32.totalorder %v1107_v17, 1 }
 0x620   :  { %1473 = vrcp.f32 %v952_v31  ;;  %v1472_v56 = vpop.eup %1471  ;;  %v965_v25 = vadd.f32 1.0, %v1470_v54 }
 0x621   :  { %1475 = vrcp.f32 %v958_v40 }
 0x622   :  { %1477 = vrcp.f32 %v965_v25  ;;  %v1321_v25 = vld [vmem:[%s2251_s1 + $0x70] sm:$0xff] }
 0x623   :  { %v1116_v61 = vunpack.c.h.bf16 %v1321_v25 }
 0x62a   :  { %v1474_v55 = vpop.eup %1473 }
 0x62b   :  { %v1476_v57 = vpop.eup %1475  ;;  %v969_v59 = vmul.f32 %v1474_v55, %v1472_v56 }
 0x62c   :  { %v968_v60 = vmul.f32 %v1476_v57, %v2031_v37  ;;  %v1478_v45 = vpop.eup %1477 }
 0x62e   :  { %v970_v41 = vadd.f32 %v969_v59, %v968_v60  ;;  %v1115_v60 = vunpack.c.l.bf16 %v1321_v25 }
 0x630   :  { %1479 = vtanh.f32 %v970_v41  ;;  %v2164_v43 = vsel %vm980_vm14, %v970_v41, %v2031_v37  ;;  %v1532_v37 = vld [vmem:[%s2249_s2 + $0x8c] ss:$16 sps:$4 sm:$0xff]  }
 0x63a   :  { %v1480_v63 = vpop.eup %1479 }
 0x63b   :  { %v972_v27 = vmul.f32 %v1480_v63, %v1478_v45 }
 0x63d   :  { %v2167_v35 = vsel %vm980_vm14, %v972_v27, %v2034_v58  ;;  %v1535_v58 = vld [vmem:[%s2249_s2 + $0xa0] ss:$16 sps:$4 sm:$0xff]  }
 0x63e   :  { %v983_v38 = vpack.c.bf16 %v2167_v35, %v2167_v35 }
 0x640   :  { %1024 = vmatmul.mubr.bf16.vlgmr.msra.gmra.mrb[24].mxu0 %v983_v38  ;;  %1065 = vmatmul.mubr.bf16.vlgmr.msra.gmra.mrb[24].mxu1 %v983_v38 }
 0x641   :  { %1120 = vmatpush1.bf16.msra.mxu0 %v2041_v44  ;;  %1161 = vmatpush1.bf16.msra.mxu1 %v2047_v46  ;;  %v1537_v44 = vld [vmem:[%s2249_s2 + $0xc4] ss:$16 sps:$4 sm:$0xff]   ;;  %v1538_v46 = vld [vmem:[%s2249_s2 + $0xcc] ss:$16 sps:$4 sm:$0xff]  }
 0x642   :  { %1121 = vmatprep.subr.bf16.mxu0 %v2053_v48  ;;  %1162 = vmatprep.subr.bf16.mxu1 %v2059_v47  ;;  %v1539_v48 = vld [vmem:[%s2249_s2 + $0xc0] ss:$16 sps:$4 sm:$0xff]   ;;  %v1540_v47 = vld [vmem:[%s2249_s2 + $0xc8] ss:$16 sps:$4 sm:$0xff]  }
 0x643   :  { %1151 = vmatprep.mubr.bf16.mxu0 %v1545_v1  ;;  %1192 = vmatprep.mubr.bf16.mxu1 %v1545_v1  ;;  %v1531_v1 = vld [vmem:[%s2249_s2 + $0x68] ss:$16 sps:$4 sm:$0xff]  }
 0x645   :  { %1122 = vmatpush1.bf16.msra.mxu0 %v2067_v49  ;;  %1163 = vmatpush1.bf16.msra.mxu1 %v2073_v50  ;;  %v1541_v49 = vld [vmem:[%s2249_s2 + $0xe4] ss:$16 sps:$4 sm:$0xff]   ;;  %v1542_v50 = vld [vmem:[%s2249_s2 + $0xec] ss:$16 sps:$4 sm:$0xff]  }
 0x646   :  { %1123 = vmatprep.subr.bf16.mxu0 %v2079_v51  ;;  %1164 = vmatprep.subr.bf16.mxu1 %v2085_v52  ;;  %v1543_v51 = vld [vmem:[%s2249_s2 + $0xe0] ss:$16 sps:$4 sm:$0xff]   ;;  %v1544_v52 = vld [vmem:[%s2249_s2 + $0xe8] ss:$16 sps:$4 sm:$0xff]  }
 0x649   :  { %1124 = vmatpush1.bf16.msra.mxu0 %v2091_v53  ;;  %1165 = vmatpush1.bf16.msra.mxu1 %v2097_v2  ;;  %v1315_v53 = vld [vmem:[%s2251_s1 + $0x60] sm:$0xff] }
 0x64a   :  { %1125 = vmatprep.subr.bf16.mxu0 %v2103_v3  ;;  %1166 = vmatprep.subr.bf16.mxu1 %v2109_v4  ;;  %v987_v2 = vunpack.c.l.bf16 %v1315_v53  ;;  %v988_v3 = vunpack.c.h.bf16 %v1315_v53 }
 0x64d   :  { %1126 = vmatpush1.bf16.msra.mxu0 %v2115_v5  ;;  %1167 = vmatpush1.bf16.msra.mxu1 %v1531_v1 }
 0x64e   :  { %1127 = vmatprep.subr.bf16.mxu0 %v2122_v7  ;;  %1168 = vmatprep.subr.bf16.mxu1 %v1532_v37 }
 0x651   :  { %1128 = vmatpush1.bf16.msra.mxu0 %v2129_v8  ;;  %1169 = vmatpush1.bf16.msra.mxu1 %v1533_v39  ;;  %v1316_v8 = vld [vmem:[%s2251_s1 + $0x68] sm:$0xff] }
 0x652   :  { %1129 = vmatprep.subr.bf16.mxu0 %v2136_v19  ;;  %1170 = vmatprep.subr.bf16.mxu1 %v1534_v42  ;;  %v990_v30 = vunpack.c.h.bf16 %v1316_v8  ;;  %v989_v33 = vunpack.c.l.bf16 %v1316_v8 }
 0x655   :  { %1130 = vmatpush1.bf16.msra.mxu0 %v1535_v58  ;;  %1171 = vmatpush1.bf16.msra.mxu1 %v1536_v62 }
 0x656   :  { %1131 = vmatprep.subr.bf16.mxu0 %v1537_v44  ;;  %1172 = vmatprep.subr.bf16.mxu1 %v1538_v46 }
 0x659   :  { %1132 = vmatpush1.bf16.msra.mxu0 %v1539_v48  ;;  %1173 = vmatpush1.bf16.msra.mxu1 %v1540_v47 }
 0x65a   :  { %1133 = vmatprep.subr.bf16.mxu0 %v1541_v49  ;;  %1174 = vmatprep.subr.bf16.mxu1 %v1542_v50 }
 0x65d   :  { %1134 = vmatpush1.bf16.msra.mxu0 %v1543_v51  ;;  %1175 = vmatpush1.bf16.msra.mxu1 %v1544_v52 }
 0x713   :  { %v1025_v4 = vpop.f32.mrb[24].mxu0  ;;  %v1066_v5 = vpop.f32.mrb[24].mxu1 }
 0x714   :  { %v1073_v7 = vadd.f32 %v1025_v4, %v987_v2  ;;  %v1027_v19 = vpop.f32.mrb[25].mxu0  ;;  %v1068_v20 = vpop.f32.mrb[25].mxu1  ;;  %v1075_v36 = vadd.f32 %v1066_v5, %v989_v33 }
 0x715   :  { %v1074_v21 = vadd.f32 %v1027_v19, %v988_v3  ;;  %v1029_v22 = vpop.f32.mrb[26].mxu0  ;;  %v1070_v23 = vpop.f32.mrb[26].mxu1  ;;  %v1076_v32 = vadd.f32 %v1068_v20, %v990_v30 }
 0x716   :  { %v1317_v24 = vmul.f32 -1.442695, %v1073_v7  ;;  %v1030_v26 = vpop.f32.mrb[27].mxu0  ;;  %v1071_v28 = vpop.f32.mrb[27].mxu1 }
 0x717   :  { %v1318_v29 = vmul.f32 -1.442695, %v1074_v21  ;;  %v1319_v34 = vmul.f32 -1.442695, %v1076_v32  ;;  %v1235_v22 = vpop.permute.xlu1 %1234 }
 0x718   :  { %1481 = vpow2.f32 %v1317_v24  ;;  %vm1236_vm0 = vcmp.eq.s32.totalorder %v1235_v22, 1 }
 0x719   :  { %1483 = vpow2.f32 %v1318_v29 }
 0x71a   :  { %1485 = vpow2.f32 %v1319_v34 }
 0x71b   :  { %1487 = vtanh.f32 %v1075_v36 }
 0x722   :  { %v1482_v9 = vpop.eup %1481 }
 0x723   :  { %v1484_v10 = vpop.eup %1483  ;;  %v1080_v11 = vadd.f32 1.0, %v1482_v9 }
 0x724   :  { %v1086_v12 = vadd.f32 1.0, %v1484_v10  ;;  %v1486_v13 = vpop.eup %1485 }
 0x725   :  { %1489 = vrcp.f32 %v1080_v11  ;;  %v1488_v0 = vpop.eup %1487  ;;  %v1093_v16 = vadd.f32 1.0, %v1486_v13 }
 0x726   :  { %1491 = vrcp.f32 %v1086_v12 }
 0x727   :  { %1493 = vrcp.f32 %v1093_v16 }
 0x72f   :  { %v1490_v14 = vpop.eup %1489 }
 0x730   :  { %v1492_v6 = vpop.eup %1491  ;;  %v1097_v15 = vmul.f32 %v1490_v14, %v1488_v0 }
 0x731   :  { %v1096_v18 = vmul.f32 %v1492_v6, %v2164_v43  ;;  %v1494_v54 = vpop.eup %1493 }
 0x733   :  { %v1098_v31 = vadd.f32 %v1097_v15, %v1096_v18 }
 0x735   :  { %1495 = vtanh.f32 %v1098_v31  ;;  %v1110_v40 = vsel %vm1108_vm15, %v1098_v31, %v2164_v43  ;;  %v1322_v43 = vld [vmem:[%s2251_s1 + $0x78] sm:$0xff] }
 0x736   :  { %v1118_v44 = vunpack.c.h.bf16 %v1322_v43  ;;  %v1117_v48 = vunpack.c.l.bf16 %v1322_v43 }
 0x73f   :  { %v1496_v56 = vpop.eup %1495 }
 0x740   :  { %v1100_v55 = vmul.f32 %v1496_v56, %v1494_v54 }
 0x742   :  { %v1109_v57 = vsel %vm1108_vm15, %v1100_v55, %v2167_v35 }
 0x743   :  { %v1111_v59 = vpack.c.bf16 %v1109_v57, %v1109_v57 }
 0x745   :  { %1152 = vmatmul.mubr.bf16.vlgmr.msra.gmra.mrb[28].mxu0 %v1111_v59  ;;  %1193 = vmatmul.mubr.bf16.vlgmr.msra.gmra.mrb[28].mxu1 %v1111_v59 }
 0x818   :  { %v1153_v41 = vpop.f32.mrb[28].mxu0  ;;  %v1194_v45 = vpop.f32.mrb[28].mxu1 }
 0x819   :  { %v1201_v63 = vadd.f32 %v1153_v41, %v1115_v60  ;;  %v1155_v27 = vpop.f32.mrb[29].mxu0  ;;  %v1196_v38 = vpop.f32.mrb[29].mxu1  ;;  %v1203_v49 = vadd.f32 %v1194_v45, %v1117_v48 }
 0x81a   :  { %v1202_v1 = vadd.f32 %v1155_v27, %v1116_v61  ;;  %v1157_v35 = vpop.f32.mrb[30].mxu0  ;;  %v1198_v37 = vpop.f32.mrb[30].mxu1  ;;  %v1204_v46 = vadd.f32 %v1196_v38, %v1118_v44 }
 0x81b   :  { %v1323_v39 = vmul.f32 -1.442695, %v1201_v63  ;;  %v1158_v42 = vpop.f32.mrb[31].mxu0  ;;  %v1199_v58 = vpop.f32.mrb[31].mxu1 }
 0x81c   :  { %v1324_v62 = vmul.f32 -1.442695, %v1202_v1  ;;  %v1325_v47 = vmul.f32 -1.442695, %v1204_v46 }
 0x81d   :  { %1497 = vpow2.f32 %v1323_v39 }
 0x81e   :  { %1499 = vpow2.f32 %v1324_v62 }
 0x81f   :  { %1501 = vpow2.f32 %v1325_v47 }
 0x820   :  { %1503 = vtanh.f32 %v1203_v49 }
 0x827   :  { %v1498_v50 = vpop.eup %1497 }
 0x828   :  { %v1500_v51 = vpop.eup %1499  ;;  %v1208_v52 = vadd.f32 1.0, %v1498_v50 }
 0x829   :  { %v1214_v53 = vadd.f32 1.0, %v1500_v51  ;;  %v1502_v2 = vpop.eup %1501 }
 0x82a   :  { %1505 = vrcp.f32 %v1208_v52  ;;  %v1504_v3 = vpop.eup %1503  ;;  %v1221_v8 = vadd.f32 1.0, %v1502_v2 }
 0x82b   :  { %1507 = vrcp.f32 %v1214_v53 }
 0x82c   :  { %1509 = vrcp.f32 %v1221_v8 }
 0x834   :  { %v1506_v4 = vpop.eup %1505 }
 0x835   :  { %v1508_v5 = vpop.eup %1507  ;;  %v1225_v7 = vmul.f32 %v1506_v4, %v1504_v3 }
 0x836   :  { %v1224_v19 = vmul.f32 %v1508_v5, %v1110_v40  ;;  %v1510_v21 = vpop.eup %1509 }
 0x838   :  { %v1226_v20 = vadd.f32 %v1225_v7, %v1224_v19 }
 0x83a   :  { %1511 = vtanh.f32 %v1226_v20 }
 0x844   :  { %v1512_v23 = vpop.eup %1511 }
 0x845   :  { %v1228_v24 = vmul.f32 %v1512_v23, %v1510_v21 }
 0x847   :  { %v1237_v26 = vsel %vm1236_vm0, %v1228_v24, %v1109_v57 }
 0x848   :  { %1244 = vst [vmem:[%s2252_s3] sm:$0xff] %v1237_v26 }

// kernel: sentiment_forward.2
= control target key start
LH: loop header
LB: loop body
LE: loop exit
PB: predicated region body
PF: predicated region fallthrough
CT: control target
= control target key end

     0   :  { %s2924_s3 = inlined_call_operand.vmem [shape: bf16[640,512], index: 3, kind: input, shape index: {}]   ;;  %s2925_s1 = inlined_call_operand.vmem [shape: bf16[64,256], index: 1, kind: input, shape index: {}]   ;;  %s2926_s0 = inlined_call_operand.vmem [shape: bf16[64,128], index: 0, kind: input, shape index: {}]   ;;  %s2927_s2 = inlined_call_operand.vmem [shape: bf16[64,256], index: 2, kind: input, shape index: {}]   ;;  %s2928_s4 = inlined_call_operand.vmem [shape: f32[1,512], index: 4, kind: input, shape index: {}]   ;;  %s2929_s5 = inlined_call_operand.vmem [shape: bf16[64,512], index: 5, kind: output, shape index: {}]  }
   0x1   :  { %v1994_v0 = vld [vmem:[%s2924_s3 + $0x4] ss:$16 sps:$4 sm:$0xff]   ;;  %v1996_v1 = vld [vmem:[%s2924_s3 + $0xc] ss:$16 sps:$4 sm:$0xff]   ;;  %v1998_v2 = vld [vmem:[%s2924_s3] ss:$16 sps:$4 sm:$0xff]  }
   0x2   :  { %1131 = vmatprep.subr.bf16.mxu0 %v1994_v0  ;;  %v1999_v3 = vld [vmem:[%s2924_s3 + $0x8] ss:$16 sps:$4 sm:$0xff]   ;;  %1350 = vmatprep.subr.bf16.mxu1 %v1996_v1  ;;  %v2000_v4 = vld [vmem:[%s2924_s3 + $0x24] ss:$16 sps:$4 sm:$0xff]   ;;  %v2002_v5 = vld [vmem:[%s2924_s3 + $0x2c] ss:$16 sps:$4 sm:$0xff]  }
   0x3   :  { %1132 = vmatpush1.bf16.msra.mxu0 %v1998_v2  ;;  %1351 = vmatpush1.bf16.msra.mxu1 %v1999_v3  ;;  %v2004_v6 = vld [vmem:[%s2924_s3 + $0x20] ss:$16 sps:$4 sm:$0xff]   ;;  %v2005_v7 = vld [vmem:[%s2924_s3 + $0x28] ss:$16 sps:$4 sm:$0xff]   ;;  %v2006_v8 = vld [vmem:[%s2924_s3 + $0x44] ss:$16 sps:$4 sm:$0xff]  }
   0x4   :  { %1133 = vmatprep.subr.bf16.mxu0 %v2000_v4  ;;  %1352 = vmatprep.subr.bf16.mxu1 %v2002_v5  ;;  %v2008_v9 = vld [vmem:[%s2924_s3 + $0x4c] ss:$16 sps:$4 sm:$0xff]   ;;  %v2010_v10 = vld [vmem:[%s2924_s3 + $0x40] ss:$16 sps:$4 sm:$0xff]   ;;  %v2011_v11 = vld [vmem:[%s2924_s3 + $0x48] ss:$16 sps:$4 sm:$0xff]  }
   0x5   :  { %v2012_v12 = vld [vmem:[%s2924_s3 + $0x64] ss:$16 sps:$4 sm:$0xff]   ;;  %v2014_v13 = vld [vmem:[%s2924_s3 + $0x6c] ss:$16 sps:$4 sm:$0xff]   ;;  %v2016_v14 = vld [vmem:[%s2924_s3 + $0x60] ss:$16 sps:$4 sm:$0xff]  }
   0x6   :  { %v2017_v15 = vld [vmem:[%s2924_s3 + $0x68] ss:$16 sps:$4 sm:$0xff]   ;;  %v2018_v16 = vld [vmem:[%s2924_s3 + $0x84] ss:$16 sps:$4 sm:$0xff]   ;;  %v2020_v17 = vld [vmem:[%s2924_s3 + $0x8c] ss:$16 sps:$4 sm:$0xff]  }
   0x7   :  { %1134 = vmatpush1.bf16.msra.mxu0 %v2004_v6  ;;  %1353 = vmatpush1.bf16.msra.mxu1 %v2005_v7  ;;  %v2022_v18 = vld [vmem:[%s2924_s3 + $0x80] ss:$16 sps:$4 sm:$0xff]   ;;  %v2023_v19 = vld [vmem:[%s2924_s3 + $0x88] ss:$16 sps:$4 sm:$0xff]   ;;  %v2024_v20 = vld [vmem:[%s2924_s3 + $0xa4] ss:$16 sps:$4 sm:$0xff]  }
   0x8   :  { %1135 = vmatprep.subr.bf16.mxu0 %v2006_v8  ;;  %1354 = vmatprep.subr.bf16.mxu1 %v2008_v9  ;;  %v2026_v21 = vld [vmem:[%s2924_s3 + $0xac] ss:$16 sps:$4 sm:$0xff]   ;;  %v2028_v22 = vld [vmem:[%s2924_s3 + $0xa0] ss:$16 sps:$4 sm:$0xff]   ;;  %v2029_v23 = vld [vmem:[%s2924_s3 + $0xa8] ss:$16 sps:$4 sm:$0xff]  }
   0x9   :  { %v2030_v24 = vld [vmem:[%s2924_s3 + $0xc4] ss:$16 sps:$4 sm:$0xff]   ;;  %v2032_v25 = vld [vmem:[%s2924_s3 + $0xcc] ss:$16 sps:$4 sm:$0xff]   ;;  %v2034_v26 = vld [vmem:[%s2924_s3 + $0xc0] ss:$16 sps:$4 sm:$0xff]  }
   0xa   :  { %v2035_v27 = vld [vmem:[%s2924_s3 + $0xc8] ss:$16 sps:$4 sm:$0xff]   ;;  %v2036_v28 = vld [vmem:[%s2924_s3 + $0xe4] ss:$16 sps:$4 sm:$0xff]   ;;  %v2038_v29 = vld [vmem:[%s2924_s3 + $0xec] ss:$16 sps:$4 sm:$0xff]  }
   0xb   :  { %1136 = vmatpush1.bf16.msra.mxu0 %v2010_v10  ;;  %1355 = vmatpush1.bf16.msra.mxu1 %v2011_v11  ;;  %v2040_v30 = vld [vmem:[%s2924_s3 + $0xe0] ss:$16 sps:$4 sm:$0xff]   ;;  %v2041_v31 = vld [vmem:[%s2924_s3 + $0xe8] ss:$16 sps:$4 sm:$0xff]   ;;  %v2042_v32 = vld [vmem:[%s2924_s3 + $0x104] ss:$16 sps:$4 sm:$0xff]  }
   0xc   :  { %1137 = vmatprep.subr.bf16.mxu0 %v2012_v12  ;;  %1356 = vmatprep.subr.bf16.mxu1 %v2014_v13  ;;  %v2044_v33 = vld [vmem:[%s2924_s3 + $0x10c] ss:$16 sps:$4 sm:$0xff]   ;;  %v2046_v34 = vld [vmem:[%s2924_s3 + $0x100] ss:$16 sps:$4 sm:$0xff]   ;;  %v2047_v35 = vld [vmem:[%s2924_s3 + $0x108] ss:$16 sps:$4 sm:$0xff]  }
   0xd   :  { %v2048_v36 = vld [vmem:[%s2924_s3 + $0x124] ss:$16 sps:$4 sm:$0xff]   ;;  %v2050_v37 = vld [vmem:[%s2924_s3 + $0x12c] ss:$16 sps:$4 sm:$0xff]   ;;  %v2052_v38 = vld [vmem:[%s2924_s3 + $0x120] ss:$16 sps:$4 sm:$0xff]  }
   0xe   :  { %v2053_v39 = vld [vmem:[%s2924_s3 + $0x128] ss:$16 sps:$4 sm:$0xff]   ;;  %v2054_v40 = vld [vmem:[%s2924_s3 + $0x144] ss:$16 sps:$4 sm:$0xff]   ;;  %v2056_v41 = vld [vmem:[%s2924_s3 + $0x14c] ss:$16 sps:$4 sm:$0xff]  }
   0xf   :  { %1138 = vmatpush1.bf16.msra.mxu0 %v2016_v14  ;;  %1357 = vmatpush1.bf16.msra.mxu1 %v2017_v15  ;;  %v2058_v42 = vld [vmem:[%s2924_s3 + $0x140] ss:$16 sps:$4 sm:$0xff]   ;;  %v2059_v43 = vld [vmem:[%s2924_s3 + $0x148] ss:$16 sps:$4 sm:$0xff]   ;;  %v2060_v44 = vld [vmem:[%s2924_s3 + $0x164] ss:$16 sps:$4 sm:$0xff]  }
  0x10   :  { %1139 = vmatprep.subr.bf16.mxu0 %v2018_v16  ;;  %1358 = vmatprep.subr.bf16.mxu1 %v2020_v17  ;;  %v2062_v45 = vld [vmem:[%s2924_s3 + $0x16c] ss:$16 sps:$4 sm:$0xff]   ;;  %v2064_v46 = vld [vmem:[%s2924_s3 + $0x160] ss:$16 sps:$4 sm:$0xff]   ;;  %v2065_v47 = vld [vmem:[%s2924_s3 + $0x168] ss:$16 sps:$4 sm:$0xff]  }
  0x11   :  { %v2090_v48 = vld [vmem:[%s2925_s1] ss:$8 sps:$4 sm:$0xff]   ;;  %v2066_v49 = vld [vmem:[%s2924_s3 + $0x184] ss:$16 sps:$4 sm:$0xff]   ;;  %v2068_v50 = vld [vmem:[%s2924_s3 + $0x18c] ss:$16 sps:$4 sm:$0xff]  }
  0x12   :  { %1163 = vmatprep.mubr.bf16.mxu0 %v2090_v48  ;;  %1382 = vmatprep.mubr.bf16.mxu1 %v2090_v48  ;;  %v2070_v51 = vld [vmem:[%s2924_s3 + $0x180] ss:$16 sps:$4 sm:$0xff]   ;;  %v2071_v52 = vld [vmem:[%s2924_s3 + $0x188] ss:$16 sps:$4 sm:$0xff]   ;;  %v2072_v53 = vld [vmem:[%s2924_s3 + $0x1a4] ss:$16 sps:$4 sm:$0xff]  }
  0x13   :  { %1140 = vmatpush1.bf16.msra.mxu0 %v2022_v18  ;;  %1359 = vmatpush1.bf16.msra.mxu1 %v2023_v19  ;;  %v2074_v54 = vld [vmem:[%s2924_s3 + $0x1ac] ss:$16 sps:$4 sm:$0xff]   ;;  %v2076_v55 = vld [vmem:[%s2924_s3 + $0x1a0] ss:$16 sps:$4 sm:$0xff]   ;;  %v2077_v56 = vld [vmem:[%s2924_s3 + $0x1a8] ss:$16 sps:$4 sm:$0xff]  }
  0x14   :  { %1141 = vmatprep.subr.bf16.mxu0 %v2024_v20  ;;  %1360 = vmatprep.subr.bf16.mxu1 %v2026_v21  ;;  %v2078_v57 = vld [vmem:[%s2924_s3 + $0x1c4] ss:$16 sps:$4 sm:$0xff]   ;;  %v2080_v58 = vld [vmem:[%s2924_s3 + $0x1cc] ss:$16 sps:$4 sm:$0xff]   ;;  %v2082_v59 = vld [vmem:[%s2924_s3 + $0x1c0] ss:$16 sps:$4 sm:$0xff]  }
  0x15   :  { %v2083_v60 = vld [vmem:[%s2924_s3 + $0x1c8] ss:$16 sps:$4 sm:$0xff]   ;;  %v2084_v61 = vld [vmem:[%s2924_s3 + $0x1e4] ss:$16 sps:$4 sm:$0xff]   ;;  %v2086_v62 = vld [vmem:[%s2924_s3 + $0x1ec] ss:$16 sps:$4 sm:$0xff]  }
  0x16   :  { %v2088_v63 = vld [vmem:[%s2924_s3 + $0x1e0] ss:$16 sps:$4 sm:$0xff]   ;;  %v2089_v0 = vld [vmem:[%s2924_s3 + $0x1e8] ss:$16 sps:$4 sm:$0xff]   ;;  %v2095_v1 = vld [vmem:[%s2924_s3 + $0x204] ss:$16 sps:$4 sm:$0xff]  }
  0x17   :  { %1142 = vmatpush1.bf16.msra.mxu0 %v2028_v22  ;;  %1361 = vmatpush1.bf16.msra.mxu1 %v2029_v23  ;;  %v2098_v2 = vld [vmem:[%s2924_s3 + $0x20c] ss:$16 sps:$4 sm:$0xff]   ;;  %v2093_v3 = vld [vmem:[%s2924_s3 + $0x200] ss:$16 sps:$4 sm:$0xff]   ;;  %v2096_v5 = vld [vmem:[%s2924_s3 + $0x208] ss:$16 sps:$4 sm:$0xff]  }
  0x18   :  { %1143 = vmatprep.subr.bf16.mxu0 %v2030_v24  ;;  %1362 = vmatprep.subr.bf16.mxu1 %v2032_v25  ;;  %v2099_v4 = vld [vmem:[%s2926_s0] sm:$0xff]   ;;  %v2105_v7 = vld [vmem:[%s2924_s3 + $0x22c] ss:$16 sps:$4 sm:$0xff]   ;;  %v2103_v9 = vld [vmem:[%s2924_s3 + $0x228] ss:$16 sps:$4 sm:$0xff]  }
  0x19   :  { %v2102_v6 = vld [vmem:[%s2924_s3 + $0x224] ss:$16 sps:$4 sm:$0xff]   ;;  %v2100_v8 = vld [vmem:[%s2924_s3 + $0x220] ss:$16 sps:$4 sm:$0xff]   ;;  %v2111_v11 = vld [vmem:[%s2924_s3 + $0x24c] ss:$16 sps:$4 sm:$0xff]  }
  0x1a   :  { %v2108_v10 = vld [vmem:[%s2924_s3 + $0x244] ss:$16 sps:$4 sm:$0xff]   ;;  %v2106_v12 = vld [vmem:[%s2924_s3 + $0x240] ss:$16 sps:$4 sm:$0xff]   ;;  %v2109_v13 = vld [vmem:[%s2924_s3 + $0x248] ss:$16 sps:$4 sm:$0xff]  }
  0x1b   :  { %1144 = vmatpush1.bf16.msra.mxu0 %v2034_v26  ;;  %1363 = vmatpush1.bf16.msra.mxu1 %v2035_v27  ;;  %v2114_v14 = vld [vmem:[%s2924_s3 + $0x264] ss:$16 sps:$4 sm:$0xff]   ;;  %v2117_v15 = vld [vmem:[%s2924_s3 + $0x26c] ss:$16 sps:$4 sm:$0xff]   ;;  %v2154_v16 = vld [vmem:[%s2925_s1 + $0x10] ss:$8 sps:$4 sm:$0xff]  }
  0x1c   :  { %1145 = vmatprep.subr.bf16.mxu0 %v2036_v28  ;;  %1364 = vmatprep.subr.bf16.mxu1 %v2038_v29  ;;  %v2156_v17 = vld [vmem:[%s2926_s0 + $0x8] sm:$0xff]   ;;  %v2112_v18 = vld [vmem:[%s2924_s3 + $0x260] ss:$16 sps:$4 sm:$0xff]   ;;  %v2120_v20 = vld [vmem:[%s2924_s3 + $0x284] ss:$16 sps:$4 sm:$0xff]  }
  0x1d   :  { %v2115_v19 = vld [vmem:[%s2924_s3 + $0x268] ss:$16 sps:$4 sm:$0xff]   ;;  %v2123_v21 = vld [vmem:[%s2924_s3 + $0x28c] ss:$16 sps:$4 sm:$0xff]   ;;  %v2118_v22 = vld [vmem:[%s2924_s3 + $0x280] ss:$16 sps:$4 sm:$0xff]  }
  0x1e   :  { %v2121_v23 = vld [vmem:[%s2924_s3 + $0x288] ss:$16 sps:$4 sm:$0xff]   ;;  %v2126_v24 = vld [vmem:[%s2924_s3 + $0x2a4] ss:$16 sps:$4 sm:$0xff]   ;;  %v2129_v27 = vld [vmem:[%s2924_s3 + $0x2ac] ss:$16 sps:$4 sm:$0xff]  }
  0x1f   :  { %1146 = vmatpush1.bf16.msra.mxu0 %v2040_v30  ;;  %1365 = vmatpush1.bf16.msra.mxu1 %v2041_v31  ;;  %v2169_v25 = vld [vmem:[%s2925_s1 + $0x20] ss:$8 sps:$4 sm:$0xff]   ;;  %v2171_v26 = vld [vmem:[%s2926_s0 + $0x10] sm:$0xff]   ;;  %v2135_v31 = vld [vmem:[%s2924_s3 + $0x2cc] ss:$16 sps:$4 sm:$0xff]  }
  0x20   :  { %1147 = vmatprep.subr.bf16.mxu0 %v2042_v32  ;;  %1366 = vmatprep.subr.bf16.mxu1 %v2044_v33  ;;  %v2124_v28 = vld [vmem:[%s2924_s3 + $0x2a0] ss:$16 sps:$4 sm:$0xff]   ;;  %v2127_v29 = vld [vmem:[%s2924_s3 + $0x2a8] ss:$16 sps:$4 sm:$0xff]   ;;  %v2132_v30 = vld [vmem:[%s2924_s3 + $0x2c4] ss:$16 sps:$4 sm:$0xff]  }
  0x21   :  { %v2130_v32 = vld [vmem:[%s2924_s3 + $0x2c0] ss:$16 sps:$4 sm:$0xff]   ;;  %v2133_v33 = vld [vmem:[%s2924_s3 + $0x2c8] ss:$16 sps:$4 sm:$0xff]  }
  0x22   :  { %v2151_v48 = vld [vmem:[%s2924_s3 + $0x328] ss:$16 sps:$4 sm:$0xff]  }
  0x23   :  { %1148 = vmatpush1.bf16.msra.mxu0 %v2046_v34  ;;  %1367 = vmatpush1.bf16.msra.mxu1 %v2047_v35  ;;  %v2184_v34 = vld [vmem:[%s2925_s1 + $0x30] ss:$8 sps:$4 sm:$0xff]  }
  0x24   :  { %1149 = vmatprep.subr.bf16.mxu0 %v2048_v36  ;;  %1368 = vmatprep.subr.bf16.mxu1 %v2050_v37  ;;  %v2186_v35 = vld [vmem:[%s2926_s0 + $0x18] sm:$0xff]   ;;  %v2138_v36 = vld [vmem:[%s2924_s3 + $0x2e4] ss:$16 sps:$4 sm:$0xff]  }
  0x25   :  { %v2141_v37 = vld [vmem:[%s2924_s3 + $0x2ec] ss:$16 sps:$4 sm:$0xff]  }
  0x27   :  { %1150 = vmatpush1.bf16.msra.mxu0 %v2052_v38  ;;  %1369 = vmatpush1.bf16.msra.mxu1 %v2053_v39  ;;  %v2136_v38 = vld [vmem:[%s2924_s3 + $0x2e0] ss:$16 sps:$4 sm:$0xff]   ;;  %v2139_v39 = vld [vmem:[%s2924_s3 + $0x2e8] ss:$16 sps:$4 sm:$0xff]  }
  0x28   :  { %1151 = vmatprep.subr.bf16.mxu0 %v2054_v40  ;;  %1370 = vmatprep.subr.bf16.mxu1 %v2056_v41  ;;  %v2144_v40 = vld [vmem:[%s2924_s3 + $0x304] ss:$16 sps:$4 sm:$0xff]   ;;  %v2147_v41 = vld [vmem:[%s2924_s3 + $0x30c] ss:$16 sps:$4 sm:$0xff]  }
  0x2b   :  { %1152 = vmatpush1.bf16.msra.mxu0 %v2058_v42  ;;  %1371 = vmatpush1.bf16.msra.mxu1 %v2059_v43  ;;  %v2199_v42 = vld [vmem:[%s2927_s2] ss:$8 sps:$4 sm:$0xff]  }
  0x2c   :  { %1153 = vmatprep.subr.bf16.mxu0 %v2060_v44  ;;  %1372 = vmatprep.subr.bf16.mxu1 %v2062_v45  ;;  %v2142_v43 = vld [vmem:[%s2924_s3 + $0x300] ss:$16 sps:$4 sm:$0xff]   ;;  %v2145_v44 = vld [vmem:[%s2924_s3 + $0x308] ss:$16 sps:$4 sm:$0xff]   ;;  %v2150_v45 = vld [vmem:[%s2924_s3 + $0x324] ss:$16 sps:$4 sm:$0xff]  }
  0x2f   :  { %1154 = vmatpush1.bf16.msra.mxu0 %v2064_v46  ;;  %1373 = vmatpush1.bf16.msra.mxu1 %v2065_v47  ;;  %v2153_v46 = vld [vmem:[%s2924_s3 + $0x32c] ss:$16 sps:$4 sm:$0xff]   ;;  %v2148_v47 = vld [vmem:[%s2924_s3 + $0x320] ss:$16 sps:$4 sm:$0xff]  }
  0x30   :  { %1155 = vmatprep.subr.bf16.mxu0 %v2066_v49  ;;  %1374 = vmatprep.subr.bf16.mxu1 %v2068_v50  ;;  %v2159_v49 = vld [vmem:[%s2924_s3 + $0x344] ss:$16 sps:$4 sm:$0xff]   ;;  %v2162_v50 = vld [vmem:[%s2924_s3 + $0x34c] ss:$16 sps:$4 sm:$0xff]  }
  0x33   :  { %1156 = vmatpush1.bf16.msra.mxu0 %v2070_v51  ;;  %1375 = vmatpush1.bf16.msra.mxu1 %v2071_v52  ;;  %v2157_v51 = vld [vmem:[%s2924_s3 + $0x340] ss:$16 sps:$4 sm:$0xff]   ;;  %v2160_v52 = vld [vmem:[%s2924_s3 + $0x348] ss:$16 sps:$4 sm:$0xff]  }
  0x34   :  { %1157 = vmatprep.subr.bf16.mxu0 %v2072_v53  ;;  %1376 = vmatprep.subr.bf16.mxu1 %v2074_v54  ;;  %v2165_v53 = vld [vmem:[%s2924_s3 + $0x364] ss:$16 sps:$4 sm:$0xff]   ;;  %v2168_v54 = vld [vmem:[%s2924_s3 + $0x36c] ss:$16 sps:$4 sm:$0xff]  }
  0x37   :  { %1158 = vmatpush1.bf16.msra.mxu0 %v2076_v55  ;;  %1377 = vmatpush1.bf16.msra.mxu1 %v2077_v56  ;;  %v2163_v55 = vld [vmem:[%s2924_s3 + $0x360] ss:$16 sps:$4 sm:$0xff]   ;;  %v2166_v56 = vld [vmem:[%s2924_s3 + $0x368] ss:$16 sps:$4 sm:$0xff]  }
  0x38   :  { %1159 = vmatprep.subr.bf16.mxu0 %v2078_v57  ;;  %1378 = vmatprep.subr.bf16.mxu1 %v2080_v58  ;;  %v2174_v57 = vld [vmem:[%s2924_s3 + $0x384] ss:$16 sps:$4 sm:$0xff]   ;;  %v2177_v58 = vld [vmem:[%s2924_s3 + $0x38c] ss:$16 sps:$4 sm:$0xff]  }
  0x3b   :  { %1160 = vmatpush1.bf16.msra.mxu0 %v2082_v59  ;;  %1379 = vmatpush1.bf16.msra.mxu1 %v2083_v60  ;;  %v2172_v59 = vld [vmem:[%s2924_s3 + $0x380] ss:$16 sps:$4 sm:$0xff]   ;;  %v2175_v60 = vld [vmem:[%s2924_s3 + $0x388] ss:$16 sps:$4 sm:$0xff]  }
  0x3c   :  { %1161 = vmatprep.subr.bf16.mxu0 %v2084_v61  ;;  %1380 = vmatprep.subr.bf16.mxu1 %v2086_v62  ;;  %v2180_v61 = vld [vmem:[%s2924_s3 + $0x3a4] ss:$16 sps:$4 sm:$0xff]   ;;  %v2183_v62 = vld [vmem:[%s2924_s3 + $0x3ac] ss:$16 sps:$4 sm:$0xff]  }
  0x3f   :  { %1162 = vmatpush1.bf16.msra.mxu0 %v2088_v63  ;;  %1381 = vmatpush1.bf16.msra.mxu1 %v2089_v0  ;;  %v2178_v63 = vld [vmem:[%s2924_s3 + $0x3a0] ss:$16 sps:$4 sm:$0xff]   ;;  %v2181_v0 = vld [vmem:[%s2924_s3 + $0x3a8] ss:$16 sps:$4 sm:$0xff]  }
  0x40   :  { %1204 = vmatprep.subr.bf16.mxu0 %v2095_v1  ;;  %1423 = vmatprep.subr.bf16.mxu1 %v2098_v2  ;;  %v2189_v1 = vld [vmem:[%s2924_s3 + $0x3c4] ss:$16 sps:$4 sm:$0xff]   ;;  %v2192_v2 = vld [vmem:[%s2924_s3 + $0x3cc] ss:$16 sps:$4 sm:$0xff]  }
  0x42   :  { %1164 = vmatmul.mubr.bf16.vlgmr.msra.gmra.mrb[0].mxu0 %v2099_v4  ;;  %1383 = vmatmul.mubr.bf16.vlgmr.msra.gmra.mrb[0].mxu1 %v2099_v4  ;;  %v2190_v4 = vld [vmem:[%s2924_s3 + $0x3c8] ss:$16 sps:$4 sm:$0xff]  }
  0x43   :  { %1205 = vmatpush1.bf16.msra.mxu0 %v2093_v3  ;;  %1424 = vmatpush1.bf16.msra.mxu1 %v2096_v5  ;;  %v2187_v3 = vld [vmem:[%s2924_s3 + $0x3c0] ss:$16 sps:$4 sm:$0xff]   ;;  %v2195_v5 = vld [vmem:[%s2924_s3 + $0x3e4] ss:$16 sps:$4 sm:$0xff]  }
  0x44   :  { %1206 = vmatprep.subr.bf16.mxu0 %v2102_v6  ;;  %1425 = vmatprep.subr.bf16.mxu1 %v2105_v7  ;;  %v2198_v6 = vld [vmem:[%s2924_s3 + $0x3ec] ss:$16 sps:$4 sm:$0xff]   ;;  %v2193_v7 = vld [vmem:[%s2924_s3 + $0x3e0] ss:$16 sps:$4 sm:$0xff]  }
  0x45   :  { %1173 = vmatprep.mubr.bf16.mxu0 %v2154_v16  ;;  %1392 = vmatprep.mubr.bf16.mxu1 %v2154_v16  ;;  %v2214_v16 = vld [vmem:[%s2927_s2 + $0x10] ss:$8 sps:$4 sm:$0xff]  }
  0x47   :  { %1207 = vmatpush1.bf16.msra.mxu0 %v2100_v8  ;;  %1426 = vmatpush1.bf16.msra.mxu1 %v2103_v9  ;;  %v2196_v8 = vld [vmem:[%s2924_s3 + $0x3e8] ss:$16 sps:$4 sm:$0xff]   ;;  %v2204_v9 = vld [vmem:[%s2924_s3 + $0x404] ss:$16 sps:$4 sm:$0xff]  }
  0x48   :  { %1208 = vmatprep.subr.bf16.mxu0 %v2108_v10  ;;  %1427 = vmatprep.subr.bf16.mxu1 %v2111_v11  ;;  %v2207_v10 = vld [vmem:[%s2924_s3 + $0x40c] ss:$16 sps:$4 sm:$0xff]  }
  0x49   :  { %v2092_v11 = vld [vmem:[%s2925_s1 + $0x4] ss:$8 sps:$4 sm:$0xff]  }
  0x4a   :  { %1174 = vmatmul.mubr.bf16.gmra.mrb[4].mxu0 %v2156_v17  ;;  %1393 = vmatmul.mubr.bf16.gmra.mrb[4].mxu1 %v2156_v17  ;;  %v2208_v17 = vld [vmem:[%s2924_s3 + $0x420] ss:$16 sps:$4 sm:$0xff]  }
  0x4b   :  { %1209 = vmatpush1.bf16.msra.mxu0 %v2106_v12  ;;  %1428 = vmatpush1.bf16.msra.mxu1 %v2109_v13  ;;  %v2202_v12 = vld [vmem:[%s2924_s3 + $0x400] ss:$16 sps:$4 sm:$0xff]   ;;  %v2205_v13 = vld [vmem:[%s2924_s3 + $0x408] ss:$16 sps:$4 sm:$0xff]  }
  0x4c   :  { %1210 = vmatprep.subr.bf16.mxu0 %v2114_v14  ;;  %1429 = vmatprep.subr.bf16.mxu1 %v2117_v15  ;;  %v2210_v14 = vld [vmem:[%s2924_s3 + $0x424] ss:$16 sps:$4 sm:$0xff]   ;;  %v2213_v15 = vld [vmem:[%s2924_s3 + $0x42c] ss:$16 sps:$4 sm:$0xff]  }
  0x4d   :  { %1183 = vmatprep.mubr.bf16.mxu0 %v2169_v25  ;;  %1402 = vmatprep.mubr.bf16.mxu1 %v2169_v25  ;;  %v2228_v25 = vld [vmem:[%s2924_s3 + $0x46c] ss:$16 sps:$4 sm:$0xff]  }
  0x4f   :  { %1211 = vmatpush1.bf16.msra.mxu0 %v2112_v18  ;;  %1430 = vmatpush1.bf16.msra.mxu1 %v2115_v19  ;;  %v2211_v18 = vld [vmem:[%s2924_s3 + $0x428] ss:$16 sps:$4 sm:$0xff]   ;;  %v2219_v19 = vld [vmem:[%s2924_s3 + $0x444] ss:$16 sps:$4 sm:$0xff]  }
  0x50   :  { %1212 = vmatprep.subr.bf16.mxu0 %v2120_v20  ;;  %1431 = vmatprep.subr.bf16.mxu1 %v2123_v21  ;;  %v2222_v20 = vld [vmem:[%s2924_s3 + $0x44c] ss:$16 sps:$4 sm:$0xff]  }
  0x51   :  { %v2216_v21 = vld [vmem:[%s2925_s1 + $0x14] ss:$8 sps:$4 sm:$0xff]  }
  0x52   :  { %1184 = vmatmul.mubr.bf16.gmra.mrb[8].mxu0 %v2171_v26  ;;  %1403 = vmatmul.mubr.bf16.gmra.mrb[8].mxu1 %v2171_v26  ;;  %v2229_v26 = vld [vmem:[%s2927_s2 + $0x20] ss:$8 sps:$4 sm:$0xff]  }
  0x53   :  { %1213 = vmatpush1.bf16.msra.mxu0 %v2118_v22  ;;  %1432 = vmatpush1.bf16.msra.mxu1 %v2121_v23  ;;  %v2217_v22 = vld [vmem:[%s2924_s3 + $0x440] ss:$16 sps:$4 sm:$0xff]   ;;  %v2220_v23 = vld [vmem:[%s2924_s3 + $0x448] ss:$16 sps:$4 sm:$0xff]  }
  0x54   :  { %1214 = vmatprep.subr.bf16.mxu0 %v2126_v24  ;;  %1433 = vmatprep.subr.bf16.mxu1 %v2129_v27  ;;  %v2225_v24 = vld [vmem:[%s2924_s3 + $0x464] ss:$16 sps:$4 sm:$0xff]   ;;  %v2223_v27 = vld [vmem:[%s2924_s3 + $0x460] ss:$16 sps:$4 sm:$0xff]  }
  0x55   :  { %1193 = vmatprep.mubr.bf16.mxu0 %v2184_v34  ;;  %1412 = vmatprep.mubr.bf16.mxu1 %v2184_v34  ;;  %v2240_v34 = vld [vmem:[%s2924_s3 + $0x4a4] ss:$16 sps:$4 sm:$0xff]  }
  0x57   :  { %1215 = vmatpush1.bf16.msra.mxu0 %v2124_v28  ;;  %1434 = vmatpush1.bf16.msra.mxu1 %v2127_v29  ;;  %v2226_v28 = vld [vmem:[%s2924_s3 + $0x468] ss:$16 sps:$4 sm:$0xff]   ;;  %v2234_v29 = vld [vmem:[%s2924_s3 + $0x484] ss:$16 sps:$4 sm:$0xff]  }
  0x58   :  { %1216 = vmatprep.subr.bf16.mxu0 %v2132_v30  ;;  %1435 = vmatprep.subr.bf16.mxu1 %v2135_v31  ;;  %v2237_v30 = vld [vmem:[%s2924_s3 + $0x48c] ss:$16 sps:$4 sm:$0xff]  }
  0x59   :  { %v2231_v31 = vld [vmem:[%s2925_s1 + $0x24] ss:$8 sps:$4 sm:$0xff]  }
  0x5a   :  { %1194 = vmatmul.mubr.bf16.gmra.mrb[12].mxu0 %v2186_v35  ;;  %1413 = vmatmul.mubr.bf16.gmra.mrb[12].mxu1 %v2186_v35  ;;  %v2243_v35 = vld [vmem:[%s2924_s3 + $0x4ac] ss:$16 sps:$4 sm:$0xff]  }
  0x5b   :  { %1217 = vmatpush1.bf16.msra.mxu0 %v2130_v32  ;;  %1436 = vmatpush1.bf16.msra.mxu1 %v2133_v33  ;;  %v2232_v32 = vld [vmem:[%s2924_s3 + $0x480] ss:$16 sps:$4 sm:$0xff]   ;;  %v2235_v33 = vld [vmem:[%s2924_s3 + $0x488] ss:$16 sps:$4 sm:$0xff]  }
  0x5c   :  { %1218 = vmatprep.subr.bf16.mxu0 %v2138_v36  ;;  %1437 = vmatprep.subr.bf16.mxu1 %v2141_v37  ;;  %v2244_v36 = vld [vmem:[%s2927_s2 + $0x30] ss:$8 sps:$4 sm:$0xff]  }
  0x5d   :  { %1236 = vmatprep.mubr.bf16.mxu0 %v2199_v42  ;;  %1455 = vmatprep.mubr.bf16.mxu1 %v2199_v42  ;;  %v2238_v37 = vld [vmem:[%s2924_s3 + $0x4a0] ss:$16 sps:$4 sm:$0xff]  }
  0x5e   :  { %v2247_v42 = vld [vmem:[%s2924_s3 + $0x4c0] ss:$16 sps:$4 sm:$0xff]  }
  0x5f   :  { %1219 = vmatpush1.bf16.msra.mxu0 %v2136_v38  ;;  %1438 = vmatpush1.bf16.msra.mxu1 %v2139_v39  ;;  %v2241_v38 = vld [vmem:[%s2924_s3 + $0x4a8] ss:$16 sps:$4 sm:$0xff]   ;;  %v2249_v39 = vld [vmem:[%s2924_s3 + $0x4c4] ss:$16 sps:$4 sm:$0xff]  }
  0x60   :  { %1220 = vmatprep.subr.bf16.mxu0 %v2144_v40  ;;  %1439 = vmatprep.subr.bf16.mxu1 %v2147_v41  ;;  %v2252_v40 = vld [vmem:[%s2924_s3 + $0x4cc] ss:$16 sps:$4 sm:$0xff]  }
  0x61   :  { %v2246_v41 = vld [vmem:[%s2925_s1 + $0x34] ss:$8 sps:$4 sm:$0xff]  }
  0x63   :  { %1221 = vmatpush1.bf16.msra.mxu0 %v2142_v43  ;;  %1440 = vmatpush1.bf16.msra.mxu1 %v2145_v44  ;;  %v2250_v43 = vld [vmem:[%s2924_s3 + $0x4c8] ss:$16 sps:$4 sm:$0xff]   ;;  %v2255_v44 = vld [vmem:[%s2924_s3 + $0x4e4] ss:$16 sps:$4 sm:$0xff]  }
  0x64   :  { %1222 = vmatprep.subr.bf16.mxu0 %v2150_v45  ;;  %1441 = vmatprep.subr.bf16.mxu1 %v2153_v46  ;;  %v2258_v45 = vld [vmem:[%s2924_s3 + $0x4ec] ss:$16 sps:$4 sm:$0xff]   ;;  %v2253_v46 = vld [vmem:[%s2924_s3 + $0x4e0] ss:$16 sps:$4 sm:$0xff]  }
  0x67   :  { %1223 = vmatpush1.bf16.msra.mxu0 %v2148_v47  ;;  %1442 = vmatpush1.bf16.msra.mxu1 %v2151_v48  ;;  %v2256_v47 = vld [vmem:[%s2924_s3 + $0x4e8] ss:$16 sps:$4 sm:$0xff]   ;;  %v2262_v48 = vmov 0  }
  0x68   :  { %1224 = vmatprep.subr.bf16.mxu0 %v2159_v49  ;;  %1443 = vmatprep.subr.bf16.mxu1 %v2162_v50  ;;  %v2201_v49 = vld [vmem:[%s2927_s2 + $0x4] ss:$8 sps:$4 sm:$0xff]   ;;  %v2259_v50 = vld [vmem:[%s2927_s2 + $0x14] ss:$8 sps:$4 sm:$0xff]  }
  0x6b   :  { %1225 = vmatpush1.bf16.msra.mxu0 %v2157_v51  ;;  %1444 = vmatpush1.bf16.msra.mxu1 %v2160_v52  ;;  %v2260_v51 = vld [vmem:[%s2927_s2 + $0x24] ss:$8 sps:$4 sm:$0xff]   ;;  %v2261_v52 = vld [vmem:[%s2927_s2 + $0x34] ss:$8 sps:$4 sm:$0xff]  }
  0x6c   :  { %1226 = vmatprep.subr.bf16.mxu0 %v2165_v53  ;;  %1445 = vmatprep.subr.bf16.mxu1 %v2168_v54  ;;  %v311_v53 = vlaneseq }
  0x6e   :  { %v312_v54 = vshrl.u32 %v311_v53, 7 }
  0x6f   :  { %1227 = vmatpush1.bf16.msra.mxu0 %v2163_v55  ;;  %1446 = vmatpush1.bf16.msra.mxu1 %v2166_v56 }
  0x70   :  { %1228 = vmatprep.subr.bf16.mxu0 %v2174_v57  ;;  %1447 = vmatprep.subr.bf16.mxu1 %v2177_v58  ;;  %v313_v55 = vsub.s32 0, %v312_v54  ;;  %v321_v56 = vsub.s32 2, %v312_v54  ;;  %v309_v57 = vld [vmem:[%s2928_s4] sm:$0xf]  ;;  %v317_v58 = vsub.s32 1, %v312_v54 }
  0x73   :  { %1229 = vmatpush1.bf16.msra.mxu0 %v2172_v59  ;;  %1448 = vmatpush1.bf16.msra.mxu1 %v2175_v60  ;;  %v325_v59 = vsub.s32 3, %v312_v54  ;;  %v2836_v60 = vrot.slane %v309_v57, %v313_v55 }
  0x74   :  { %1230 = vmatprep.subr.bf16.mxu0 %v2180_v61  ;;  %1449 = vmatprep.subr.bf16.mxu1 %v2183_v62  ;;  %v2838_v61 = vrot.slane %v309_v57, %v321_v56  ;;  %v2840_v62 = vrot.slane %v309_v57, %v317_v58 }
  0x77   :  { %1231 = vmatpush1.bf16.msra.mxu0 %v2178_v63  ;;  %1450 = vmatpush1.bf16.msra.mxu1 %v2181_v0  ;;  %v2842_v63 = vrot.slane %v309_v57, %v325_v59 }
  0x78   :  { %1232 = vmatprep.subr.bf16.mxu0 %v2189_v1  ;;  %1451 = vmatprep.subr.bf16.mxu1 %v2192_v2 }
  0x7b   :  { %1233 = vmatpush1.bf16.msra.mxu0 %v2187_v3  ;;  %1452 = vmatpush1.bf16.msra.mxu1 %v2190_v4 }
  0x7c   :  { %1234 = vmatprep.subr.bf16.mxu0 %v2195_v5  ;;  %1453 = vmatprep.subr.bf16.mxu1 %v2198_v6 }
  0x7f   :  { %1235 = vmatpush1.bf16.msra.mxu0 %v2193_v7  ;;  %1454 = vmatpush1.bf16.msra.mxu1 %v2196_v8 }
  0x80   :  { %1277 = vmatprep.subr.bf16.mxu0 %v2204_v9  ;;  %1496 = vmatprep.subr.bf16.mxu1 %v2207_v10 }
  0x82   :  { %1237 = vmatmul.mubr.bf16.vlgmr.msra.gmra.mrb[0].mxu0 %v2092_v11  ;;  %1456 = vmatmul.mubr.bf16.vlgmr.msra.gmra.mrb[0].mxu1 %v2092_v11 }
  0x83   :  { %1278 = vmatpush1.bf16.msra.mxu0 %v2202_v12  ;;  %1497 = vmatpush1.bf16.msra.mxu1 %v2205_v13 }
  0x84   :  { %1279 = vmatprep.subr.bf16.mxu0 %v2210_v14  ;;  %1498 = vmatprep.subr.bf16.mxu1 %v2213_v15 }
  0x85   :  { %1246 = vmatprep.mubr.bf16.mxu0 %v2214_v16  ;;  %1465 = vmatprep.mubr.bf16.mxu1 %v2214_v16 }
  0x87   :  { %1280 = vmatpush1.bf16.msra.mxu0 %v2208_v17  ;;  %1499 = vmatpush1.bf16.msra.mxu1 %v2211_v18 }
  0x88   :  { %1281 = vmatprep.subr.bf16.mxu0 %v2219_v19  ;;  %1500 = vmatprep.subr.bf16.mxu1 %v2222_v20 }
  0x8a   :  { %1247 = vmatmul.mubr.bf16.gmra.mrb[4].mxu0 %v2216_v21  ;;  %1466 = vmatmul.mubr.bf16.gmra.mrb[4].mxu1 %v2216_v21 }
  0x8b   :  { %1282 = vmatpush1.bf16.msra.mxu0 %v2217_v22  ;;  %1501 = vmatpush1.bf16.msra.mxu1 %v2220_v23 }
  0x8c   :  { %1283 = vmatprep.subr.bf16.mxu0 %v2225_v24  ;;  %1502 = vmatprep.subr.bf16.mxu1 %v2228_v25 }
  0x8d   :  { %1256 = vmatprep.mubr.bf16.mxu0 %v2229_v26  ;;  %1475 = vmatprep.mubr.bf16.mxu1 %v2229_v26 }
  0x8f   :  { %1284 = vmatpush1.bf16.msra.mxu0 %v2223_v27  ;;  %1503 = vmatpush1.bf16.msra.mxu1 %v2226_v28 }
  0x90   :  { %1285 = vmatprep.subr.bf16.mxu0 %v2234_v29  ;;  %1504 = vmatprep.subr.bf16.mxu1 %v2237_v30 }
  0x92   :  { %1257 = vmatmul.mubr.bf16.gmra.mrb[8].mxu0 %v2231_v31  ;;  %1476 = vmatmul.mubr.bf16.gmra.mrb[8].mxu1 %v2231_v31 }
  0x93   :  { %1286 = vmatpush1.bf16.msra.mxu0 %v2232_v32  ;;  %1505 = vmatpush1.bf16.msra.mxu1 %v2235_v33 }
  0x94   :  { %1287 = vmatprep.subr.bf16.mxu0 %v2240_v34  ;;  %1506 = vmatprep.subr.bf16.mxu1 %v2243_v35 }
  0x95   :  { %1266 = vmatprep.mubr.bf16.mxu0 %v2244_v36  ;;  %1485 = vmatprep.mubr.bf16.mxu1 %v2244_v36 }
  0x97   :  { %1288 = vmatpush1.bf16.msra.mxu0 %v2238_v37  ;;  %1507 = vmatpush1.bf16.msra.mxu1 %v2241_v38 }
  0x98   :  { %1289 = vmatprep.subr.bf16.mxu0 %v2249_v39  ;;  %1508 = vmatprep.subr.bf16.mxu1 %v2252_v40 }
  0x9a   :  { %1267 = vmatmul.mubr.bf16.gmra.mrb[12].mxu0 %v2246_v41  ;;  %1486 = vmatmul.mubr.bf16.gmra.mrb[12].mxu1 %v2246_v41 }
  0x9b   :  { %1290 = vmatpush1.bf16.msra.mxu0 %v2247_v42  ;;  %1509 = vmatpush1.bf16.msra.mxu1 %v2250_v43 }
  0x9c   :  { %1291 = vmatprep.subr.bf16.mxu0 %v2255_v44  ;;  %1510 = vmatprep.subr.bf16.mxu1 %v2258_v45 }
  0x9d   :  { %1309 = vmatprep.mubr.bf16.mxu0 %v2262_v48  ;;  %1528 = vmatprep.mubr.bf16.mxu1 %v2262_v48 }
  0x9f   :  { %1292 = vmatpush1.bf16.msra.mxu0 %v2253_v46  ;;  %1511 = vmatpush1.bf16.msra.mxu1 %v2256_v47 }
  0xa2   :  { %1310 = vmatmul.mubr.bf16.vlgmr.msra.gmra.mrb[0].mxu0 %v2201_v49  ;;  %1529 = vmatmul.mubr.bf16.vlgmr.msra.gmra.mrb[0].mxu1 %v2201_v49 }
  0xa3   :  { %1319 = vmatprep.mubr.bf16.mxu0 %v2262_v48  ;;  %1538 = vmatprep.mubr.bf16.mxu1 %v2262_v48 }
  0xaa   :  { %1320 = vmatmul.mubr.bf16.gmra.mrb[4].mxu0 %v2259_v50  ;;  %1539 = vmatmul.mubr.bf16.gmra.mrb[4].mxu1 %v2259_v50 }
  0xab   :  { %1329 = vmatprep.mubr.bf16.mxu0 %v2262_v48  ;;  %1548 = vmatprep.mubr.bf16.mxu1 %v2262_v48 }
  0xb2   :  { %1330 = vmatmul.mubr.bf16.gmra.mrb[8].mxu0 %v2260_v51  ;;  %1549 = vmatmul.mubr.bf16.gmra.mrb[8].mxu1 %v2260_v51 }
  0xb3   :  { %1339 = vmatprep.mubr.bf16.mxu0 %v2262_v48  ;;  %1558 = vmatprep.mubr.bf16.mxu1 %v2262_v48 }
  0xba   :  { %1340 = vmatmul.mubr.bf16.gmra.mrb[12].mxu0 %v2261_v52  ;;  %1559 = vmatmul.mubr.bf16.gmra.mrb[12].mxu1 %v2261_v52 }
 0x175   :  { %v1311_v0 = vpop.f32.mrb[0].mxu0  ;;  %v1530_v1 = vpop.f32.mrb[0].mxu1 }
 0x176   :  { %v1897_v2 = vadd.f32 %v1311_v0, %v2836_v60  ;;  %v1913_v3 = vadd.f32 %v1530_v1, %v2838_v61  ;;  %v1313_v4 = vpop.f32.mrb[1].mxu0  ;;  %v1532_v5 = vpop.f32.mrb[1].mxu1 }
 0x177   :  { %v1898_v6 = vadd.f32 %v1313_v4, %v2840_v62  ;;  %v1914_v7 = vadd.f32 %v1532_v5, %v2842_v63  ;;  %v1315_v8 = vpop.f32.mrb[2].mxu0  ;;  %v1534_v9 = vpop.f32.mrb[2].mxu1 }
 0x178   :  { %v1899_v10 = vadd.f32 %v1315_v8, %v2836_v60  ;;  %v1915_v11 = vadd.f32 %v1534_v9, %v2838_v61  ;;  %v1317_v12 = vpop.f32.mrb[3].mxu0  ;;  %v1536_v13 = vpop.f32.mrb[3].mxu1 }
 0x179   :  { %v1881_v14 = vpack.c.bf16 %v1898_v6, %v1897_v2  ;;  %v1882_v15 = vpack.c.bf16 %v1914_v7, %v1913_v3  ;;  %v1900_v16 = vadd.f32 %v1317_v12, %v2840_v62  ;;  %v1916_v17 = vadd.f32 %v1536_v13, %v2842_v63 }
 0x17b   :  { %1665 = vst [vmem:[%s2929_s5] sm:$0xff] %v1881_v14  ;;  %1666 = vst [vmem:[%s2929_s5 + $0x8] sm:$0xff] %v1882_v15  ;;  %v1883_v18 = vpack.c.bf16 %v1900_v16, %v1899_v10  ;;  %v1884_v19 = vpack.c.bf16 %v1916_v17, %v1915_v11 }
 0x17d   :  { %1667 = vst [vmem:[%s2929_s5 + $0x10] sm:$0xff] %v1883_v18  ;;  %1668 = vst [vmem:[%s2929_s5 + $0x18] sm:$0xff] %v1884_v19  ;;  %v1321_v20 = vpop.f32.mrb[4].mxu0  ;;  %v1540_v21 = vpop.f32.mrb[4].mxu1 }
 0x17e   :  { %v1901_v22 = vadd.f32 %v1321_v20, %v2836_v60  ;;  %v1917_v23 = vadd.f32 %v1540_v21, %v2838_v61  ;;  %v1323_v24 = vpop.f32.mrb[5].mxu0  ;;  %v1542_v25 = vpop.f32.mrb[5].mxu1 }
 0x17f   :  { %v1902_v26 = vadd.f32 %v1323_v24, %v2840_v62  ;;  %v1918_v27 = vadd.f32 %v1542_v25, %v2842_v63  ;;  %v1325_v28 = vpop.f32.mrb[6].mxu0  ;;  %v1544_v29 = vpop.f32.mrb[6].mxu1 }
 0x180   :  { %v1903_v30 = vadd.f32 %v1325_v28, %v2836_v60  ;;  %v1919_v31 = vadd.f32 %v1544_v29, %v2838_v61  ;;  %v1327_v32 = vpop.f32.mrb[7].mxu0  ;;  %v1546_v33 = vpop.f32.mrb[7].mxu1 }
 0x181   :  { %v1885_v34 = vpack.c.bf16 %v1902_v26, %v1901_v22  ;;  %v1886_v35 = vpack.c.bf16 %v1918_v27, %v1917_v23  ;;  %v1904_v36 = vadd.f32 %v1327_v32, %v2840_v62  ;;  %v1920_v37 = vadd.f32 %v1546_v33, %v2842_v63 }
 0x183   :  { %1669 = vst [vmem:[%s2929_s5 + $0x20] sm:$0xff] %v1885_v34  ;;  %1670 = vst [vmem:[%s2929_s5 + $0x28] sm:$0xff] %v1886_v35  ;;  %v1887_v38 = vpack.c.bf16 %v1904_v36, %v1903_v30  ;;  %v1888_v39 = vpack.c.bf16 %v1920_v37, %v1919_v31 }
 0x185   :  { %1671 = vst [vmem:[%s2929_s5 + $0x30] sm:$0xff] %v1887_v38  ;;  %1672 = vst [vmem:[%s2929_s5 + $0x38] sm:$0xff] %v1888_v39  ;;  %v1331_v40 = vpop.f32.mrb[8].mxu0  ;;  %v1550_v41 = vpop.f32.mrb[8].mxu1 }
 0x186   :  { %v1905_v42 = vadd.f32 %v1331_v40, %v2836_v60  ;;  %v1921_v43 = vadd.f32 %v1550_v41, %v2838_v61  ;;  %v1333_v44 = vpop.f32.mrb[9].mxu0  ;;  %v1552_v45 = vpop.f32.mrb[9].mxu1 }
 0x187   :  { %v1906_v46 = vadd.f32 %v1333_v44, %v2840_v62  ;;  %v1922_v47 = vadd.f32 %v1552_v45, %v2842_v63  ;;  %v1335_v48 = vpop.f32.mrb[10].mxu0  ;;  %v1554_v49 = vpop.f32.mrb[10].mxu1 }
 0x188   :  { %v1907_v50 = vadd.f32 %v1335_v48, %v2836_v60  ;;  %v1923_v51 = vadd.f32 %v1554_v49, %v2838_v61  ;;  %v1337_v52 = vpop.f32.mrb[11].mxu0  ;;  %v1556_v53 = vpop.f32.mrb[11].mxu1 }
 0x189   :  { %v1889_v54 = vpack.c.bf16 %v1906_v46, %v1905_v42  ;;  %v1890_v55 = vpack.c.bf16 %v1922_v47, %v1921_v43  ;;  %v1908_v56 = vadd.f32 %v1337_v52, %v2840_v62  ;;  %v1924_v57 = vadd.f32 %v1556_v53, %v2842_v63 }
 0x18b   :  { %1673 = vst [vmem:[%s2929_s5 + $0x40] sm:$0xff] %v1889_v54  ;;  %1674 = vst [vmem:[%s2929_s5 + $0x48] sm:$0xff] %v1890_v55  ;;  %v1891_v58 = vpack.c.bf16 %v1908_v56, %v1907_v50  ;;  %v1892_v59 = vpack.c.bf16 %v1924_v57, %v1923_v51 }
 0x18d   :  { %1675 = vst [vmem:[%s2929_s5 + $0x50] sm:$0xff] %v1891_v58  ;;  %1676 = vst [vmem:[%s2929_s5 + $0x58] sm:$0xff] %v1892_v59  ;;  %v1341_v0 = vpop.f32.mrb[12].mxu0  ;;  %v1560_v1 = vpop.f32.mrb[12].mxu1 }
 0x18e   :  { %v1909_v2 = vadd.f32 %v1341_v0, %v2836_v60  ;;  %v1925_v3 = vadd.f32 %v1560_v1, %v2838_v61  ;;  %v1343_v4 = vpop.f32.mrb[13].mxu0  ;;  %v1562_v5 = vpop.f32.mrb[13].mxu1 }
 0x18f   :  { %v1910_v6 = vadd.f32 %v1343_v4, %v2840_v62  ;;  %v1926_v7 = vadd.f32 %v1562_v5, %v2842_v63  ;;  %v1345_v8 = vpop.f32.mrb[14].mxu0  ;;  %v1564_v9 = vpop.f32.mrb[14].mxu1 }
 0x190   :  { %v1911_v10 = vadd.f32 %v1345_v8, %v2836_v60  ;;  %v1927_v11 = vadd.f32 %v1564_v9, %v2838_v61  ;;  %v1347_v12 = vpop.f32.mrb[15].mxu0  ;;  %v1566_v13 = vpop.f32.mrb[15].mxu1 }
 0x191   :  { %v1893_v14 = vpack.c.bf16 %v1910_v6, %v1909_v2  ;;  %v1894_v15 = vpack.c.bf16 %v1926_v7, %v1925_v3  ;;  %v1912_v16 = vadd.f32 %v1347_v12, %v2840_v62  ;;  %v1928_v17 = vadd.f32 %v1566_v13, %v2842_v63 }
 0x193   :  { %1677 = vst [vmem:[%s2929_s5 + $0x60] sm:$0xff] %v1893_v14  ;;  %1678 = vst [vmem:[%s2929_s5 + $0x68] sm:$0xff] %v1894_v15  ;;  %v1895_v18 = vpack.c.bf16 %v1912_v16, %v1911_v10  ;;  %v1896_v60 = vpack.c.bf16 %v1928_v17, %v1927_v11 }
 0x195   :  { %1679 = vst [vmem:[%s2929_s5 + $0x70] sm:$0xff] %v1895_v18  ;;  %1680 = vst [vmem:[%s2929_s5 + $0x78] sm:$0xff] %v1896_v60 }

</bundles_post_ra>
